<compile_context>
chip_gen: v7x
topology: tpu7x:2x2x1
jax: 0.10.0
libtpu: 0.0.40
codegen_flags: <defaults>
</compile_context>

<pallas_src>
import math
from functools import partial

import jax
import jax.numpy as jnp
from jax.experimental import pallas as pl
from jax.experimental.pallas import tpu as pltpu


# ---------------------------------------------------------------------------
# Fused Pallas kernel: full encoder stack, grid = (batch_blocks, layer)
# ---------------------------------------------------------------------------
def _encoder_stack_kernel(n_head, eps,
                          x_ref, bias_ref,
                          wqkv_ref, bqkv_ref, wo_ref, bo_ref,
                          ln1g_ref, ln1b_ref,
                          w1_ref, b1_ref, w2_ref, b2_ref,
                          ln2g_ref, ln2b_ref,
                          out_ref,
                          x_vmem):
    layer = pl.program_id(1)
    n_layers = pl.num_programs(1)

    TB, S, D = x_ref.shape
    M = TB * S                     # rows of every matmul (folded batch)
    H = n_head
    dh = D // H
    G = TB * H                     # flattened batch dim for attention matmuls
    bf16 = jnp.bfloat16
    scale = jnp.float32(1.0 / math.sqrt(dh))

    # Load the embedded input into the VMEM-resident activation at layer 0.
    @pl.when(layer == 0)
    def _():
        x_vmem[...] = x_ref[...].reshape(M, D)

    x = x_vmem[...]                # (M, D) f32, resident across layers
    bias = bias_ref[...]           # (TB, 1, S) additive key-padding bias (0 / -1e4)

    def dense(v16, w_ref, b_ref):
        # bf16 MXU inputs, f32 accumulation, f32 bias add.
        return jnp.dot(v16, w_ref[0], preferred_element_type=jnp.float32) + b_ref[0]

    def layernorm(v, g_ref, b_ref):
        mean = jnp.mean(v, axis=-1, keepdims=True)
        var = jnp.mean(jnp.square(v - mean), axis=-1, keepdims=True)
        return (v - mean) * jax.lax.rsqrt(var + eps) * g_ref[0] + b_ref[0]

    # ---- fused QKV projection: one (M, D) x (D, 3D) matmul -------------------
    x16 = x.astype(bf16)                                 # cast x once per layer
    qkv = dense(x16, wqkv_ref, bqkv_ref)                 # (M, 3D) f32
    q = qkv[:, 0:D] * scale                              # scale folded into q
    k = qkv[:, D:2 * D]
    v = qkv[:, 2 * D:3 * D]

    # head-major relayout, single flattened batch dim G = TB*H
    def heads(t):
        return (t.astype(bf16).reshape(TB, S, H, dh)
                .transpose(0, 2, 1, 3).reshape(G, S, dh))

    qh = heads(q)
    kh = heads(k)
    vh = heads(v)

    # ---- attention ------------------------------------------------------------
    scores = jnp.einsum('gqd,gkd->gqk', qh, kh,
                        preferred_element_type=jnp.float32)          # (G, S, S)
    s4 = scores.reshape(TB, H, S, S) + bias[:, :, None, :]           # + key-pad bias
    s4 = s4 - jnp.max(s4, axis=-1, keepdims=True)
    p4 = jnp.exp(s4)
    l4 = jnp.sum(p4, axis=-1, keepdims=True)                         # (TB, H, S, 1)

    ctx = jnp.einsum('gqk,gkd->gqd', p4.astype(bf16).reshape(G, S, S), vh,
                     preferred_element_type=jnp.float32)             # (G, S, dh)
    # deferred softmax normalization (dh < S, so this is the cheaper tensor)
    ctx = ctx * pl.reciprocal(l4.reshape(G, S, 1), approx=True)
    ctx = ctx.reshape(TB, H, S, dh).transpose(0, 2, 1, 3).reshape(M, D)

    attn = dense(ctx.astype(bf16), wo_ref, bo_ref)

    # ---- residual + layernorm 1 -----------------------------------------------
    x1 = layernorm(x + attn, ln1g_ref, ln1b_ref)

    # ---- position-wise feed-forward ---------------------------------------------
    h1 = jnp.maximum(dense(x1.astype(bf16), w1_ref, b1_ref), 0.0)    # ReLU
    ff = dense(h1.astype(bf16), w2_ref, b2_ref)

    # ---- residual + layernorm 2 -------------------------------------------------
    x2 = layernorm(x1 + ff, ln2g_ref, ln2b_ref)

    # Carry the activation to the next layer; emit output at the last layer.
    x_vmem[...] = x2

    @pl.when(layer == n_layers - 1)
    def _():
        out_ref[...] = x2.reshape(TB, S, D)


def _choose_batch_block(B, S, target_rows=256):
    """Pick TB | B so TB*S ~ target_rows (bigger MXU M, TB-fold fewer weight
    DMAs).  Keep >=2 steps on the (parallel) batch axis when that still gives a
    reasonable M — v7x shards the parallel axis across its 2 TensorCores."""
    divisors = [d for d in range(1, B + 1) if B % d == 0]
    fit = [d for d in divisors if d * S <= target_rows]
    tb = max(fit) if fit else 1
    if tb == B and B > 1:
        smaller = max(d for d in divisors if d < B)
        if smaller * S >= 128:
            tb = smaller
    return tb


def encoder_stack(x, key_mask, wp, n_head, eps=1e-12, batch_block=None):
    """x: (B, S, D) f32; key_mask: (B, 1, S) f32 (1.0 attend / 0.0 pad) -> (B, S, D).

    wp: dict of per-layer weights stacked along a leading n_block axis
        (matmul weights in bf16 with fused QKV, biases / layernorm params f32).
    """
    B, S, D = x.shape
    L = wp["wqkv"].shape[0]
    TB = batch_block or _choose_batch_block(B, S)
    assert B % TB == 0

    # additive mask bias: 0 where attend, -10000 where padded
    bias = (key_mask.astype(jnp.float32) - 1.0) * 10000.0            # (B, 1, S)

    weight_names = ["wqkv", "bqkv", "wo", "bo", "ln1g", "ln1b",
                    "w1", "b1", "w2", "b2", "ln2g", "ln2b"]
    weights = [wp[n] for n in weight_names]

    def wspec(arr):
        nd = arr.ndim
        # weights indexed only by the layer axis -> fetched (B//TB)*L times total
        return pl.BlockSpec((1,) + arr.shape[1:],
                            lambda b, l, _nd=nd: (l,) + (0,) * (_nd - 1))

    in_specs = (
        [pl.BlockSpec((TB, S, D), lambda b, l: (b, 0, 0)),   # x (read at layer 0)
         pl.BlockSpec((TB, 1, S), lambda b, l: (b, 0, 0))]   # additive mask bias
        + [wspec(w) for w in weights]                         # per-layer weights
    )
    out_spec = pl.BlockSpec((TB, S, D), lambda b, l: (b, 0, 0))

    # NOTE: if a profile shows exposed weight DMA at layer boundaries, add
    # pipeline_mode=pl.Buffered(3) to the w1/w2 specs (largest per-layer DMAs).
    return pl.pallas_call(
        partial(_encoder_stack_kernel, n_head, eps),
        out_shape=jax.ShapeDtypeStruct((B, S, D), jnp.float32),
        grid=(B // TB, L),
        in_specs=in_specs,
        out_specs=out_spec,
        scratch_shapes=[pltpu.VMEM((TB * S, D), jnp.float32)],  # x resident over layers
        compiler_params=pltpu.CompilerParams(
            dimension_semantics=("parallel", "arbitrary"),
            # v5e's scoped-VMEM default is only 16 MiB; raise it (with headroom
            # under every generation's physical VMEM) so larger configs don't
            # force smaller internal tiling.
            vmem_limit_bytes=64 * 1024 * 1024),
    )(x, bias, *weights)


# ---------------------------------------------------------------------------
# Glue: embedding + positional encoding, parameter init, full forward
# ---------------------------------------------------------------------------
def sinusoidal_pe(max_len, d_model):
    pos = jnp.arange(max_len, dtype=jnp.float32)[:, None]
    i = jnp.arange(0, d_model, 2, dtype=jnp.float32)
    div = jnp.power(10000.0, i / d_model)
    pe = jnp.zeros((max_len, d_model), jnp.float32)
    pe = pe.at[:, 0::2].set(jnp.sin(pos / div))
    pe = pe.at[:, 1::2].set(jnp.cos(pos / div))
    return pe


def init_encoder_params(key, n_embedding, d_model, d_hidden, n_block, max_len):
    keys = jax.random.split(key, 1 + n_block)
    tok_emb = jax.random.normal(keys[0], (n_embedding, d_model), jnp.float32) * 0.02
    pe = sinusoidal_pe(max_len, d_model)

    def lin_w(k, fan_in, shape):
        bound = 1.0 / math.sqrt(fan_in)
        return jax.random.uniform(k, shape, jnp.float32, -bound, bound)

    per_block = []
    for b in range(n_block):
        bk = jax.random.split(keys[1 + b], 12)
        wq = lin_w(bk[0], d_model, (d_model, d_model))
        wk = lin_w(bk[2], d_model, (d_model, d_model))
        wv = lin_w(bk[4], d_model, (d_model, d_model))
        bq = lin_w(bk[1], d_model, (1, d_model))
        bkb = lin_w(bk[3], d_model, (1, d_model))
        bv = lin_w(bk[5], d_model, (1, d_model))
        per_block.append({
            # fused QKV projection: (D, 3D) weight, (1, 3D) bias
            "wqkv": jnp.concatenate([wq, wk, wv], axis=1),
            "bqkv": jnp.concatenate([bq, bkb, bv], axis=1),
            "wo": lin_w(bk[6], d_model, (d_model, d_model)),
            "bo": lin_w(bk[7], d_model, (1, d_model)),
            "ln1g": jnp.ones((1, d_model), jnp.float32),
            "ln1b": jnp.zeros((1, d_model), jnp.float32),
            "w1": lin_w(bk[8], d_model, (d_model, d_hidden)),
            "b1": lin_w(bk[9], d_model, (1, d_hidden)),
            "w2": lin_w(bk[10], d_hidden, (d_hidden, d_model)),
            "b2": lin_w(bk[11], d_hidden, (1, d_model)),
            "ln2g": jnp.ones((1, d_model), jnp.float32),
            "ln2b": jnp.zeros((1, d_model), jnp.float32),
        })

    # Stack per-layer params with leading n_block axis; matmul weights in bf16
    # (f32 accumulation in the kernel); biases / layernorm params stay f32.
    matmul_weights = {"wqkv", "wo", "w1", "w2"}
    stacked = {}
    for name in per_block[0]:
        w = jnp.stack([blk[name] for blk in per_block], axis=0)
        if name in matmul_weights:
            w = w.astype(jnp.bfloat16)
        stacked[name] = w

    return {"tok_emb": tok_emb, "pe": pe, "stacked": stacked}


def encoder_forward(tokens, s_mask, params, n_head):
    """tokens: (B, S) int32; s_mask: key-padding mask (B, S) or (B, 1, S), 1 = attend."""
    # TransformerEmbedding: token-embedding gather + positional encoding
    # (dropout = identity in eval mode).  Gather stays in plain JAX glue.
    S = tokens.shape[1]
    x = params["tok_emb"][tokens] + params["pe"][:S][None, :, :]
    x = x.astype(jnp.float32)
    if s_mask.ndim == 2:
        s_mask = s_mask[:, None, :]
    return encoder_stack(x, s_mask.astype(jnp.float32), params["stacked"], n_head)


# ---------------------------------------------------------------------------
if __name__ == "__main__":
    # Small but TPU-friendly (lane-dense) configuration.
    B, S = 2, 16
    n_embedding, d_model, d_hidden = 100, 128, 256
    n_block, n_head, max_len = 2, 4, 32

    key = jax.random.PRNGKey(0)
    tok_key, mask_key, param_key = jax.random.split(key, 3)

    tokens = jax.random.randint(tok_key, (B, S), 0, n_embedding, dtype=jnp.int32)
    # source padding mask: 1.0 = attend to that key position, 0.0 = padded
    key_valid = (jax.random.uniform(mask_key, (B, S)) > 0.2).astype(jnp.float32)
    s_mask = key_valid[:, None, :]                       # (B, 1, S)

    params = init_encoder_params(param_key, n_embedding, d_model, d_hidden,
                                 n_block, max_len)

    out = encoder_forward(tokens, s_mask, params, n_head)
    jax.block_until_ready(out)
    assert out.shape == (B, S, d_model)
    assert bool(jnp.all(jnp.isfinite(out)))
    print("KERNEL_OK")
</pallas_src>

<mosaic_0001>
module attributes {stable_mosaic.version = 11 : i64} {
  func.func @_encoder_stack_kernel(%arg0: i32, %arg1: i32, %arg2: memref<2x16x128xf32, #tpu.memory_space<vmem>>, %arg3: memref<2x1x16xf32, #tpu.memory_space<vmem>>, %arg4: memref<1x128x384xbf16, #tpu.memory_space<vmem>>, %arg5: memref<1x1x384xf32, #tpu.memory_space<vmem>>, %arg6: memref<1x128x128xbf16, #tpu.memory_space<vmem>>, %arg7: memref<1x1x128xf32, #tpu.memory_space<vmem>>, %arg8: memref<1x1x128xf32, #tpu.memory_space<vmem>>, %arg9: memref<1x1x128xf32, #tpu.memory_space<vmem>>, %arg10: memref<1x128x256xbf16, #tpu.memory_space<vmem>>, %arg11: memref<1x1x256xf32, #tpu.memory_space<vmem>>, %arg12: memref<1x256x128xbf16, #tpu.memory_space<vmem>>, %arg13: memref<1x1x128xf32, #tpu.memory_space<vmem>>, %arg14: memref<1x1x128xf32, #tpu.memory_space<vmem>>, %arg15: memref<1x1x128xf32, #tpu.memory_space<vmem>>, %arg16: memref<2x16x128xf32, #tpu.memory_space<vmem>>, %arg17: memref<32x128xf32, #tpu.memory_space<vmem>>) attributes {dimension_semantics = [#tpu.dimension_semantics<parallel>, #tpu.dimension_semantics<arbitrary>], iteration_bounds = array<i64: 1, 2>, scalar_prefetch = 0 : i64, scratch_operands = 1 : i64, tpu.core_type = #tpu.core_type<tc>, window_params = [{transform_indices = @transform_0, window_bounds = array<i64: 2, 16, 128>}, {transform_indices = @transform_1, window_bounds = array<i64: 2, 1, 16>}, {transform_indices = @transform_2, window_bounds = array<i64: 1, 128, 384>}, {transform_indices = @transform_3, window_bounds = array<i64: 1, 1, 384>}, {transform_indices = @transform_4, window_bounds = array<i64: 1, 128, 128>}, {transform_indices = @transform_5, window_bounds = array<i64: 1, 1, 128>}, {transform_indices = @transform_6, window_bounds = array<i64: 1, 1, 128>}, {transform_indices = @transform_7, window_bounds = array<i64: 1, 1, 128>}, {transform_indices = @transform_8, window_bounds = array<i64: 1, 128, 256>}, {transform_indices = @transform_9, window_bounds = array<i64: 1, 1, 256>}, {transform_indices = @transform_10, window_bounds = array<i64: 1, 256, 128>}, {transform_indices = @transform_11, window_bounds = array<i64: 1, 1, 128>}, {transform_indices = @transform_12, window_bounds = array<i64: 1, 1, 128>}, {transform_indices = @transform_13, window_bounds = array<i64: 1, 1, 128>}, {transform_indices = @transform_14, window_bounds = array<i64: 2, 16, 128>}]} {
    %c0_i32 = arith.constant 0 : i32
    %0 = arith.cmpi eq, %arg1, %c0_i32 : i32
    %1 = arith.extui %0 : i1 to i32
    %c0_i32_0 = arith.constant 0 : i32
    %2 = arith.cmpi ne, %1, %c0_i32_0 : i32
    scf.if %2 {
      %c0_63 = arith.constant 0 : index
      %c0_64 = arith.constant 0 : index
      %c0_65 = arith.constant 0 : index
      %136 = vector.load %arg2[%c0_63, %c0_64, %c0_65] : memref<2x16x128xf32, #tpu.memory_space<vmem>>, vector<2x16x128xf32>
      %137 = vector.shape_cast %136 : vector<2x16x128xf32> to vector<32x128xf32>
      %c0_66 = arith.constant 0 : index
      %c0_67 = arith.constant 0 : index
      %138 = vector.load %arg17[%c0_66, %c0_67] : memref<32x128xf32, #tpu.memory_space<vmem>>, vector<32x128xf32>
      tpu.vector_store %arg17[%c0_66, %c0_67], %137 {strides = array<i32>} : memref<32x128xf32, #tpu.memory_space<vmem>>, vector<32x128xf32>,
    } else {
    }
    %c0 = arith.constant 0 : index
    %c0_1 = arith.constant 0 : index
    %3 = vector.load %arg17[%c0, %c0_1] : memref<32x128xf32, #tpu.memory_space<vmem>>, vector<32x128xf32>
    %c0_2 = arith.constant 0 : index
    %c0_3 = arith.constant 0 : index
    %c0_4 = arith.constant 0 : index
    %4 = vector.load %arg3[%c0_2, %c0_3, %c0_4] : memref<2x1x16xf32, #tpu.memory_space<vmem>>, vector<2x1x16xf32>
    %5 = arith.truncf %3 : vector<32x128xf32> to vector<32x128xbf16>
    %c0_5 = arith.constant 0 : index
    %c0_6 = arith.constant 0 : index
    %c0_7 = arith.constant 0 : index
    %6 = vector.load %arg4[%c0_5, %c0_6, %c0_7] : memref<1x128x384xbf16, #tpu.memory_space<vmem>>, vector<1x128x384xbf16>
    %7 = vector.shape_cast %6 : vector<1x128x384xbf16> to vector<128x384xbf16>
    %cst = arith.constant dense<0.000000e+00> : vector<32x384xf32>
    %8 = tpu.matmul %5, %7, %cst {dimension_numbers = #tpu.dot_dimension_numbers<[1], [0], [0], [1], [0, 0, 1, 1], [], []>} : vector<32x128xbf16>, vector<128x384xbf16>, vector<32x384xf32> -> vector<32x384xf32>
    %c0_8 = arith.constant 0 : index
    %c0_9 = arith.constant 0 : index
    %c0_10 = arith.constant 0 : index
    %9 = vector.load %arg5[%c0_8, %c0_9, %c0_10] : memref<1x1x384xf32, #tpu.memory_space<vmem>>, vector<1x1x384xf32>
    %10 = vector.shape_cast %9 : vector<1x1x384xf32> to vector<1x384xf32>
    %11 = vector.broadcast %10 : vector<1x384xf32> to vector<32x384xf32>
    %12 = arith.addf %8, %11 : vector<32x384xf32>
    %13 = vector.extract_strided_slice %12 {offsets = [0, 0], sizes = [32, 128], strides = [1, 1]} : vector<32x384xf32> to vector<32x128xf32>
    %cst_11 = arith.constant 0.176776692 : f32
    %14 = vector.broadcast %cst_11 : f32 to vector<32x128xf32>
    %15 = arith.mulf %13, %14 : vector<32x128xf32>
    %16 = vector.extract_strided_slice %12 {offsets = [0, 128], sizes = [32, 128], strides = [1, 1]} : vector<32x384xf32> to vector<32x128xf32>
    %17 = vector.extract_strided_slice %12 {offsets = [0, 256], sizes = [32, 128], strides = [1, 1]} : vector<32x384xf32> to vector<32x128xf32>
    %18 = arith.truncf %15 : vector<32x128xf32> to vector<32x128xbf16>
    %19 = vector.shape_cast %18 : vector<32x128xbf16> to vector<2x16x4x32xbf16>
    %20 = tpu.transpose %19, [0, 2, 1, 3] : vector<2x16x4x32xbf16> -> vector<2x4x16x32xbf16>
    %21 = vector.shape_cast %20 : vector<2x4x16x32xbf16> to vector<8x16x32xbf16>
    %22 = arith.truncf %16 : vector<32x128xf32> to vector<32x128xbf16>
    %23 = vector.shape_cast %22 : vector<32x128xbf16> to vector<2x16x4x32xbf16>
    %24 = tpu.transpose %23, [0, 2, 1, 3] : vector<2x16x4x32xbf16> -> vector<2x4x16x32xbf16>
    %25 = vector.shape_cast %24 : vector<2x4x16x32xbf16> to vector<8x16x32xbf16>
    %26 = arith.truncf %17 : vector<32x128xf32> to vector<32x128xbf16>
    %27 = vector.shape_cast %26 : vector<32x128xbf16> to vector<2x16x4x32xbf16>
    %28 = tpu.transpose %27, [0, 2, 1, 3] : vector<2x16x4x32xbf16> -> vector<2x4x16x32xbf16>
    %29 = vector.shape_cast %28 : vector<2x4x16x32xbf16> to vector<8x16x32xbf16>
    "tpu.trace_start"() <{level = 10 : i32, message = "gqd,gkd->gqk"}> : () -> ()
    %cst_12 = arith.constant dense<0.000000e+00> : vector<8x16x16xf32>
    %30 = tpu.matmul %21, %25, %cst_12 {dimension_numbers = #tpu.dot_dimension_numbers<[2], [2], [1], [1], [0, 0, 0, 1, 1, 1], [0], [0]>} : vector<8x16x32xbf16>, vector<8x16x32xbf16>, vector<8x16x16xf32> -> vector<8x16x16xf32>
    "tpu.trace_stop"() : () -> ()
    %31 = vector.shape_cast %30 : vector<8x16x16xf32> to vector<2x4x16x16xf32>
    %32 = vector.shape_cast %4 : vector<2x1x16xf32> to vector<2x1x1x16xf32>
    %33 = vector.broadcast %32 : vector<2x1x1x16xf32> to vector<2x4x16x16xf32>
    %34 = arith.addf %31, %33 : vector<2x4x16x16xf32>
    %cst_13 = arith.constant dense<0xFF800000> : vector<2x4x16xf32>
    %35 = vector.multi_reduction <maximumf>, %34, %cst_13 [3] : vector<2x4x16x16xf32> to vector<2x4x16xf32>
    %36 = vector.shape_cast %35 : vector<2x4x16xf32> to vector<2x4x16x1xf32>
    %37 = vector.broadcast %36 : vector<2x4x16x1xf32> to vector<2x4x16x16xf32>
    %38 = arith.subf %34, %37 : vector<2x4x16x16xf32>
    %39 = math.exp %38 : vector<2x4x16x16xf32>
    %cst_14 = arith.constant dense<0.000000e+00> : vector<2x4x16xf32>
    %40 = vector.multi_reduction <add>, %39, %cst_14 [3] : vector<2x4x16x16xf32> to vector<2x4x16xf32>
    %41 = vector.shape_cast %40 : vector<2x4x16xf32> to vector<2x4x16x1xf32>
    %42 = arith.truncf %39 : vector<2x4x16x16xf32> to vector<2x4x16x16xbf16>
    %43 = vector.shape_cast %42 : vector<2x4x16x16xbf16> to vector<8x16x16xbf16>
    "tpu.trace_start"() <{level = 10 : i32, message = "gqk,gkd->gqd"}> : () -> ()
    %cst_15 = arith.constant dense<0.000000e+00> : vector<8x16x32xf32>
    %44 = tpu.matmul %43, %29, %cst_15 {dimension_numbers = #tpu.dot_dimension_numbers<[2], [1], [1], [2], [0, 0, 0, 1, 1, 2], [0], [0]>} : vector<8x16x16xbf16>, vector<8x16x32xbf16>, vector<8x16x32xf32> -> vector<8x16x32xf32>
    "tpu.trace_stop"() : () -> ()
    %45 = vector.shape_cast %41 : vector<2x4x16x1xf32> to vector<8x16x1xf32>
    %46 = tpu.reciprocal %45 {approx = true} : vector<8x16x1xf32> -> vector<8x16x1xf32>
    %47 = vector.broadcast %46 : vector<8x16x1xf32> to vector<8x16x32xf32>
    %48 = arith.mulf %44, %47 : vector<8x16x32xf32>
    %49 = vector.shape_cast %48 : vector<8x16x32xf32> to vector<2x4x16x32xf32>
    %50 = tpu.transpose %49, [0, 2, 1, 3] : vector<2x4x16x32xf32> -> vector<2x16x4x32xf32>
    %51 = vector.shape_cast %50 : vector<2x16x4x32xf32> to vector<32x128xf32>
    %52 = arith.truncf %51 : vector<32x128xf32> to vector<32x128xbf16>
    %c0_16 = arith.constant 0 : index
    %c0_17 = arith.constant 0 : index
    %c0_18 = arith.constant 0 : index
    %53 = vector.load %arg6[%c0_16, %c0_17, %c0_18] : memref<1x128x128xbf16, #tpu.memory_space<vmem>>, vector<1x128x128xbf16>
    %54 = vector.shape_cast %53 : vector<1x128x128xbf16> to vector<128x128xbf16>
    %cst_19 = arith.constant dense<0.000000e+00> : vector<32x128xf32>
    %55 = tpu.matmul %52, %54, %cst_19 {dimension_numbers = #tpu.dot_dimension_numbers<[1], [0], [0], [1], [0, 0, 1, 1], [], []>} : vector<32x128xbf16>, vector<128x128xbf16>, vector<32x128xf32> -> vector<32x128xf32>
    %c0_20 = arith.constant 0 : index
    %c0_21 = arith.constant 0 : index
    %c0_22 = arith.constant 0 : index
    %56 = vector.load %arg7[%c0_20, %c0_21, %c0_22] : memref<1x1x128xf32, #tpu.memory_space<vmem>>, vector<1x1x128xf32>
    %57 = vector.shape_cast %56 : vector<1x1x128xf32> to vector<1x128xf32>
    %58 = vector.broadcast %57 : vector<1x128xf32> to vector<32x128xf32>
    %59 = arith.addf %55, %58 : vector<32x128xf32>
    %60 = arith.addf %3, %59 : vector<32x128xf32>
    %cst_23 = arith.constant dense<0.000000e+00> : vector<32xf32>
    %61 = vector.multi_reduction <add>, %60, %cst_23 [1] : vector<32x128xf32> to vector<32xf32>
    %62 = vector.shape_cast %61 : vector<32xf32> to vector<32x1xf32>
    %cst_24 = arith.constant 1.280000e+02 : f32
    %63 = vector.broadcast %cst_24 : f32 to vector<32x1xf32>
    %64 = arith.divf %62, %63 : vector<32x1xf32>
    %65 = vector.broadcast %64 : vector<32x1xf32> to vector<32x128xf32>
    %66 = arith.subf %60, %65 : vector<32x128xf32>
    %67 = arith.mulf %66, %66 : vector<32x128xf32>
    %cst_25 = arith.constant dense<0.000000e+00> : vector<32xf32>
    %68 = vector.multi_reduction <add>, %67, %cst_25 [1] : vector<32x128xf32> to vector<32xf32>
    %69 = vector.shape_cast %68 : vector<32xf32> to vector<32x1xf32>
    %cst_26 = arith.constant 1.280000e+02 : f32
    %70 = vector.broadcast %cst_26 : f32 to vector<32x1xf32>
    %71 = arith.divf %69, %70 : vector<32x1xf32>
    %72 = vector.broadcast %64 : vector<32x1xf32> to vector<32x128xf32>
    %73 = arith.subf %60, %72 : vector<32x128xf32>
    %cst_27 = arith.constant 9.99999996E-13 : f32
    %74 = vector.broadcast %cst_27 : f32 to vector<32x1xf32>
    %75 = arith.addf %71, %74 : vector<32x1xf32>
    %76 = math.rsqrt %75 : vector<32x1xf32>
    %77 = vector.broadcast %76 : vector<32x1xf32> to vector<32x128xf32>
    %78 = arith.mulf %73, %77 : vector<32x128xf32>
    %c0_28 = arith.constant 0 : index
    %c0_29 = arith.constant 0 : index
    %c0_30 = arith.constant 0 : index
    %79 = vector.load %arg8[%c0_28, %c0_29, %c0_30] : memref<1x1x128xf32, #tpu.memory_space<vmem>>, vector<1x1x128xf32>
    %80 = vector.shape_cast %79 : vector<1x1x128xf32> to vector<1x128xf32>
    %81 = vector.broadcast %80 : vector<1x128xf32> to vector<32x128xf32>
    %82 = arith.mulf %78, %81 : vector<32x128xf32>
    %c0_31 = arith.constant 0 : index
    %c0_32 = arith.constant 0 : index
    %c0_33 = arith.constant 0 : index
    %83 = vector.load %arg9[%c0_31, %c0_32, %c0_33] : memref<1x1x128xf32, #tpu.memory_space<vmem>>, vector<1x1x128xf32>
    %84 = vector.shape_cast %83 : vector<1x1x128xf32> to vector<1x128xf32>
    %85 = vector.broadcast %84 : vector<1x128xf32> to vector<32x128xf32>
    %86 = arith.addf %82, %85 : vector<32x128xf32>
    %87 = arith.truncf %86 : vector<32x128xf32> to vector<32x128xbf16>
    %c0_34 = arith.constant 0 : index
    %c0_35 = arith.constant 0 : index
    %c0_36 = arith.constant 0 : index
    %88 = vector.load %arg10[%c0_34, %c0_35, %c0_36] : memref<1x128x256xbf16, #tpu.memory_space<vmem>>, vector<1x128x256xbf16>
    %89 = vector.shape_cast %88 : vector<1x128x256xbf16> to vector<128x256xbf16>
    %cst_37 = arith.constant dense<0.000000e+00> : vector<32x256xf32>
    %90 = tpu.matmul %87, %89, %cst_37 {dimension_numbers = #tpu.dot_dimension_numbers<[1], [0], [0], [1], [0, 0, 1, 1], [], []>} : vector<32x128xbf16>, vector<128x256xbf16>, vector<32x256xf32> -> vector<32x256xf32>
    %c0_38 = arith.constant 0 : index
    %c0_39 = arith.constant 0 : index
    %c0_40 = arith.constant 0 : index
    %91 = vector.load %arg11[%c0_38, %c0_39, %c0_40] : memref<1x1x256xf32, #tpu.memory_space<vmem>>, vector<1x1x256xf32>
    %92 = vector.shape_cast %91 : vector<1x1x256xf32> to vector<1x256xf32>
    %93 = vector.broadcast %92 : vector<1x256xf32> to vector<32x256xf32>
    %94 = arith.addf %90, %93 : vector<32x256xf32>
    %cst_41 = arith.constant 0.000000e+00 : f32
    %95 = vector.broadcast %cst_41 : f32 to vector<32x256xf32>
    %96 = arith.maximumf %94, %95 : vector<32x256xf32>
    %97 = arith.truncf %96 : vector<32x256xf32> to vector<32x256xbf16>
    %c0_42 = arith.constant 0 : index
    %c0_43 = arith.constant 0 : index
    %c0_44 = arith.constant 0 : index
    %98 = vector.load %arg12[%c0_42, %c0_43, %c0_44] : memref<1x256x128xbf16, #tpu.memory_space<vmem>>, vector<1x256x128xbf16>
    %99 = vector.shape_cast %98 : vector<1x256x128xbf16> to vector<256x128xbf16>
    %cst_45 = arith.constant dense<0.000000e+00> : vector<32x128xf32>
    %100 = tpu.matmul %97, %99, %cst_45 {dimension_numbers = #tpu.dot_dimension_numbers<[1], [0], [0], [1], [0, 0, 1, 1], [], []>} : vector<32x256xbf16>, vector<256x128xbf16>, vector<32x128xf32> -> vector<32x128xf32>
    %c0_46 = arith.constant 0 : index
    %c0_47 = arith.constant 0 : index
    %c0_48 = arith.constant 0 : index
    %101 = vector.load %arg13[%c0_46, %c0_47, %c0_48] : memref<1x1x128xf32, #tpu.memory_space<vmem>>, vector<1x1x128xf32>
    %102 = vector.shape_cast %101 : vector<1x1x128xf32> to vector<1x128xf32>
    %103 = vector.broadcast %102 : vector<1x128xf32> to vector<32x128xf32>
    %104 = arith.addf %100, %103 : vector<32x128xf32>
    %105 = arith.addf %86, %104 : vector<32x128xf32>
    %cst_49 = arith.constant dense<0.000000e+00> : vector<32xf32>
    %106 = vector.multi_reduction <add>, %105, %cst_49 [1] : vector<32x128xf32> to vector<32xf32>
    %107 = vector.shape_cast %106 : vector<32xf32> to vector<32x1xf32>
    %cst_50 = arith.constant 1.280000e+02 : f32
    %108 = vector.broadcast %cst_50 : f32 to vector<32x1xf32>
    %109 = arith.divf %107, %108 : vector<32x1xf32>
    %110 = vector.broadcast %109 : vector<32x1xf32> to vector<32x128xf32>
    %111 = arith.subf %105, %110 : vector<32x128xf32>
    %112 = arith.mulf %111, %111 : vector<32x128xf32>
    %cst_51 = arith.constant dense<0.000000e+00> : vector<32xf32>
    %113 = vector.multi_reduction <add>, %112, %cst_51 [1] : vector<32x128xf32> to vector<32xf32>
    %114 = vector.shape_cast %113 : vector<32xf32> to vector<32x1xf32>
    %cst_52 = arith.constant 1.280000e+02 : f32
    %115 = vector.broadcast %cst_52 : f32 to vector<32x1xf32>
    %116 = arith.divf %114, %115 : vector<32x1xf32>
    %117 = vector.broadcast %109 : vector<32x1xf32> to vector<32x128xf32>
    %118 = arith.subf %105, %117 : vector<32x128xf32>
    %cst_53 = arith.constant 9.99999996E-13 : f32
    %119 = vector.broadcast %cst_53 : f32 to vector<32x1xf32>
    %120 = arith.addf %116, %119 : vector<32x1xf32>
    %121 = math.rsqrt %120 : vector<32x1xf32>
    %122 = vector.broadcast %121 : vector<32x1xf32> to vector<32x128xf32>
    %123 = arith.mulf %118, %122 : vector<32x128xf32>
    %c0_54 = arith.constant 0 : index
    %c0_55 = arith.constant 0 : index
    %c0_56 = arith.constant 0 : index
    %124 = vector.load %arg14[%c0_54, %c0_55, %c0_56] : memref<1x1x128xf32, #tpu.memory_space<vmem>>, vector<1x1x128xf32>
    %125 = vector.shape_cast %124 : vector<1x1x128xf32> to vector<1x128xf32>
    %126 = vector.broadcast %125 : vector<1x128xf32> to vector<32x128xf32>
    %127 = arith.mulf %123, %126 : vector<32x128xf32>
    %c0_57 = arith.constant 0 : index
    %c0_58 = arith.constant 0 : index
    %c0_59 = arith.constant 0 : index
    %128 = vector.load %arg15[%c0_57, %c0_58, %c0_59] : memref<1x1x128xf32, #tpu.memory_space<vmem>>, vector<1x1x128xf32>
    %129 = vector.shape_cast %128 : vector<1x1x128xf32> to vector<1x128xf32>
    %130 = vector.broadcast %129 : vector<1x128xf32> to vector<32x128xf32>
    %131 = arith.addf %127, %130 : vector<32x128xf32>
    %c0_60 = arith.constant 0 : index
    %c0_61 = arith.constant 0 : index
    %132 = vector.load %arg17[%c0_60, %c0_61] : memref<32x128xf32, #tpu.memory_space<vmem>>, vector<32x128xf32>
    tpu.vector_store %arg17[%c0_60, %c0_61], %131 {strides = array<i32>} : memref<32x128xf32, #tpu.memory_space<vmem>>, vector<32x128xf32>,
    %c1_i32 = arith.constant 1 : i32
    %133 = arith.cmpi eq, %arg1, %c1_i32 : i32
    %134 = arith.extui %133 : i1 to i32
    %c0_i32_62 = arith.constant 0 : i32
    %135 = arith.cmpi ne, %134, %c0_i32_62 : i32
    scf.if %135 {
      %136 = vector.shape_cast %131 : vector<32x128xf32> to vector<2x16x128xf32>
      %c0_63 = arith.constant 0 : index
      %c0_64 = arith.constant 0 : index
      %c0_65 = arith.constant 0 : index
      %137 = vector.load %arg16[%c0_63, %c0_64, %c0_65] : memref<2x16x128xf32, #tpu.memory_space<vmem>>, vector<2x16x128xf32>
      tpu.vector_store %arg16[%c0_63, %c0_64, %c0_65], %136 {strides = array<i32>} : memref<2x16x128xf32, #tpu.memory_space<vmem>>, vector<2x16x128xf32>,
    } else {
    }
    return
  }
  func.func @transform_0(%arg0: i32, %arg1: i32) -> (i32, i32, i32) {
    %c0_i32 = arith.constant 0 : i32
    %c0_i32_0 = arith.constant 0 : i32
    %c0_i32_1 = arith.constant 0 : i32
    return %arg0, %c0_i32, %c0_i32_0 : i32, i32, i32
  }
  func.func @transform_1(%arg0: i32, %arg1: i32) -> (i32, i32, i32) {
    %c0_i32 = arith.constant 0 : i32
    %c0_i32_0 = arith.constant 0 : i32
    %c0_i32_1 = arith.constant 0 : i32
    return %arg0, %c0_i32, %c0_i32_0 : i32, i32, i32
  }
  func.func @transform_2(%arg0: i32, %arg1: i32) -> (i32, i32, i32) {
    %c0_i32 = arith.constant 0 : i32
    %c0_i32_0 = arith.constant 0 : i32
    %c0_i32_1 = arith.constant 0 : i32
    return %arg1, %c0_i32, %c0_i32_0 : i32, i32, i32
  }
  func.func @transform_3(%arg0: i32, %arg1: i32) -> (i32, i32, i32) {
    %c0_i32 = arith.constant 0 : i32
    %c0_i32_0 = arith.constant 0 : i32
    %c0_i32_1 = arith.constant 0 : i32
    return %arg1, %c0_i32, %c0_i32_0 : i32, i32, i32
  }
  func.func @transform_4(%arg0: i32, %arg1: i32) -> (i32, i32, i32) {
    %c0_i32 = arith.constant 0 : i32
    %c0_i32_0 = arith.constant 0 : i32
    %c0_i32_1 = arith.constant 0 : i32
    return %arg1, %c0_i32, %c0_i32_0 : i32, i32, i32
  }
  func.func @transform_5(%arg0: i32, %arg1: i32) -> (i32, i32, i32) {
    %c0_i32 = arith.constant 0 : i32
    %c0_i32_0 = arith.constant 0 : i32
    %c0_i32_1 = arith.constant 0 : i32
    return %arg1, %c0_i32, %c0_i32_0 : i32, i32, i32
  }
  func.func @transform_6(%arg0: i32, %arg1: i32) -> (i32, i32, i32) {
    %c0_i32 = arith.constant 0 : i32
    %c0_i32_0 = arith.constant 0 : i32
    %c0_i32_1 = arith.constant 0 : i32
    return %arg1, %c0_i32, %c0_i32_0 : i32, i32, i32
  }
  func.func @transform_7(%arg0: i32, %arg1: i32) -> (i32, i32, i32) {
    %c0_i32 = arith.constant 0 : i32
    %c0_i32_0 = arith.constant 0 : i32
    %c0_i32_1 = arith.constant 0 : i32
    return %arg1, %c0_i32, %c0_i32_0 : i32, i32, i32
  }
  func.func @transform_8(%arg0: i32, %arg1: i32) -> (i32, i32, i32) {
    %c0_i32 = arith.constant 0 : i32
    %c0_i32_0 = arith.constant 0 : i32
    %c0_i32_1 = arith.constant 0 : i32
    return %arg1, %c0_i32, %c0_i32_0 : i32, i32, i32
  }
  func.func @transform_9(%arg0: i32, %arg1: i32) -> (i32, i32, i32) {
    %c0_i32 = arith.constant 0 : i32
    %c0_i32_0 = arith.constant 0 : i32
    %c0_i32_1 = arith.constant 0 : i32
    return %arg1, %c0_i32, %c0_i32_0 : i32, i32, i32
  }
  func.func @transform_10(%arg0: i32, %arg1: i32) -> (i32, i32, i32) {
    %c0_i32 = arith.constant 0 : i32
    %c0_i32_0 = arith.constant 0 : i32
    %c0_i32_1 = arith.constant 0 : i32
    return %arg1, %c0_i32, %c0_i32_0 : i32, i32, i32
  }
  func.func @transform_11(%arg0: i32, %arg1: i32) -> (i32, i32, i32) {
    %c0_i32 = arith.constant 0 : i32
    %c0_i32_0 = arith.constant 0 : i32
    %c0_i32_1 = arith.constant 0 : i32
    return %arg1, %c0_i32, %c0_i32_0 : i32, i32, i32
  }
  func.func @transform_12(%arg0: i32, %arg1: i32) -> (i32, i32, i32) {
    %c0_i32 = arith.constant 0 : i32
    %c0_i32_0 = arith.constant 0 : i32
    %c0_i32_1 = arith.constant 0 : i32
    return %arg1, %c0_i32, %c0_i32_0 : i32, i32, i32
  }
  func.func @transform_13(%arg0: i32, %arg1: i32) -> (i32, i32, i32) {
    %c0_i32 = arith.constant 0 : i32
    %c0_i32_0 = arith.constant 0 : i32
    %c0_i32_1 = arith.constant 0 : i32
    return %arg1, %c0_i32, %c0_i32_0 : i32, i32, i32
  }
  func.func @transform_14(%arg0: i32, %arg1: i32) -> (i32, i32, i32) {
    %c0_i32 = arith.constant 0 : i32
    %c0_i32_0 = arith.constant 0 : i32
    %c0_i32_1 = arith.constant 0 : i32
    return %arg0, %c0_i32, %c0_i32_0 : i32, i32, i32
  }
}

</mosaic_0001>

<bundles_post_ra>
// kernel: tpu_custom_call.1
= control target key start
LH: loop header
LB: loop body
LE: loop exit
PB: predicated region body
PF: predicated region fallthrough
CT: control target
= control target key end

     0   :  { %s8014_s0 = inlined_call_operand.hbm [shape: f32[2,16,128], index: 0, kind: input, shape index: {}]   ;;  %s8015_s1 = inlined_call_operand.hbm [shape: f32[2,1,16], index: 1, kind: input, shape index: {}]   ;;  %s8016_s2 = inlined_call_operand.hbm [shape: bf16[2,128,384], index: 2, kind: input, shape index: {}]   ;;  %s8017_s3 = inlined_call_operand.hbm [shape: f32[2,1,384], index: 3, kind: input, shape index: {}]   ;;  %s8018_s4 = inlined_call_operand.hbm [shape: bf16[2,128,128], index: 4, kind: input, shape index: {}]   ;;  %s8019_s5 = inlined_call_operand.hbm [shape: f32[2,1,128], index: 5, kind: input, shape index: {}]   ;;  %s8020_s6 = inlined_call_operand.hbm [shape: f32[2,1,128], index: 6, kind: input, shape index: {}]   ;;  %s8021_s7 = inlined_call_operand.hbm [shape: f32[2,1,128], index: 7, kind: input, shape index: {}]   ;;  %s8022_s8 = inlined_call_operand.hbm [shape: bf16[2,128,256], index: 8, kind: input, shape index: {}]   ;;  %s8023_s9 = inlined_call_operand.hbm [shape: f32[2,1,256], index: 9, kind: input, shape index: {}]   ;;  %s8024_s10 = inlined_call_operand.hbm [shape: bf16[2,256,128], index: 10, kind: input, shape index: {}]   ;;  %s8025_s11 = inlined_call_operand.hbm [shape: f32[2,1,128], index: 11, kind: input, shape index: {}]   ;;  %s8026_s12 = inlined_call_operand.hbm [shape: f32[2,1,128], index: 12, kind: input, shape index: {}]   ;;  %s8027_s13 = inlined_call_operand.hbm [shape: f32[2,1,128], index: 13, kind: input, shape index: {}]   ;;  %s8028_s14 = inlined_call_operand.hbm [shape: f32[2,16,128], index: 14, kind: output, shape index: {}]  }
   0x1   :  { %8063 = sst [smem:[#allocation35_spill]] %s8014_s0 }
   0x2   :  { %8064 = sst [smem:[#allocation36_spill]] %s8015_s1 }
   0x3   :  { %8065 = sst [smem:[#allocation37_spill]] %s8016_s2 }
   0x4   :  { %8066 = sst [smem:[#allocation38_spill]] %s8017_s3 }
   0x5   :  { %8067 = sst [smem:[#allocation39_spill]] %s8027_s13 }
   0x6   :  { %8068 = sst [smem:[#allocation40_spill]] %s8028_s14 }
   0x7   :  { %19 = vsyncpa [#allocation4], 0 }
   0x8   :  { %20 = vsyncpa [#allocation7], 0 }
   0x9   :  { %21 = vsyncpa [#allocation5], 0  ;;  %s6660_s29 = smov 0   ;;  %s6662_s30 = smov 0  }
   0xa   :  { %s6664_s15 = smov 0   ;;  %s6666_s16 = smov 0  }
   0xb   :  { %s6668_s17 = smov 0   ;;  %s6670_s18 = smov 0  }
   0xc LB: > { %8069 = sst [smem:[#allocation25_spill]] %s6534_s30  ;;  %s6689_s19 = sadd.s32 4294967295, %s6550_s18   ;;  %s6550_s18 = sphi %s6670_s18, %s27_s18   ;;  %s6546_s17 = sphi %s6668_s17, %s8133_s17   ;;  %s6542_s16 = sphi %s6666_s16, %s8132_s16   ;;  %s6538_s15 = sphi %s6664_s15, %s8130_s15   ;;  %s6534_s30 = sphi %s6662_s30, %s8129_s30   ;;  %s6530_s29 = sphi %s6660_s29, %s8128_s29  }
   0xd   : > { %8070 = sst [smem:[#allocation26_spill]] %s6538_s15  ;;  %s36_s20 = sadd.s32 1, %s6546_s17 }
   0xe   : > { %8071 = sst [smem:[#allocation27_spill]] %s6542_s16  ;;  %p37_p0 = scmp.ge.s32.totalorder %s36_s20, 2 }
   0xf   : > { %8072 = sst [smem:[#allocation28_spill]] %s6550_s18  ;;  %s98_s21 = sadd.s32 1, %s6538_s15 }
  0x10   : > { %8073 = sst [smem:[#allocation29_spill]] %s6689_s19  ;;  %p105_p1 = scmp.ne.s32.totalorder %s6538_s15, %s6534_s30 }
  0x11   : > { %p106_p2 = scmp.eq.s32.totalorder %s6550_s18, 0  ;;  %s8135_s20 = smov (%p37_p0, %s36_s20), 0 }
  0x12   : > { %8074 = sst [smem:[#allocation30_spill]] %s8135_s20  ;;  %p111_p4 = scmp.ne.s32.totalorder %s6534_s30, %s6530_s29 }
  0x13   : > { %p6698_p3 = por %p106_p2, %p105_p1  ;;  %s95_s23 = ssub.s32 %s6546_s17, %s8135_s20 }
  0x14   : > { %p8033_p5 = scmp.eq.s32.totalorder %s6689_s19, 0  ;;  %p96_p6 = scmp.eq.s32.totalorder %s95_s23, 0 }
  0x15   : > { %s8075_s22 = scalar_select %p6698_p3, 1, 0 }
  0x16   : > { %p5313_p7 = scmp.ge.s32.totalorder %s6550_s18, 1  ;;  %p6709_p8 = por %p8033_p5, %p111_p4 }
  0x17   : > { %p434_p9 = scmp.lt.s32.totalorder %s6550_s18, 3  ;;  %s6552_s27 = smov [#allocation3]  }
  0x18   : > { %s8076_s24 = scalar_select %p6709_p8, 1, 0 }
  0x19   : > { %s6715_s25 = scalar_select %p96_p6, %s6538_s15, %s98_s21  }
  0x1a   : > { %8077 = sst [smem:[#allocation31_spill]] %s8076_s24  ;;  %p6717_p10 = pnand %p5313_p7, %p434_p9 }
  0x1b   : > { %8078 = sst [smem:[#allocation32_spill]] %s6715_s25  ;;  %s450_s28 = sshll.u32 %s6552_s27, 4  ;;  %s451_s28 = int_to_ptr.vmem [resolvable:$true] %s450_s28 }
  0x1c   : > { %s8079_s26 = scalar_select %p6717_p10, 1, 0 }
  0x1d   : > { %p5732_p11 = pneg %p6717_p10  ;;  %s8083_s0 = sld [smem:[#allocation35_spill]] }
  0x1e   : > { %8080 = sst [smem:[#allocation33_spill]] %s8079_s26 }
  0x1f   : > { %p6725_p12 = pnand %p5732_p11, %p8033_p5 }
  0x21   : > { %s8081_s29 = scalar_select %p6725_p12, 1, 0 }
  0x22   : > { %p8043_p1 = pneg %p6725_p12 }
  0x23   : > { %8082 = sst [smem:[#allocation34_spill]] %s8081_s29  ;;  %s6046_s25 = scalar_lea.hbm %s8083_s0, 512 }
  0x24   : > { %p6047_p0 = scmp.ne.s32.totalorder %s8083_s0, %s6046_s25  ;;  %p6053_p6 = scmp.lt.u32.totalorder %s6046_s25, %s8083_s0 }
  0x26   : > { %p6049_p2 = pnand %p8043_p1, %p6047_p0 }
  0x28   : > { %p6050_p4 = pneg %p6049_p2 }
  0x2a   : > { %p6055_p7 = pnand %p6053_p6, %p6050_p4 }
  0x2c   : > { %6058 = shalt.err (!%p6055_p7)
}
  0x2d   : > { %s6059_s21 = scalar_lea.vmem %s451_s28, 512  ;;  %p6067_p13 = scmp.lt.s32.totalorder %s451_s28, %s451_s28 }
  0x2e   : > { %p6060_p9 = scmp.ne.s32.totalorder %s451_s28, %s6059_s21  ;;  %p6068_p8 = scmp.lt.s32.totalorder %s6059_s21, %s6059_s21 }
  0x30   : > { %p6062_p11 = pnand %p6060_p9, %p8043_p1  ;;  %p6069_p10 = por %p6068_p8, %p6067_p13 }
  0x32   : > { %p6063_p5 = pneg %p6062_p11 }
  0x34   : > { %p6070_p3 = pnand %p6069_p10, %p6063_p5 }
  0x36   : > { %6073 = shalt.err (!%p6070_p3)
}
  0x37   : > { %s8041_s14 = smov 128   ;;  %s8042_s16 = smov 8  }
  0x38   : > { %5735 = dma.hbm_to_vmem [thread:$0]  (!%p6725_p12), %s8083_s0, 512, %s451_s28, [#allocation4], %s8041_s14, %s8041_s14, %s8042_s16  }
  0x39   : > { %s6757_s25 = sand.u32 1, %s6538_s15   ;;  %p8084_p5 = scmp.ne.s32.totalorder %s8075_s22, 0 }
  0x3a   : > { %p8085_p3 = scmp.lt.s32.totalorder %s6550_s18, 2  ;;  %s5690_s23 = smul.u32 192, %s6757_s25 }
  0x3b   : > { %s5691_s27 = smul.u32 3072, %s6546_s17  ;;  %s8087_s2 = sld [smem:[#allocation37_spill]] }
  0x3c   : > { %p6763_p8 = pnand %p8085_p3, %p8084_p5  ;;  %s484_s22 = scalar_lea.vmem [#allocation8], %s5690_s23 }
  0x3d   : > { %s491_s28 = sshll.u32 %s484_s22, 4  ;;  %s5692_s20 = smul.u32 3, %s6757_s25  ;;  %s6774_s28 = int_to_ptr.vmem [resolvable:$true] %s491_s28 }
  0x3e   : > { %s8086_s21 = scalar_select %p6763_p8, 1, 0 }
  0x3f   : > { %s8088_s24 = sand.u32 1, %s6550_s18   ;;  %p6785_p13 = pneg %p6763_p8 }
  0x40   : > { %s6779_s14 = scalar_lea.sflag [#allocation4], %s8088_s24 }
  0x41   : > { %s6772_s26 = scalar_lea.hbm %s8087_s2, %s5691_s27  ;;  %s6079_s23 = scalar_lea.hbm %s8087_s2, 6144 }
  0x42   : > { %s6074_s16 = scalar_lea.hbm %s6772_s26, 3072  ;;  %p6080_p4 = scmp.lt.u32.totalorder %s6772_s26, %s8087_s2 }
  0x43   : > { %p6075_p10 = scmp.ne.s32.totalorder %s6772_s26, %s6074_s16  ;;  %p6081_p6 = scmp.lt.u32.totalorder %s6079_s23, %s6074_s16 }
  0x44   : > { %s8089_s0 = scalar_select %p6785_p13, 1, 0 }
  0x45   : > { %p6077_p0 = pnand %p6785_p13, %p6075_p10  ;;  %p6082_p7 = por %p6081_p6, %p6080_p4 }
  0x46   : > { %p6083_p9 = scmp.lt.u32.totalorder %s6074_s16, %s6772_s26 }
  0x47   : > { %p6078_p2 = pneg %p6077_p0 }
  0x48   : > { %p6084_p11 = por %p6083_p9, %p6082_p7 }
  0x4a   : > { %p6085_p5 = pnand %p6084_p11, %p6078_p2 }
  0x4c   : > { %6088 = shalt.err (!%p6085_p5)
}
  0x4d   : > { %s6089_s24 = scalar_lea.vmem %s6774_s28, 3072  ;;  %s6555_s30 = smov [#allocation8]  }
  0x4e   : > { %p6090_p3 = scmp.ne.s32.totalorder %s6774_s28, %s6089_s24  ;;  %s6094_s19 = sshll.u32 %s6555_s30, 4  ;;  %s6095_s19 = int_to_ptr.vmem [resolvable:$false] %s6094_s19 }
  0x4f   : > { %s6096_s27 = scalar_lea.vmem %s6095_s19, 6144  ;;  %p6097_p1 = scmp.lt.s32.totalorder %s6774_s28, %s6095_s19 }
  0x50   : > { %p6092_p10 = pnand %p6090_p3, %p6785_p13  ;;  %p6098_p12 = scmp.lt.s32.totalorder %s6096_s27, %s6089_s24 }
  0x52   : > { %p6093_p0 = pneg %p6092_p10  ;;  %p6099_p4 = por %p6098_p12, %p6097_p1 }
  0x54   : > { %p6100_p6 = pnand %p6099_p4, %p6093_p0 }
  0x56   : > { %6103 = shalt.err (!%p6100_p6)
}
  0x57   : > { %s6556_s16 = smov 192   ;;  %s6557_s23 = smov 12  }
  0x58   : > { %5742 = dma.hbm_to_vmem [thread:$0]  (!%p6763_p8), %s6772_s26, 3072, %s6774_s28, %s6779_s14, %s6556_s16, %s6556_s16, %s6557_s23  }
  0x59   : > { %s5693_s22 = smul.u32 48, %s6546_s17  ;;  %s505_s30 = scalar_lea.vmem [#allocation9], %s5692_s20 }
  0x5a   : > { %s513_s19 = sshll.u32 %s505_s30, 4  ;;  %s5319_s24 = sshll.u32 %s6757_s25, 6  ;;  %s514_s19 = int_to_ptr.vmem [resolvable:$true] %s513_s19 }
  0x5b   : > { %s8090_s3 = sld [smem:[#allocation38_spill]] }
  0x61   : > { %s511_s15 = scalar_lea.hbm %s8090_s3, %s5693_s22  ;;  %s6109_s29 = scalar_lea.hbm %s8090_s3, 96 }
  0x62   : > { %s6104_s18 = scalar_lea.hbm %s511_s15, 48  ;;  %p6110_p7 = scmp.lt.u32.totalorder %s511_s15, %s8090_s3 }
  0x63   : > { %p6105_p12 = scmp.ne.s32.totalorder %s511_s15, %s6104_s18  ;;  %p6111_p9 = scmp.lt.u32.totalorder %s6109_s29, %s6104_s18 }
  0x64   : > { %p6113_p5 = scmp.lt.u32.totalorder %s6104_s18, %s511_s15 }
  0x65   : > { %p6107_p1 = pnand %p6105_p12, %p6785_p13  ;;  %p6112_p11 = por %p6111_p9, %p6110_p7 }
  0x67   : > { %p6108_p2 = pneg %p6107_p1  ;;  %p6114_p3 = por %p6113_p5, %p6112_p11 }
  0x69   : > { %p6115_p10 = pnand %p6114_p3, %p6108_p2 }
  0x6b   : > { %6118 = shalt.err (!%p6115_p10)
}
  0x6c   : > { %s6119_s2 = scalar_lea.vmem %s514_s19, 48  ;;  %s6558_s20 = smov [#allocation9]  }
  0x6d   : > { %p6120_p0 = scmp.ne.s32.totalorder %s514_s19, %s6119_s2  ;;  %s6124_s16 = sshll.u32 %s6558_s20, 4  ;;  %s6125_s16 = int_to_ptr.vmem [resolvable:$false] %s6124_s16 }
  0x6e   : > { %s6126_s1 = scalar_lea.vmem %s6125_s16, 96  ;;  %p6127_p12 = scmp.lt.s32.totalorder %s514_s19, %s6125_s16 }
  0x6f   : > { %p6122_p4 = pnand %p6120_p0, %p6785_p13  ;;  %p6128_p1 = scmp.lt.s32.totalorder %s6126_s1, %s6119_s2 }
  0x71   : > { %p6123_p6 = pneg %p6122_p4  ;;  %p6129_p8 = por %p6128_p1, %p6127_p12 }
  0x73   : > { %p6130_p7 = pnand %p6129_p8, %p6123_p6 }
  0x75   : > { %6133 = shalt.err (!%p6130_p7)
}
  0x76   : > { %p8091_p9 = scmp.ne.s32.totalorder %s8086_s21, 0  ;;  %s5470_s13 = sshll.u32 %s6546_s17, 10 }
  0x77   : > { %s6833_s23 = scalar_lea.hbm %s8018_s4, %s5470_s13  ;;  %s524_s22 = scalar_lea.vmem [#allocation10], %s5319_s24 }
  0x78   : > { %5745 = dma.hbm_to_vmem [thread:$0]  (!%p8091_p9), %s511_s15, 48, %s514_s19, %s6779_s14  }
  0x79   : > { %s531_s30 = sshll.u32 %s524_s22, 4  ;;  %s6134_s27 = scalar_lea.hbm %s6833_s23, 1024  ;;  %s6837_s30 = int_to_ptr.vmem [resolvable:$true] %s531_s30 }
  0x7a   : > { %p6135_p8 = scmp.ne.s32.totalorder %s6833_s23, %s6134_s27  ;;  %s6139_s26 = scalar_lea.hbm %s8018_s4, 2048 }
  0x7b   : > { %p6140_p5 = scmp.lt.u32.totalorder %s6833_s23, %s8018_s4  ;;  %p6141_p3 = scmp.lt.u32.totalorder %s6139_s26, %s6134_s27 }
  0x7c   : > { %p6137_p2 = pnand %p6135_p8, %p6785_p13  ;;  %p6143_p0 = scmp.lt.u32.totalorder %s6134_s27, %s6833_s23 }
  0x7d   : > { %p6142_p10 = por %p6141_p3, %p6140_p5 }
  0x7e   : > { %p6138_p11 = pneg %p6137_p2 }
  0x7f   : > { %p6144_p4 = por %p6143_p0, %p6142_p10 }
  0x81   : > { %p6145_p6 = pnand %p6144_p4, %p6138_p11 }
  0x83   : > { %6148 = shalt.err (!%p6145_p6)
}
  0x84   : > { %s6149_s24 = scalar_lea.vmem %s6837_s30, 1024  ;;  %s6559_s20 = smov [#allocation10]  }
  0x85   : > { %p6150_p12 = scmp.ne.s32.totalorder %s6837_s30, %s6149_s24  ;;  %s6154_s16 = sshll.u32 %s6559_s20, 4  ;;  %s6155_s16 = int_to_ptr.vmem [resolvable:$false] %s6154_s16 }
  0x86   : > { %s6156_s1 = scalar_lea.vmem %s6155_s16, 2048  ;;  %p6157_p8 = scmp.lt.s32.totalorder %s6837_s30, %s6155_s16 }
  0x87   : > { %p6152_p1 = pnand %p6150_p12, %p6785_p13  ;;  %p6158_p2 = scmp.lt.s32.totalorder %s6156_s1, %s6149_s24 }
  0x89   : > { %p6153_p7 = pneg %p6152_p1  ;;  %p6159_p5 = por %p6158_p2, %p6157_p8 }
  0x8b   : > { %p6160_p3 = pnand %p6159_p5, %p6153_p7 }
  0x8d   : > { %6163 = shalt.err (!%p6160_p3)
}
  0x8e   : > { %s8055_s13 = smov 64   ;;  %s8056_s18 = smov 4  }
  0x8f   : > { %5748 = dma.hbm_to_vmem [thread:$0]  (!%p8091_p9), %s6833_s23, 1024, %s6837_s30, %s6779_s14, %s8055_s13, %s8055_s13, %s8056_s18  }
  0x90   : > { %s6865_s29 = sshll.u32 %s6546_s17, 4  ;;  %s544_s22 = scalar_lea.vmem [#allocation11], %s6757_s25 }
  0x91   : > { %s551_s27 = sshll.u32 %s544_s22, 4  ;;  %s549_s26 = scalar_lea.hbm %s8019_s5, %s6865_s29  ;;  %s552_s27 = int_to_ptr.vmem [resolvable:$true] %s551_s27 }
  0x92   : > { %s6164_s28 = scalar_lea.hbm %s549_s26, 16  ;;  %s6169_s20 = scalar_lea.hbm %s8019_s5, 32 }
  0x93   : > { %p6165_p11 = scmp.ne.s32.totalorder %s549_s26, %s6164_s28  ;;  %p6170_p4 = scmp.lt.u32.totalorder %s549_s26, %s8019_s5 }
  0x94   : > { %p6171_p6 = scmp.lt.u32.totalorder %s6169_s20, %s6164_s28  ;;  %p6173_p1 = scmp.lt.u32.totalorder %s6164_s28, %s549_s26 }
  0x95   : > { %p6167_p10 = pnand %p6165_p11, %p6785_p13 }
  0x96   : > { %p6172_p12 = por %p6171_p6, %p6170_p4 }
  0x97   : > { %p6168_p0 = pneg %p6167_p10 }
  0x98   : > { %p6174_p7 = por %p6173_p1, %p6172_p12 }
  0x9a   : > { %p6175_p8 = pnand %p6174_p7, %p6168_p0 }
  0x9c   : > { %6178 = shalt.err (!%p6175_p8)
}
  0x9d   : > { %s6179_s16 = scalar_lea.vmem %s552_s27, 16  ;;  %s6562_s1 = smov [#allocation11]  }
  0x9e   : > { %p6180_p2 = scmp.ne.s32.totalorder %s552_s27, %s6179_s16  ;;  %s6184_s22 = sshll.u32 %s6562_s1, 4  ;;  %s6185_s22 = int_to_ptr.vmem [resolvable:$false] %s6184_s22 }
  0x9f   : > { %s6186_s15 = scalar_lea.vmem %s6185_s22, 32  ;;  %p6187_p11 = scmp.lt.s32.totalorder %s552_s27, %s6185_s22 }
  0xa0   : > { %p6182_p5 = pnand %p6180_p2, %p6785_p13  ;;  %p6188_p10 = scmp.lt.s32.totalorder %s6186_s15, %s6179_s16 }
  0xa2   : > { %p6183_p3 = pneg %p6182_p5  ;;  %p6189_p9 = por %p6188_p10, %p6187_p11 }
  0xa4   : > { %p6190_p4 = pnand %p6189_p9, %p6183_p3 }
  0xa6   : > { %6193 = shalt.err (!%p6190_p4)
}
  0xa7   : > { %p8092_p6 = scmp.ne.s32.totalorder %s8086_s21, 0  ;;  %s6889_s2 = scalar_lea.hbm %s8020_s6, %s6865_s29 }
  0xa8   : > { %s561_s24 = scalar_lea.vmem [#allocation12], %s6757_s25  ;;  %s6896_s16 = scalar_lea.hbm %s8021_s7, %s6865_s29 }
  0xa9   : > { %5751 = dma.hbm_to_vmem [thread:$0]  (!%p8092_p6), %s549_s26, 16, %s552_s27, %s6779_s14  }
  0xaa   : > { %s568_s20 = sshll.u32 %s561_s24, 4  ;;  %s6194_s1 = scalar_lea.hbm %s6889_s2, 16  ;;  %s569_s20 = int_to_ptr.vmem [resolvable:$true] %s568_s20 }
  0xab   : > { %p6195_p9 = scmp.ne.s32.totalorder %s6889_s2, %s6194_s1  ;;  %s6199_s22 = scalar_lea.hbm %s8020_s6, 32 }
  0xac   : > { %p6200_p1 = scmp.lt.u32.totalorder %s6889_s2, %s8020_s6  ;;  %p6201_p7 = scmp.lt.u32.totalorder %s6199_s22, %s6194_s1 }
  0xad   : > { %p6197_p0 = pnand %p6195_p9, %p6785_p13  ;;  %p6203_p2 = scmp.lt.u32.totalorder %s6194_s1, %s6889_s2 }
  0xae   : > { %p6202_p8 = por %p6201_p7, %p6200_p1 }
  0xaf   : > { %p6198_p12 = pneg %p6197_p0 }
  0xb0   : > { %p6204_p5 = por %p6203_p2, %p6202_p8 }
  0xb2   : > { %p6205_p3 = pnand %p6204_p5, %p6198_p12 }
  0xb4   : > { %6208 = shalt.err (!%p6205_p3)
}
  0xb5   : > { %s6209_s28 = scalar_lea.vmem %s569_s20, 16  ;;  %s6563_s24 = smov [#allocation12]  }
  0xb6   : > { %p6210_p11 = scmp.ne.s32.totalorder %s569_s20, %s6209_s28  ;;  %s6214_s23 = sshll.u32 %s6563_s24, 4  ;;  %s6215_s23 = int_to_ptr.vmem [resolvable:$false] %s6214_s23 }
  0xb7   : > { %s6216_s30 = scalar_lea.vmem %s6215_s23, 32  ;;  %p6217_p9 = scmp.lt.s32.totalorder %s569_s20, %s6215_s23 }
  0xb8   : > { %p6212_p10 = pnand %p6210_p11, %p6785_p13  ;;  %p6218_p0 = scmp.lt.s32.totalorder %s6216_s30, %s6209_s28 }
  0xba   : > { %p6213_p4 = pneg %p6212_p10  ;;  %p6219_p6 = por %p6218_p0, %p6217_p9 }
  0xbc   : > { %p6220_p1 = pnand %p6219_p6, %p6213_p4 }
  0xbe   : > { %6223 = shalt.err (!%p6220_p1)
}
  0xbf   : > { %p8093_p7 = scmp.ne.s32.totalorder %s8086_s21, 0  ;;  %s578_s1 = scalar_lea.vmem [#allocation13], %s6757_s25 }
  0xc0   : > { %s585_s27 = sshll.u32 %s578_s1, 4  ;;  %s8057_s26 = sshll.u32 %s6757_s25, 7  ;;  %s586_s27 = int_to_ptr.vmem [resolvable:$true] %s585_s27 }
  0xc1   : > { %5754 = dma.hbm_to_vmem [thread:$0]  (!%p8093_p7), %s6889_s2, 16, %s569_s20, %s6779_s14  }
  0xc2   : > { %s6224_s22 = scalar_lea.hbm %s6896_s16, 16  ;;  %s6229_s28 = scalar_lea.hbm %s8021_s7, 32 }
  0xc3   : > { %p6225_p12 = scmp.ne.s32.totalorder %s6896_s16, %s6224_s22  ;;  %p6230_p2 = scmp.lt.u32.totalorder %s6896_s16, %s8021_s7 }
  0xc4   : > { %p6231_p5 = scmp.lt.u32.totalorder %s6229_s28, %s6224_s22  ;;  %p6233_p11 = scmp.lt.u32.totalorder %s6224_s22, %s6896_s16 }
  0xc5   : > { %p6227_p6 = pnand %p6225_p12, %p6785_p13 }
  0xc6   : > { %p6232_p3 = por %p6231_p5, %p6230_p2 }
  0xc7   : > { %p6228_p8 = pneg %p6227_p6 }
  0xc8   : > { %p6234_p10 = por %p6233_p11, %p6232_p3 }
  0xca   : > { %p6235_p4 = pnand %p6234_p10, %p6228_p8 }
  0xcc   : > { %6238 = shalt.err (!%p6235_p4)
}
  0xcd   : > { %s6239_s2 = scalar_lea.vmem %s586_s27, 16  ;;  %s6564_s20 = smov [#allocation13]  }
  0xce   : > { %p6240_p9 = scmp.ne.s32.totalorder %s586_s27, %s6239_s2  ;;  %s6244_s30 = sshll.u32 %s6564_s20, 4  ;;  %s6245_s30 = int_to_ptr.vmem [resolvable:$false] %s6244_s30 }
  0xcf   : > { %s6246_s1 = scalar_lea.vmem %s6245_s30, 32  ;;  %p6247_p12 = scmp.lt.s32.totalorder %s586_s27, %s6245_s30 }
  0xd0   : > { %p6242_p0 = pnand %p6240_p9, %p6785_p13  ;;  %p6248_p6 = scmp.lt.s32.totalorder %s6246_s1, %s6239_s2 }
  0xd2   : > { %p6243_p1 = pneg %p6242_p0  ;;  %p6249_p7 = por %p6248_p6, %p6247_p12 }
  0xd4   : > { %p6250_p2 = pnand %p6249_p7, %p6243_p1 }
  0xd6   : > { %6253 = shalt.err (!%p6250_p2)
}
  0xd7   : > { %p8094_p5 = scmp.ne.s32.totalorder %s8086_s21, 0  ;;  %s5471_s22 = sshll.u32 %s6546_s17, 11 }
  0xd8   : > { %s596_s15 = scalar_lea.vmem [#allocation14], %s8057_s26  ;;  %s6944_s23 = scalar_lea.hbm %s8022_s8, %s5471_s22 }
  0xd9   : > { %5757 = dma.hbm_to_vmem [thread:$0]  (!%p8094_p5), %s6896_s16, 16, %s586_s27, %s6779_s14  }
  0xda   : > { %s603_s19 = sshll.u32 %s596_s15, 4  ;;  %s6254_s2 = scalar_lea.hbm %s6944_s23, 2048  ;;  %s6946_s19 = int_to_ptr.vmem [resolvable:$true] %s603_s19 }
  0xdb   : > { %p6255_p7 = scmp.ne.s32.totalorder %s6944_s23, %s6254_s2  ;;  %s6259_s20 = scalar_lea.hbm %s8022_s8, 4096 }
  0xdc   : > { %p6260_p11 = scmp.lt.u32.totalorder %s6944_s23, %s8022_s8  ;;  %p6261_p10 = scmp.lt.u32.totalorder %s6259_s20, %s6254_s2 }
  0xdd   : > { %p6257_p8 = pnand %p6255_p7, %p6785_p13  ;;  %p6263_p9 = scmp.lt.u32.totalorder %s6254_s2, %s6944_s23 }
  0xde   : > { %p6262_p4 = por %p6261_p10, %p6260_p11 }
  0xdf   : > { %p6258_p3 = pneg %p6257_p8 }
  0xe0   : > { %p6264_p0 = por %p6263_p9, %p6262_p4 }
  0xe2   : > { %p6265_p1 = pnand %p6264_p0, %p6258_p3 }
  0xe4   : > { %6268 = shalt.err (!%p6265_p1)
}
  0xe5   : > { %s6269_s15 = scalar_lea.vmem %s6946_s19, 2048  ;;  %s6565_s28 = smov [#allocation14]  }
  0xe6   : > { %p6270_p12 = scmp.ne.s32.totalorder %s6946_s19, %s6269_s15  ;;  %s6274_s24 = sshll.u32 %s6565_s28, 4  ;;  %s6275_s24 = int_to_ptr.vmem [resolvable:$false] %s6274_s24 }
  0xe7   : > { %s6276_s16 = scalar_lea.vmem %s6275_s24, 4096  ;;  %p6277_p7 = scmp.lt.s32.totalorder %s6946_s19, %s6275_s24 }
  0xe8   : > { %p6272_p6 = pnand %p6270_p12, %p6785_p13  ;;  %p6278_p8 = scmp.lt.s32.totalorder %s6276_s16, %s6269_s15 }
  0xea   : > { %p6273_p2 = pneg %p6272_p6  ;;  %p6279_p11 = por %p6278_p8, %p6277_p7 }
  0xec   : > { %p6280_p10 = pnand %p6279_p11, %p6273_p2 }
  0xee   : > { %6283 = shalt.err (!%p6280_p10)
}
  0xef   : > { %s8095_s2 = smov 8   ;;  %s8096_s27 = smov 128  }
  0xf0   : > { %5760 = dma.hbm_to_vmem [thread:$0]  (!%p8094_p5), %s6944_s23, 2048, %s6946_s19, %s6779_s14, %s8096_s27, %s8096_s27, %s8095_s2  }
  0xf1   : > { %s5328_s20 = sshll.u32 %s6757_s25, 1  ;;  %s5472_s30 = sshll.u32 %s6546_s17, 5 }
  0xf2   : > { %s6978_s28 = scalar_lea.hbm %s8023_s9, %s5472_s30  ;;  %s617_s24 = scalar_lea.vmem [#allocation15], %s5328_s20 }
  0xf3   : > { %s625_s16 = sshll.u32 %s617_s24, 4  ;;  %s6985_s26 = scalar_lea.hbm %s8024_s10, %s5471_s22  ;;  %s626_s16 = int_to_ptr.vmem [resolvable:$true] %s625_s16 }
  0xf4   : > { %s6284_s19 = scalar_lea.hbm %s6978_s28, 32  ;;  %s6289_s27 = scalar_lea.hbm %s8023_s9, 64 }
  0xf5   : > { %p6285_p3 = scmp.ne.s32.totalorder %s6978_s28, %s6284_s19  ;;  %p6290_p0 = scmp.lt.u32.totalorder %s6978_s28, %s8023_s9 }
  0xf6   : > { %p6291_p1 = scmp.lt.u32.totalorder %s6289_s27, %s6284_s19  ;;  %p6293_p6 = scmp.lt.u32.totalorder %s6284_s19, %s6978_s28 }
  0xf7   : > { %p6287_p4 = pnand %p6285_p3, %p6785_p13 }
  0xf8   : > { %p6292_p12 = por %p6291_p1, %p6290_p0 }
  0xf9   : > { %p6288_p9 = pneg %p6287_p4 }
  0xfa   : > { %p6294_p2 = por %p6293_p6, %p6292_p12 }
  0xfc   : > { %p6295_p7 = pnand %p6294_p2, %p6288_p9 }
  0xfe   : > { %6298 = shalt.err (!%p6295_p7)
}
  0xff   : > { %s6299_s13 = scalar_lea.vmem %s626_s16, 32  ;;  %s6566_s18 = smov [#allocation15]  }
 0x100   : > { %p6300_p8 = scmp.ne.s32.totalorder %s626_s16, %s6299_s13  ;;  %s6304_s22 = sshll.u32 %s6566_s18, 4  ;;  %s6305_s22 = int_to_ptr.vmem [resolvable:$false] %s6304_s22 }
 0x101   : > { %s6306_s20 = scalar_lea.vmem %s6305_s22, 64  ;;  %p6307_p3 = scmp.lt.s32.totalorder %s626_s16, %s6305_s22 }
 0x102   : > { %p6302_p11 = pnand %p6300_p8, %p6785_p13  ;;  %p6308_p4 = scmp.lt.s32.totalorder %s6306_s20, %s6299_s13 }
 0x104   : > { %p6303_p10 = pneg %p6302_p11  ;;  %p6309_p5 = por %p6308_p4, %p6307_p3 }
 0x106   : > { %p6310_p0 = pnand %p6309_p5, %p6303_p10 }
 0x108   : > { %6313 = shalt.err (!%p6310_p0)
}
 0x109   : > { %p8097_p1 = scmp.ne.s32.totalorder %s8086_s21, 0  ;;  %s8098_s15 = sshll.u32 %s6757_s25, 7 }
 0x10a   : > { %s636_s24 = scalar_lea.vmem [#allocation16], %s8098_s15  ;;  %s7013_s27 = scalar_lea.hbm %s8025_s11, %s6865_s29 }
 0x10b   : > { %5763 = dma.hbm_to_vmem [thread:$0]  (!%p8097_p1), %s6978_s28, 32, %s626_s16, %s6779_s14  }
 0x10c   : > { %s643_s19 = sshll.u32 %s636_s24, 4  ;;  %s6314_s30 = scalar_lea.hbm %s6985_s26, 2048  ;;  %s7007_s19 = int_to_ptr.vmem [resolvable:$true] %s643_s19 }
 0x10d   : > { %p6315_p5 = scmp.ne.s32.totalorder %s6985_s26, %s6314_s30  ;;  %s6319_s18 = scalar_lea.hbm %s8024_s10, 4096 }
 0x10e   : > { %p6320_p6 = scmp.lt.u32.totalorder %s6985_s26, %s8024_s10  ;;  %p6321_p2 = scmp.lt.u32.totalorder %s6319_s18, %s6314_s30 }
 0x10f   : > { %p6317_p9 = pnand %p6315_p5, %p6785_p13  ;;  %p6323_p8 = scmp.lt.u32.totalorder %s6314_s30, %s6985_s26 }
 0x110   : > { %p6322_p7 = por %p6321_p2, %p6320_p6 }
 0x111   : > { %p6318_p12 = pneg %p6317_p9 }
 0x112   : > { %p6324_p11 = por %p6323_p8, %p6322_p7 }
 0x114   : > { %p6325_p10 = pnand %p6324_p11, %p6318_p12 }
 0x116   : > { %6328 = shalt.err (!%p6325_p10)
}
 0x117   : > { %s6329_s22 = scalar_lea.vmem %s7007_s19, 2048  ;;  %s6567_s20 = smov [#allocation16]  }
 0x118   : > { %p6330_p3 = scmp.ne.s32.totalorder %s7007_s19, %s6329_s22  ;;  %s6334_s15 = sshll.u32 %s6567_s20, 4  ;;  %s6335_s15 = int_to_ptr.vmem [resolvable:$false] %s6334_s15 }
 0x119   : > { %s6336_s24 = scalar_lea.vmem %s6335_s15, 4096  ;;  %p6337_p5 = scmp.lt.s32.totalorder %s7007_s19, %s6335_s15 }
 0x11a   : > { %p6332_p4 = pnand %p6330_p3, %p6785_p13  ;;  %p6338_p9 = scmp.lt.s32.totalorder %s6336_s24, %s6329_s22 }
 0x11c   : > { %p6333_p0 = pneg %p6332_p4  ;;  %p6339_p6 = por %p6338_p9, %p6337_p5 }
 0x11e   : > { %p6340_p2 = pnand %p6339_p6, %p6333_p0 }
 0x120   : > { %6343 = shalt.err (!%p6340_p2)
}
 0x121   : > { %s8099_s23 = smov 4   ;;  %s8100_s2 = smov 64  }
 0x122   : > { %5766 = dma.hbm_to_vmem [thread:$0]  (!%p8097_p1), %s6985_s26, 2048, %s7007_s19, %s6779_s14, %s8100_s2, %s8100_s2, %s8099_s23  }
 0x123   : > { %s656_s30 = scalar_lea.vmem [#allocation17], %s6757_s25  ;;  %s7045_s28 = scalar_lea.hbm %s8026_s12, %s6865_s29 }
 0x124   : > { %s663_s1 = sshll.u32 %s656_s30, 4  ;;  %s6344_s16 = scalar_lea.hbm %s7013_s27, 16  ;;  %s664_s1 = int_to_ptr.vmem [resolvable:$true] %s663_s1 }
 0x125   : > { %p6345_p12 = scmp.ne.s32.totalorder %s7013_s27, %s6344_s16  ;;  %s6349_s15 = scalar_lea.hbm %s8025_s11, 32 }
 0x126   : > { %p6350_p11 = scmp.lt.u32.totalorder %s7013_s27, %s8025_s11  ;;  %p6351_p10 = scmp.lt.u32.totalorder %s6349_s15, %s6344_s16 }
 0x127   : > { %p6347_p7 = pnand %p6345_p12, %p6785_p13  ;;  %p6353_p4 = scmp.lt.u32.totalorder %s6344_s16, %s7013_s27 }
 0x128   : > { %p6352_p3 = por %p6351_p10, %p6350_p11 }
 0x129   : > { %p6348_p8 = pneg %p6347_p7 }
 0x12a   : > { %p6354_p0 = por %p6353_p4, %p6352_p3 }
 0x12c   : > { %p6355_p5 = pnand %p6354_p0, %p6348_p8 }
 0x12e   : > { %6358 = shalt.err (!%p6355_p5)
}
 0x12f   : > { %s6359_s26 = scalar_lea.vmem %s664_s1, 16  ;;  %s6568_s19 = smov [#allocation17]  }
 0x130   : > { %p6360_p9 = scmp.ne.s32.totalorder %s664_s1, %s6359_s26  ;;  %s6364_s23 = sshll.u32 %s6568_s19, 4  ;;  %s6365_s23 = int_to_ptr.vmem [resolvable:$false] %s6364_s23 }
 0x131   : > { %s6366_s2 = scalar_lea.vmem %s6365_s23, 32  ;;  %p6367_p12 = scmp.lt.s32.totalorder %s664_s1, %s6365_s23 }
 0x132   : > { %p6362_p6 = pnand %p6360_p9, %p6785_p13  ;;  %p6368_p7 = scmp.lt.s32.totalorder %s6366_s2, %s6359_s26 }
 0x134   : > { %p6363_p2 = pneg %p6362_p6  ;;  %p6369_p1 = por %p6368_p7, %p6367_p12 }
 0x136   : > { %p6370_p10 = pnand %p6369_p1, %p6363_p2 }
 0x138   : > { %6373 = shalt.err (!%p6370_p10)
}
 0x139   : > { %p8101_p11 = scmp.ne.s32.totalorder %s8086_s21, 0  ;;  %s673_s3 = scalar_lea.vmem [#allocation18], %s6757_s25 }
 0x13a   : > { %s680_s30 = sshll.u32 %s673_s3, 4  ;;  %s6569_s13 = smov [#allocation6]   ;;  %s7066_s30 = int_to_ptr.vmem [resolvable:$true] %s680_s30 }
 0x13b   : > { %5769 = dma.hbm_to_vmem [thread:$0]  (!%p8101_p11), %s7013_s27, 16, %s664_s1, %s6779_s14  }
 0x13c   : > { %s466_s18 = sshll.u32 %s6569_s13, 4  ;;  %s6374_s16 = scalar_lea.hbm %s7045_s28, 16  ;;  %s467_s18 = int_to_ptr.vmem [resolvable:$true] %s466_s18 }
 0x13d   : > { %p6375_p1 = scmp.ne.s32.totalorder %s7045_s28, %s6374_s16  ;;  %s6379_s15 = scalar_lea.hbm %s8026_s12, 32 }
 0x13e   : > { %p6380_p4 = scmp.lt.u32.totalorder %s7045_s28, %s8026_s12  ;;  %p6381_p0 = scmp.lt.u32.totalorder %s6379_s15, %s6374_s16 }
 0x13f   : > { %p6377_p8 = pnand %p6375_p1, %p6785_p13  ;;  %p6383_p9 = scmp.lt.u32.totalorder %s6374_s16, %s7045_s28 }
 0x140   : > { %p6382_p5 = por %p6381_p0, %p6380_p4 }
 0x141   : > { %p6378_p3 = pneg %p6377_p8 }
 0x142   : > { %p6384_p6 = por %p6383_p9, %p6382_p5 }
 0x144   : > { %p6385_p2 = pnand %p6384_p6, %p6378_p3 }
 0x146   : > { %6388 = shalt.err (!%p6385_p2)
}
 0x147   : > { %s6389_s27 = scalar_lea.vmem %s7066_s30, 16  ;;  %s6570_s1 = smov [#allocation18]  }
 0x148   : > { %p6390_p12 = scmp.ne.s32.totalorder %s7066_s30, %s6389_s27  ;;  %s6394_s19 = sshll.u32 %s6570_s1, 4  ;;  %s6395_s19 = int_to_ptr.vmem [resolvable:$false] %s6394_s19 }
 0x149   : > { %s6396_s23 = scalar_lea.vmem %s6395_s19, 32  ;;  %p6397_p1 = scmp.lt.s32.totalorder %s7066_s30, %s6395_s19 }
 0x14a   : > { %p6392_p7 = pnand %p6390_p12, %p6785_p13  ;;  %p6398_p8 = scmp.lt.s32.totalorder %s6396_s23, %s6389_s27 }
 0x14c   : > { %p6393_p10 = pneg %p6392_p7  ;;  %p6399_p4 = por %p6398_p8, %p6397_p1 }
 0x14e   : > { %p6400_p0 = pnand %p6399_p4, %p6393_p10 }
 0x150   : > { %6403 = shalt.err (!%p6400_p0)
}
 0x151   : > { %s8102_s2 = sld [smem:[#allocation34_spill]]  ;;  %s8103_s16 = sld [smem:[#allocation36_spill]] }
 0x152   : > { %5772 = dma.hbm_to_vmem [thread:$0]  (!%p8101_p11), %s7045_s28, 16, %s7066_s30, %s6779_s14  }
 0x157   : > { %s8104_s22 = smov %s8103_s16  ;;  %s6404_s20 = scalar_lea.hbm %s8103_s16, 32 }
 0x158   : > { %p6405_p3 = scmp.ne.s32.totalorder %s8104_s22, %s6404_s20  ;;  %p8105_p5 = scmp.ne.s32.totalorder %s8102_s2, 0 }
 0x159   : > { %p6411_p12 = scmp.lt.u32.totalorder %s6404_s20, %s8104_s22 }
 0x15a   : > { %p8106_p9 = pneg %p8105_p5 }
 0x15c   : > { %p6407_p6 = pnand %p6405_p3, %p8106_p9 }
 0x15e   : > { %p6408_p2 = pneg %p6407_p6 }
 0x160   : > { %p6413_p7 = pnand %p6411_p12, %p6408_p2 }
 0x162   : > { %6416 = shalt.err (!%p6413_p7)
}
 0x163   : > { %s6417_s28 = scalar_lea.vmem %s467_s18, 32  ;;  %p8107_p1 = pmov %p8106_p9 }
 0x164   : > { %p6418_p10 = scmp.ne.s32.totalorder %s467_s18, %s6417_s28  ;;  %p6425_p0 = scmp.lt.s32.totalorder %s467_s18, %s467_s18 }
 0x165   : > { %p6426_p11 = scmp.lt.s32.totalorder %s6417_s28, %s6417_s28 }
 0x166   : > { %p6420_p8 = pnand %p6418_p10, %p8107_p1 }
 0x167   : > { %p6427_p13 = por %p6426_p11, %p6425_p0 }
 0x168   : > { %p6421_p4 = pneg %p6420_p8 }
 0x16a   : > { %p6428_p3 = pnand %p6427_p13, %p6421_p4 }
 0x16c   : > { %6431 = shalt.err (!%p6428_p3)
}
 0x16d   : > { %s6571_s30 = smov 16   ;;  %s6572_s1 = smov 1  }
 0x16e   : > { %5738 = dma.hbm_to_vmem [thread:$0]  (!%p8105_p5), %s8104_s22, 32, %s467_s18, [#allocation7], %s6571_s30, %s6571_s30, %s6572_s1  }
 0x16f   : > { %s8108_s16 = sld [smem:[#allocation39_spill]]  ;;  %s690_s24 = scalar_lea.vmem [#allocation19], %s6757_s25 }
 0x170   : > { %s697_s26 = sshll.u32 %s690_s24, 4  ;;  %p8110_p11 = scmp.ne.s32.totalorder %s8089_s0, 0  ;;  %s698_s26 = int_to_ptr.vmem [resolvable:$true] %s697_s26 }
 0x175   : > { %s8109_s20 = smov %s8108_s16  ;;  %s7114_s15 = scalar_lea.hbm %s8108_s16, %s6865_s29 }
 0x176   : > { %s6432_s27 = scalar_lea.hbm %s7114_s15, 16  ;;  %s6437_s18 = scalar_lea.hbm %s8109_s20, 32 }
 0x177   : > { %p6433_p13 = scmp.ne.s32.totalorder %s7114_s15, %s6432_s27  ;;  %p6438_p5 = scmp.lt.u32.totalorder %s7114_s15, %s8109_s20 }
 0x178   : > { %p6439_p2 = scmp.lt.u32.totalorder %s6437_s18, %s6432_s27  ;;  %p6441_p7 = scmp.lt.u32.totalorder %s6432_s27, %s7114_s15 }
 0x179   : > { %p6435_p9 = pnand %p6433_p13, %p8110_p11 }
 0x17a   : > { %p6440_p12 = por %p6439_p2, %p6438_p5 }
 0x17b   : > { %p6436_p6 = pneg %p6435_p9 }
 0x17c   : > { %p6442_p10 = por %p6441_p7, %p6440_p12 }
 0x17e   : > { %p6443_p1 = pnand %p6442_p10, %p6436_p6 }
 0x180   : > { %6446 = shalt.err (!%p6443_p1)
}
 0x181   : > { %s6447_s25 = scalar_lea.vmem %s698_s26, 16  ;;  %s6573_s29 = smov [#allocation19]  }
 0x182   : > { %p6448_p8 = scmp.ne.s32.totalorder %s698_s26, %s6447_s25  ;;  %s6452_s19 = sshll.u32 %s6573_s29, 4  ;;  %s6453_s19 = int_to_ptr.vmem [resolvable:$false] %s6452_s19 }
 0x183   : > { %s6454_s23 = scalar_lea.vmem %s6453_s19, 32  ;;  %p6455_p3 = scmp.lt.s32.totalorder %s698_s26, %s6453_s19 }
 0x184   : > { %p6450_p4 = pnand %p6448_p8, %p8110_p11  ;;  %p6456_p13 = scmp.lt.s32.totalorder %s6454_s23, %s6447_s25 }
 0x186   : > { %p6451_p0 = pneg %p6450_p4  ;;  %p6457_p9 = por %p6456_p13, %p6455_p3 }
 0x188   : > { %p6458_p2 = pnand %p6457_p9, %p6451_p0 }
 0x18a   : > { %6461 = shalt.err (!%p6458_p2)
}
 0x18b   : > { %p8111_p5 = scmp.ne.s32.totalorder %s8086_s21, 0  ;;  %s8112_s3 = sld [smem:[#allocation33_spill]] }
 0x18d   : > { %5775 = dma.hbm_to_vmem [thread:$0]  (!%p8111_p5), %s7114_s15, 16, %s698_s26, %s6779_s14  }
 0x191   : > { %p8113_p6 = scmp.ne.s32.totalorder %s8112_s3, 0 }
 0x192   : > { %s8114_s0 = sld [smem:[#allocation29_spill]] (!%p8113_p6) }
 0x193   : > { %706 = sbr.rel (%p8113_p6) target bundleno = 3067 (0xbfb), region = 76 }
 0x198   : > { %p8115_p11 = scmp.eq.s32.totalorder (!%p8113_p6), %s8114_s0, 0 }
 0x19a   : > { %6513 = dma.done.wait (%p8115_p11), [#allocation4], 512   ;;  %p8116_p12 = pmov %p8115_p11 }
 0x19b   : > { %p8117_p7 = pmov %p8115_p11 }
 0x19c   : > { %6515 = vsyncadd (%p8116_p12), [#allocation4], 4294966784 }
 0x19d   : > { %6517 = dma.done.wait (%p8117_p7), [#allocation7], 32   ;;  %p8118_p10 = pmov %p8117_p7 }
 0x19e   : > { %s8119_s21 = sld [smem:[#allocation25_spill]]  ;;  %s8120_s13 = sld [smem:[#allocation31_spill]] }
 0x19f   : > { %6519 = vsyncadd (%p8118_p10), [#allocation7], 4294967264  ;;  %s716_s16 = sand.u32 1, %s8114_s0  }
 0x1a0   : > { %s717_s24 = scalar_lea.sflag [#allocation4], %s716_s16 }
 0x1a4   : > { %s7147_s14 = sand.u32 1, %s8119_s21   ;;  %p8121_p1 = scmp.ne.s32.totalorder %s8120_s13, 0 }
 0x1a5   : > { %s5694_s15 = smul.u32 192, %s7147_s14 }
 0x1a7   : > { %s7150_s26 = scalar_lea.vmem [#allocation8], %s5694_s15 }
 0x1a8   : > { %6521 = dma.done.wait (%p8121_p1), %s717_s24, 8368  }
 0x1a9   : > { %6523 = vsyncadd (%p8121_p1), %s717_s24, 4294958928  ;;  %s5695_s27 = smul.u32 3, %s7147_s14  ;;  %s5340_s2 = sshll.u32 %s7147_s14, 6 }
 0x1aa   : > { %s5341_s28 = sshll.u32 %s7147_s14, 7  ;;  %s5342_s18 = sshll.u32 %s7147_s14, 1 }
 0x1ab   : > { %s7160_s30 = scalar_lea.vmem [#allocation9], %s5695_s27  ;;  %s7162_s1 = scalar_lea.vmem [#allocation10], %s5340_s2 }
 0x1ac   : > { %s746_s25 = scalar_lea.vmem [#allocation11], %s7147_s14  ;;  %s754_s29 = scalar_lea.vmem [#allocation12], %s7147_s14 }
 0x1ad   : > { %s762_s19 = scalar_lea.vmem [#allocation13], %s7147_s14  ;;  %s7167_s23 = scalar_lea.vmem [#allocation14], %s5341_s28 }
 0x1ae   : > { %s7169_s3 = scalar_lea.vmem [#allocation15], %s5342_s18  ;;  %s7171_s0 = scalar_lea.vmem [#allocation16], %s5341_s28 }
 0x1af   : > { %s797_s21 = scalar_lea.vmem [#allocation17], %s7147_s14  ;;  %s805_s13 = scalar_lea.vmem [#allocation18], %s7147_s14 }
 0x1b0   : > { %s813_s16 = scalar_lea.vmem [#allocation19], %s7147_s14  ;;  %s8122_s15 = sld [smem:[#allocation27_spill]] }
 0x1b6   : > { %p5344_p8 = scmp.ne.s32.totalorder %s8122_s15, 0 }
 0x1b7   : > { %v910_v0 = vld [vmem:[#allocation3] sm:$0xff] (!%p5344_p8)  ;;  %v911_v1 = vld [vmem:[#allocation3 + $0x8] sm:$0xff] (!%p5344_p8)  ;;  %v912_v2 = vld [vmem:[#allocation3 + $0x10] sm:$0xff] (!%p5344_p8) }
 0x1b8   : > { %909 = sbr.rel (%p5344_p8) target bundleno = 447 (0x1bf), region = 136  ;;  %914 = vst [vmem:[#allocation2] sm:$0xff] (!%p5344_p8), %v910_v0  ;;  %915 = vst [vmem:[#allocation2 + $0x8] sm:$0xff] (!%p5344_p8), %v911_v1  ;;  %v913_v3 = vld [vmem:[#allocation3 + $0x18] sm:$0xff] (!%p5344_p8) }
 0x1b9   : > { %916 = vst [vmem:[#allocation2 + $0x10] sm:$0xff] (!%p5344_p8), %v912_v2  ;;  %917 = vst [vmem:[#allocation2 + $0x18] sm:$0xff] (!%p5344_p8), %v913_v3 }
 0x1bf PF: > { %v5882_v4 = vld [vmem:[%s7150_s26 + $0x4] ss:$12 sps:$4 sm:$0xff]   ;;  %v5884_v5 = vld [vmem:[%s7150_s26] ss:$12 sps:$4 sm:$0xff]   ;;  %v6574_v6 = vmov 0   ;;  %v960_v35 = vlaneseq  ;;  %s6575_s24 = smov 32  }
 0x1c0   : > { %1135 = vmatprep.mubr.bf16.mxu0 %v6574_v6  ;;  %1103 = vmatprep.subr.bf16.mxu0 %v5882_v4  ;;  %v5885_v7 = vld [vmem:[%s7150_s26 + $0x1c] ss:$12 sps:$4 sm:$0xff]   ;;  %v5887_v8 = vld [vmem:[%s7150_s26 + $0x18] ss:$12 sps:$4 sm:$0xff]   ;;  %v5888_v9 = vld [vmem:[%s7150_s26 + $0x34] ss:$12 sps:$4 sm:$0xff]  }
 0x1c1   : > { %1104 = vmatpush1.bf16.msra.mxu0 %v5884_v5  ;;  %v5890_v10 = vld [vmem:[%s7150_s26 + $0x30] ss:$12 sps:$4 sm:$0xff]   ;;  %v5891_v11 = vld [vmem:[%s7150_s26 + $0x4c] ss:$12 sps:$4 sm:$0xff]   ;;  %v5893_v13 = vld [vmem:[%s7150_s26 + $0x48] ss:$12 sps:$4 sm:$0xff]  }
 0x1c2   : > { %1105 = vmatprep.subr.bf16.mxu0 %v5885_v7  ;;  %v918_v12 = vld [vmem:[#allocation2] sm:$0xff]  ;;  %v919_v15 = vld [vmem:[#allocation2 + $0x8] sm:$0xff]  ;;  %v920_v31 = vld [vmem:[#allocation2 + $0x10] sm:$0xff]  ;;  %v7203_v36 = vshrl.u32 %v960_v35, 7  ;;  %s6577_s27 = smov 64   ;;  %v6578_v2 = vmov 0.0  }
 0x1c3   : > { %v5894_v14 = vld [vmem:[%s7150_s26 + $0x64] ss:$12 sps:$4 sm:$0xff]   ;;  %v924_v16 = vpack.c.bf16 %v919_v15, %v918_v12  ;;  %v5906_v17 = vld [vmem:[%s7150_s26 + $0x8] ss:$12 sps:$4 sm:$0xff]   ;;  %v5907_v18 = vld [vmem:[%s7150_s26 + $0x20] ss:$12 sps:$4 sm:$0xff]  }
 0x1c4   : > { %v5896_v19 = vld [vmem:[%s7150_s26 + $0x60] ss:$12 sps:$4 sm:$0xff]   ;;  %5554 = vmatprep.subr.bf16.mxu1 %v5906_v17  ;;  %v5897_v20 = vld [vmem:[%s7150_s26 + $0x7c] ss:$12 sps:$4 sm:$0xff]   ;;  %v5908_v21 = vld [vmem:[%s7150_s26 + $0x38] ss:$12 sps:$4 sm:$0xff]  }
 0x1c5   : > { %1106 = vmatpush1.bf16.msra.mxu0 %v5887_v8  ;;  %5570 = vmatprep.mubr.bf16.mxu1 %v924_v16  ;;  %v5899_v22 = vld [vmem:[%s7150_s26 + $0x78] ss:$12 sps:$4 sm:$0xff]   ;;  %v5900_v23 = vld [vmem:[%s7150_s26 + $0x94] ss:$12 sps:$4 sm:$0xff]   ;;  %v5909_v24 = vld [vmem:[%s7150_s26 + $0x50] ss:$12 sps:$4 sm:$0xff]  }
 0x1c6   : > { %1107 = vmatprep.subr.bf16.mxu0 %v5888_v9  ;;  %5555 = vmatpush3.bf16.msra.mxu1 %v5906_v17  ;;  %v5902_v25 = vld [vmem:[%s7150_s26 + $0x90] ss:$12 sps:$4 sm:$0xff]   ;;  %v5903_v26 = vld [vmem:[%s7150_s26 + $0xac] ss:$12 sps:$4 sm:$0xff]   ;;  %v5910_v27 = vld [vmem:[%s7150_s26 + $0x68] ss:$12 sps:$4 sm:$0xff]  }
 0x1c7   : > { %5556 = vmatprep.subr.bf16.mxu1 %v5907_v18  ;;  %v5905_v28 = vld [vmem:[%s7150_s26 + $0xa8] ss:$12 sps:$4 sm:$0xff]   ;;  %v5911_v29 = vld [vmem:[%s7150_s26 + $0x80] ss:$12 sps:$4 sm:$0xff]   ;;  %v5912_v30 = vld [vmem:[%s7150_s26 + $0x98] ss:$12 sps:$4 sm:$0xff]  }
 0x1c8   : > { %v921_v32 = vld [vmem:[#allocation2 + $0x18] sm:$0xff]  ;;  %v962_v37 = vsub.s32 0, %v7203_v36  ;;  %v958_v38 = vld [vmem:[%s7160_s30] sm:$0x7]  ;;  %v966_v39 = vsub.s32 1, %v7203_v36  ;;  %vm6579_vm0 = vmmov 0  }
 0x1c9   : > { %1108 = vmatpush1.bf16.msra.mxu0 %v5890_v10  ;;  %v5913_v33 = vld [vmem:[%s7150_s26 + $0xb0] ss:$12 sps:$4 sm:$0xff]   ;;  %v925_v34 = vpack.c.bf16 %v921_v32, %v920_v31  ;;  %s6576_s26 = smov 96   ;;  %v970_v3 = vsub.s32 2, %v7203_v36  ;;  %vm2831_vm1 = vcmask 261120   ;;  %vm3236_vm2 = vcmask 130048  }
 0x1ca   : > { %1109 = vmatprep.subr.bf16.mxu0 %v5891_v11  ;;  %5557 = vmatpush3.bf16.msra.mxu1 %v5907_v18  ;;  %v963_v40 = vrot.slane %v958_v38, %v962_v37  ;;  %v967_v42 = vrot.slane %v958_v38, %v966_v39  ;;  %vm4369_vm3 = vcmask 523264   ;;  %vm4374_vm4 = vcmask 785408   ;;  %s8123_s2 = sld [smem:[#allocation27_spill]] }
 0x1cb   : > { %5558 = vmatprep.subr.bf16.mxu1 %v5908_v21  ;;  %v971_v7 = vrot.slane %v958_v38, %v970_v3 }
 0x1cd   : > { %1110 = vmatpush1.bf16.msra.mxu0 %v5893_v13 }
 0x1ce   : > { %1111 = vmatprep.subr.bf16.mxu0 %v5894_v14  ;;  %5559 = vmatpush3.bf16.msra.mxu1 %v5908_v21  ;;  %v6581_v21 = vmov 1934713408  }
 0x1cf   : > { %5560 = vmatprep.subr.bf16.mxu1 %v5909_v24 }
 0x1d0   : > { %p5465_p4 = scmp.ne.s32.totalorder %s8123_s2, 1 }
 0x1d1   : > { %1112 = vmatpush1.bf16.msra.mxu0 %v5896_v19 }
 0x1d2   : > { %1113 = vmatprep.subr.bf16.mxu0 %v5897_v20  ;;  %5561 = vmatpush3.bf16.msra.mxu1 %v5909_v24 }
 0x1d3   : > { %5562 = vmatprep.subr.bf16.mxu1 %v5910_v27 }
 0x1d5   : > { %1114 = vmatpush1.bf16.msra.mxu0 %v5899_v22  ;;  %v1296_v22 = vunpack.c.l.s4 %v6581_v21 }
 0x1d6   : > { %1115 = vmatprep.subr.bf16.mxu0 %v5900_v23  ;;  %5563 = vmatpush3.bf16.msra.mxu1 %v5910_v27  ;;  %v7263_v23 = vpack.i.b16 %v6574_v6, %v6574_v6 }
 0x1d7   : > { %5564 = vmatprep.subr.bf16.mxu1 %v5911_v29 }
 0x1d9   : > { %1116 = vmatpush1.bf16.msra.mxu0 %v5902_v25 }
 0x1da   : > { %1117 = vmatprep.subr.bf16.mxu0 %v5903_v26  ;;  %5565 = vmatpush3.bf16.msra.mxu1 %v5911_v29 }
 0x1db   : > { %5566 = vmatprep.subr.bf16.mxu1 %v5912_v30 }
 0x1dd   : > { %1118 = vmatpush1.bf16.msra.mxu0 %v5905_v28 }
 0x1de   : > { %5567 = vmatpush3.bf16.msra.mxu1 %v5912_v30  ;;  %5574 = vmatprep.subr.bf16.mxu0 %v6578_v2 }
 0x1df   : > { %5568 = vmatprep.subr.bf16.mxu1 %v5913_v33 }
 0x1e0   : > { %1136 = vmatmul.mubr.bf16.vlgmr.msra.gmra.mrb[0].mxu0 %v924_v16  ;;  %v6580_v16 = vmov 1983009808  }
 0x1e1   : > { %1145 = vmatprep.mubr.bf16.mxu0 %v6574_v6  ;;  %v1265_v17 = vunpack.c.l.s4 %v6580_v16 }
 0x1e2   : > { %5569 = vmatpush3.bf16.msra.mxu1 %v5913_v33  ;;  %v1297_v33 = vunpack.c.0.s8 %v1296_v22 }
 0x1e3   : > { %5586 = vmatprep.subr.bf16.mxu1 %v6578_v2  ;;  %v1266_v20 = vunpack.c.0.s8 %v1265_v17 }
 0x1e5   : > { %5571 = vmatmul.mubr.bf16.vlgmr.msra.gmra.mrb[0].mxu1 %v925_v34  ;;  %v7267_v27 = vsub.s32 %v1266_v20, %v7203_v36 }
 0x1e6   : > { %5588 = vmatprep.mubr.msk.bf16.mxu1 %vm6579_vm0, %v6578_v2 }
 0x1e8   : > { %1146 = vmatmul.mubr.bf16.gmra.mrb[4].mxu0 %v925_v34 }
 0x1e9   : > { %5576 = vmatprep.mubr.msk.bf16.mxu0 %vm6579_vm0, %v6578_v2 }
 0x2b3   : > { %v1137_v41 = vpop.f32.mrb[0].mxu0 }
 0x2b4   : > { %v1138_v43 = vadd.f32 %v1137_v41, %v963_v40  ;;  %v1139_v44 = vpop.f32.mrb[1].mxu0 }
 0x2b5   : > { %v1141_v45 = vpop.f32.mrb[2].mxu0  ;;  %v1140_v48 = vadd.f32 %v1139_v44, %v967_v42 }
 0x2b6   : > { %v1142_v46 = vadd.f32 %v1141_v45, %v963_v40  ;;  %v1143_v47 = vpop.f32.mrb[3].mxu0  ;;  %v1205_v50 = vmul.f32 0.17677669, %v1138_v43 }
 0x2b7   : > { %v1144_v49 = vadd.f32 %v1143_v47, %v967_v42 }
 0x2b8   : > { %v1206_v51 = vmul.f32 0.17677669, %v1142_v46  ;;  %v5572_v4 = vpop.f32.mrb[0].mxu1  ;;  %v7277_v46 = vsub.s32 %v1297_v33, %v7203_v36 }
 0x2b9   : > { %v7212_v52 = vpack.c.bf16 %v1144_v49, %v1140_v48  ;;  %v1190_v5 = vpop.f32.mrb[1].mxu1  ;;  %v1199_v10 = vadd.f32 %v5572_v4, %v971_v7 }
 0x2ba   : > { %v7214_v53 = vpack.c.bf16 %v1206_v51, %v1205_v50  ;;  %v5573_v8 = vpop.f32.mrb[2].mxu1  ;;  %v1191_v11 = vadd.f32 %v1190_v5, %v971_v7 }
 0x2bb   : > { %1763 = vrot.lane.b32.xlu1 %v7212_v52, %s6575_s24  ;;  %1755 = vrot.lane.b32.xlu0 %v7212_v52, %s6576_s26  ;;  %v1147_v54 = vpop.f32.mrb[4].mxu0  ;;  %v1193_v9 = vpop.f32.mrb[3].mxu1  ;;  %v1202_v12 = vadd.f32 %v5573_v8, %v971_v7  ;;  %v1771_v30 = vshrl.u32 %v7212_v52, 16 }
 0x2bc   : > { %v1148_v55 = vadd.f32 %v1147_v54, %v963_v40  ;;  %v1149_v56 = vpop.f32.mrb[5].mxu0  ;;  %v1194_v13 = vadd.f32 %v1193_v9, %v971_v7  ;;  %v1229_v49 = vshrl.u32 %v7214_v53, 16 }
 0x2bd   : > { %v1150_v57 = vadd.f32 %v1149_v56, %v967_v42  ;;  %v1151_v58 = vpop.f32.mrb[6].mxu0  ;;  %v7251_v14 = vpack.c.bf16 %v1202_v12, %v1199_v10 }
 0x2be   : > { %v1207_v59 = vmul.f32 0.17677669, %v1148_v55  ;;  %v1152_v60 = vadd.f32 %v1151_v58, %v963_v40  ;;  %v1153_v61 = vpop.f32.mrb[7].mxu0  ;;  %v7253_v15 = vpack.c.bf16 %v1194_v13, %v1191_v11 }
 0x2bf   : > { %1759 = vrot.lane.b32.xlu0 %v7212_v52, %s6577_s27  ;;  %1213 = vrot.lane.b32.xlu1 %v7214_v53, %s6576_s26  ;;  %v1154_v62 = vadd.f32 %v1153_v61, %v967_v42 }
 0x2c0   : > { %v1208_v63 = vmul.f32 0.17677669, %v1152_v60 }
 0x2c1   : > { %v7224_v0 = vpack.c.bf16 %v1154_v62, %v1150_v57 }
 0x2c2   : > { %v7226_v1 = vpack.c.bf16 %v1208_v63, %v1207_v59 }
 0x2c3   : > { %1217 = vrot.lane.b32.xlu0 %v7214_v53, %s6577_s27  ;;  %1221 = vrot.lane.b32.xlu1 %v7214_v53, %s6575_s24  ;;  %v1787_v57 = vshrl.u32 %v7224_v0, 16 }
 0x2c4   : > { %v1251_v4 = vshrl.u32 %v7226_v1, 16 }
 0x2c7   : > { %1757 = vrot.lane.b32.xlu0 %v7224_v0, %s6576_s26  ;;  %1761 = vrot.lane.b32.xlu1 %v7224_v0, %s6577_s27 }
 0x2cb   : > { %1765 = vrot.lane.b32.xlu0 %v7224_v0, %s6575_s24  ;;  %1215 = vrot.lane.b32.xlu1 %v7226_v1, %s6576_s26 }
 0x2cf   : > { %1219 = vrot.lane.b32.xlu0 %v7226_v1, %s6577_s27  ;;  %1223 = vrot.lane.b32.xlu1 %v7226_v1, %s6575_s24 }
 0x2d3   : > { %2291 = vrot.lane.b32.xlu1 %v7253_v15, %s6576_s26  ;;  %2295 = vrot.lane.b32.xlu0 %v7253_v15, %s6577_s27 }
 0x2d7   : > { %2299 = vrot.lane.b32.xlu1 %v7253_v15, %s6575_s24 }
 0x32d   : > { %v1764_v18 = vpop.permute.xlu1 %1763  ;;  %v1756_v19 = vpop.permute.xlu0 %1755 }
 0x32e   : > { %v1769_v24 = vpack.i.b16 %v1756_v19, %v7212_v52  ;;  %v1772_v25 = vshrl.u32 %v1756_v19, 16  ;;  %v1780_v29 = vshrl.u32 %v1764_v18, 16 }
 0x330   : > { %v1773_v38 = vpack.i.b16 %v1772_v25, %v1771_v30  ;;  %v1799_v40 = vcombine.high %v1769_v24, %v7263_v23  ;;  %v1806_v42 = vrot.slane %v1769_v24, %v7267_v27 }
 0x331   : > { %v1760_v26 = vpop.permute.xlu0 %1759  ;;  %v1214_v32 = vpop.permute.xlu1 %1213 }
 0x332   : > { %v1777_v28 = vpack.i.b16 %v1764_v18, %v1760_v26  ;;  %v1779_v31 = vshrl.u32 %v1760_v26, 16  ;;  %v1227_v43 = vpack.i.b16 %v1214_v32, %v7214_v53  ;;  %v1230_v45 = vshrl.u32 %v1214_v32, 16 }
 0x333   : > { %v1813_v50 = vrot.slane %v1799_v40, %v7267_v27  ;;  %v1865_v51 = vcombine.high %v1773_v38, %v7263_v23  ;;  %v1872_v58 = vrot.slane %v1773_v38, %v7267_v27 }
 0x334   : > { %v1814_v34 = vcombine.high %v1777_v28, %v7263_v23  ;;  %v1821_v35 = vrot.slane %v1777_v28, %v7267_v27  ;;  %v1781_v41 = vpack.i.b16 %v1780_v29, %v1779_v31  ;;  %v1263_v56 = vcombine.high %v1227_v43, %v7263_v23 }
 0x335   : > { %v1218_v55 = vpop.permute.xlu0 %1217  ;;  %v1231_v61 = vpack.i.b16 %v1230_v45, %v1229_v49  ;;  %v1222_v62 = vpop.permute.xlu1 %1221  ;;  %v7291_v5 = vrot.slane %v1865_v51, %v7267_v27  ;;  %v1270_v10 = vrot.slane %v1227_v43, %v7267_v27 }
 0x336   : > { %v1828_v44 = vrot.slane %v1814_v34, %v7267_v27  ;;  %v1829_v47 = vcombine.low %v1806_v42, %v1821_v35  ;;  %v1830_v48 = vcombine.high %v1806_v42, %v1821_v35  ;;  %v1880_v52 = vcombine.high %v1781_v41, %v7263_v23 }
 0x337   : > { %v1887_v54 = vrot.slane %v1781_v41, %v7267_v27  ;;  %v1237_v3 = vshrl.u32 %v1218_v55, 16  ;;  %v1277_v11 = vrot.slane %v1263_v56, %v7267_v27  ;;  %v1235_v12 = vpack.i.b16 %v1222_v62, %v1218_v55 }
 0x338   : > { %v1845_v59 = vcombine.low %v1813_v50, %v1828_v44  ;;  %v1846_v60 = vcombine.high %v1813_v50, %v1828_v44  ;;  %v1837_v53 = vrot.slane %v1829_v47, %v7277_v46  ;;  %v1844_v63 = vrot.slane %v1830_v48, %v7277_v46 }
 0x339   : > { %v7294_v7 = vrot.slane %v1880_v52, %v7267_v27  ;;  %v1895_v8 = vcombine.low %v1872_v58, %v1887_v54  ;;  %v1896_v9 = vcombine.high %v1872_v58, %v1887_v54  ;;  %v1238_v13 = vshrl.u32 %v1222_v62, 16  ;;  %v1758_v20 = vpop.permute.xlu0 %1757  ;;  %v1762_v47 = vpop.permute.xlu1 %1761 }
 0x33a   : > { %v7299_v16 = vrot.slane %v1845_v59, %v7277_v46  ;;  %v7302_v17 = vrot.slane %v1846_v60, %v7277_v46  ;;  %v1329_v18 = vcombine.high %v1231_v61, %v7263_v23  ;;  %v1336_v19 = vrot.slane %v1231_v61, %v7267_v27 }
 0x33b   : > { %v2063_v21 = vcombine.low %v1837_v53, %v1844_v63  ;;  %v1239_v22 = vpack.i.b16 %v1238_v13, %v1237_v3  ;;  %v1278_v24 = vcombine.high %v1235_v12, %v7263_v23  ;;  %v1285_v25 = vrot.slane %v1235_v12, %v7267_v27 }
 0x33c   : > { %v7309_v26 = vrot.slane %v1895_v8, %v7277_v46  ;;  %v7312_v28 = vrot.slane %v1896_v9, %v7277_v46  ;;  %v1911_v29 = vcombine.low %v7291_v5, %v7294_v7  ;;  %v5377_v30 = vcombine.high %v1837_v53, %v1844_v63 }
 0x33d   : > { %v1292_v31 = vrot.slane %v1278_v24, %v7267_v27  ;;  %v1293_v32 = vcombine.low %v1270_v10, %v1285_v25  ;;  %v1294_v33 = vcombine.high %v1270_v10, %v1285_v25  ;;  %v1344_v34 = vcombine.high %v1239_v22, %v7263_v23  ;;  %v1766_v52 = vpop.permute.xlu0 %1765 }
 0x33e   : > { %v1343_v35 = vrot.slane %v1329_v18, %v7267_v27  ;;  %v1351_v38 = vrot.slane %v1239_v22, %v7267_v27  ;;  %v1785_v40 = vpack.i.b16 %v1758_v20, %v7224_v0  ;;  %v1788_v41 = vshrl.u32 %v1758_v20, 16 }
 0x33f   : > { %v1301_v42 = vrot.slane %v1293_v32, %v7277_v46  ;;  %v1308_v43 = vrot.slane %v1294_v33, %v7277_v46  ;;  %v1309_v44 = vcombine.low %v1277_v11, %v1292_v31  ;;  %v1310_v45 = vcombine.high %v1277_v11, %v1292_v31 }
 0x340   : > { %v1358_v48 = vrot.slane %v1344_v34, %v7267_v27  ;;  %v1359_v49 = vcombine.low %v1336_v19, %v1351_v38  ;;  %v1360_v50 = vcombine.high %v1336_v19, %v1351_v38  ;;  %v1795_v51 = vshrl.u32 %v1762_v47, 16 }
 0x341   : > { %v1317_v54 = vrot.slane %v1309_v44, %v7277_v46  ;;  %v1324_v55 = vrot.slane %v1310_v45, %v7277_v46  ;;  %v1527_v56 = vcombine.low %v1301_v42, %v1308_v43  ;;  %v5369_v58 = vcombine.high %v1301_v42, %v1308_v43  ;;  %v1216_v42 = vpop.permute.xlu1 %1215 }
 0x342   : > { %v1367_v59 = vrot.slane %v1359_v49, %v7277_v46  ;;  %v1374_v60 = vrot.slane %v1360_v50, %v7277_v46  ;;  %v1375_v61 = vcombine.low %v1343_v35, %v1358_v48  ;;  %v1376_v62 = vcombine.high %v1343_v35, %v1358_v48 }
 0x343   : > { %v1543_v53 = vcombine.low %v1317_v54, %v1324_v55  ;;  %v5370_v63 = vcombine.high %v1317_v54, %v1324_v55  ;;  %v1793_v3 = vpack.i.b16 %v1766_v52, %v1762_v47  ;;  %v1796_v8 = vshrl.u32 %v1766_v52, 16 }
 0x344   : > { %v1383_v9 = vrot.slane %v1375_v61, %v7277_v46  ;;  %v1390_v10 = vrot.slane %v1376_v62, %v7277_v46  ;;  %v1577_v11 = vcombine.low %v1367_v59, %v1374_v60  ;;  %v5371_v12 = vcombine.high %v1367_v59, %v1374_v60 }
 0x345   : > { %v1912_v13 = vcombine.high %v7291_v5, %v7294_v7  ;;  %v7333_v18 = vrot.slane %v2063_v21, %v7267_v27  ;;  %v7336_v19 = vrot.slane %v5377_v30, %v7267_v27  ;;  %v1789_v20 = vpack.i.b16 %v1788_v41, %v1787_v57 }
 0x346   : > { %v1534_v22 = vrot.slane %v1527_v56, %v7267_v27  ;;  %v1542_v24 = vrot.slane %v5369_v58, %v7267_v27  ;;  %v1593_v25 = vcombine.low %v1383_v9, %v1390_v10  ;;  %v5372_v31 = vcombine.high %v1383_v9, %v1390_v10  ;;  %v1224_v9 = vpop.permute.xlu1 %1223 }
 0x347   : > { %v1550_v32 = vrot.slane %v1543_v53, %v7267_v27  ;;  %v1558_v33 = vrot.slane %v5370_v63, %v7267_v27  ;;  %v1797_v5 = vpack.i.b16 %v1796_v8, %v1795_v51  ;;  %v1946_v7 = vcombine.high %v1793_v3, %v7263_v23  ;;  %v1220_v8 = vpop.permute.xlu0 %1219 }
 0x348   : > { %v1584_v21 = vrot.slane %v1577_v11, %v7267_v27  ;;  %v1592_v30 = vrot.slane %v5371_v12, %v7267_v27  ;;  %v1931_v0 = vcombine.high %v1785_v40, %v7263_v23  ;;  %v1953_v57 = vrot.slane %v1793_v3, %v7267_v27 }
 0x349   : > { %v2079_v34 = vcombine.low %v7299_v16, %v7302_v17  ;;  %v5378_v35 = vcombine.high %v7299_v16, %v7302_v17  ;;  %v1600_v38 = vrot.slane %v1593_v25, %v7267_v27  ;;  %v1608_v41 = vrot.slane %v5372_v31, %v7267_v27 }
 0x34a   : > { %v7356_v43 = vrot.slane %v1911_v29, %v7277_v46  ;;  %v7359_v44 = vrot.slane %v1912_v13, %v7277_v46  ;;  %v1938_v45 = vrot.slane %v1785_v40, %v7267_v27  ;;  %v1960_v47 = vrot.slane %v1946_v7, %v7267_v27 }
 0x34b   : > { %v1559_v48 = vcombine.low %v1534_v22, %v1542_v24  ;;  %v1567_v49 = vcombine.low %v1550_v32, %v1558_v33  ;;  %v1997_v50 = vcombine.high %v1789_v20, %v7263_v23  ;;  %v2012_v16 = vcombine.high %v1797_v5, %v7263_v23 }
 0x34c   : > { %v1609_v17 = vcombine.low %v1584_v21, %v1592_v30  ;;  %v1945_v51 = vrot.slane %v1931_v0, %v7267_v27  ;;  %v1961_v52 = vcombine.low %v1938_v45, %v1953_v57  ;;  %v1962_v54 = vcombine.high %v1938_v45, %v1953_v57 }
 0x34d   : > { %v2113_v29 = vcombine.low %v7309_v26, %v7312_v28  ;;  %v5379_v55 = vcombine.high %v7309_v26, %v7312_v28  ;;  %v1617_v40 = vcombine.low %v1600_v38, %v1608_v41  ;;  %v2019_v56 = vrot.slane %v1797_v5, %v7267_v27 }
 0x34e   : > { %v2129_v58 = vcombine.low %v7356_v43, %v7359_v44  ;;  %v5380_v59 = vcombine.high %v7356_v43, %v7359_v44  ;;  %v2004_v60 = vrot.slane %v1789_v20, %v7267_v27  ;;  %v1977_v61 = vcombine.low %v1945_v51, %v1960_v47 }
 0x34f   : > { %v7377_v62 = vrot.slane %v1559_v48, %v7277_v46  ;;  %v7380_v53 = vrot.slane %v1567_v49, %v7277_v46  ;;  %v2011_v63 = vrot.slane %v1997_v50, %v7267_v27  ;;  %v2026_v3 = vrot.slane %v2012_v16, %v7267_v27 }
 0x350   : > { %v7385_v10 = vrot.slane %v1609_v17, %v7277_v46  ;;  %v1969_v11 = vrot.slane %v1961_v52, %v7277_v46  ;;  %v1976_v12 = vrot.slane %v1962_v54, %v7277_v46  ;;  %v1249_v13 = vpack.i.b16 %v1216_v42, %v7226_v1 }
 0x351   : > { %v7391_v20 = vrot.slane %v1617_v40, %v7277_v46  ;;  %v1978_v22 = vcombine.high %v1945_v51, %v1960_v47  ;;  %v2027_v24 = vcombine.low %v2004_v60, %v2019_v56  ;;  %v1252_v25 = vshrl.u32 %v1216_v42, 16 }
 0x352   : > { %v7394_v31 = vrot.slane %v1977_v61, %v7277_v46  ;;  %v2028_v32 = vcombine.high %v2004_v60, %v2019_v56  ;;  %v1259_v33 = vshrl.u32 %v1220_v8, 16  ;;  %v1257_v5 = vpack.i.b16 %v1224_v9, %v1220_v8 }
 0x353   : > { %v2043_v7 = vcombine.low %v2011_v63, %v2026_v3  ;;  %v2044_v21 = vcombine.high %v2011_v63, %v2026_v3  ;;  %v1253_v30 = vpack.i.b16 %v1252_v25, %v1251_v4  ;;  %v1260_v0 = vshrl.u32 %v1224_v9, 16 }
 0x354   : > { %v1395_v57 = vcombine.high %v1249_v13, %v7263_v23  ;;  %v1402_v38 = vrot.slane %v1249_v13, %v7267_v27  ;;  %v1410_v41 = vcombine.high %v1257_v5, %v7263_v23  ;;  %v1417_v42 = vrot.slane %v1257_v5, %v7267_v27 }
 0x355   : > { %v1461_v45 = vcombine.high %v1253_v30, %v7263_v23  ;;  %v1261_v47 = vpack.i.b16 %v1260_v0, %v1259_v33  ;;  %v2086_v48 = vrot.slane %v2079_v34, %v7267_v27  ;;  %v2094_v49 = vrot.slane %v5378_v35, %v7267_v27 }
 0x356   : > { %v2163_v50 = vcombine.low %v1969_v11, %v1976_v12  ;;  %v1424_v1 = vrot.slane %v1410_v41, %v7267_v27  ;;  %v1425_v4 = vcombine.low %v1402_v38, %v1417_v42  ;;  %v1426_v16 = vcombine.high %v1402_v38, %v1417_v42 }
 0x357   : > { %v1992_v17 = vrot.slane %v1978_v22, %v7277_v46  ;;  %v2035_v51 = vrot.slane %v2027_v24, %v7277_v46  ;;  %v1476_v52 = vcombine.high %v1261_v47, %v7263_v23  ;;  %v1483_v54 = vrot.slane %v1261_v47, %v7267_v27 }
 0x358   : > { %v2042_v40 = vrot.slane %v2028_v32, %v7277_v46  ;;  %v2051_v56 = vrot.slane %v2043_v7, %v7277_v46  ;;  %v5381_v34 = vcombine.high %v1969_v11, %v1976_v12  ;;  %v1409_v35 = vrot.slane %v1395_v57, %v7267_v27 }
 0x359   : > { %v1468_v60 = vrot.slane %v1253_v30, %v7267_v27  ;;  %v1475_v61 = vrot.slane %v1461_v45, %v7267_v27  ;;  %v1490_v63 = vrot.slane %v1476_v52, %v7267_v27  ;;  %v2103_v3 = vcombine.low %v2086_v48, %v2094_v49 }
 0x35a   : > { %v7417_v8 = vrot.slane %v1425_v4, %v7277_v46  ;;  %v7420_v9 = vrot.slane %v1426_v16, %v7277_v46  ;;  %v1441_v13 = vcombine.low %v1409_v35, %v1424_v1  ;;  %v1442_v22 = vcombine.high %v1409_v35, %v1424_v1 }
 0x35b   : > { %v2058_v24 = vrot.slane %v2044_v21, %v7277_v46  ;;  %v1491_v11 = vcombine.low %v1468_v60, %v1483_v54  ;;  %v1492_v12 = vcombine.high %v1468_v60, %v1483_v54  ;;  %v2095_v25 = vcombine.low %v7333_v18, %v7336_v19 }
 0x35c   : > { %v2170_v32 = vrot.slane %v2163_v50, %v7267_v27  ;;  %v2178_v33 = vrot.slane %v5381_v34, %v7267_v27  ;;  %v1507_v5 = vcombine.low %v1475_v61, %v1490_v63  ;;  %v1508_v7 = vcombine.high %v1475_v61, %v1490_v63 }
 0x35d   : > { %v2179_v30 = vcombine.low %v7394_v31, %v1992_v17  ;;  %v5382_v0 = vcombine.high %v7394_v31, %v1992_v17  ;;  %v2213_v57 = vcombine.low %v2035_v51, %v2042_v40  ;;  %v2110_v38 = vrot.slane %v2103_v3, %v7277_v46 }
 0x35e   : > { %v1449_v21 = vrot.slane %v1441_v13, %v7277_v46  ;;  %v1456_v41 = vrot.slane %v1442_v22, %v7277_v46  ;;  %v1627_v18 = vcombine.low %v7417_v8, %v7420_v9  ;;  %v2120_v19 = vrot.slane %v2113_v29, %v7267_v27 }
 0x35f   : > { %v5383_v42 = vcombine.high %v2035_v51, %v2042_v40  ;;  %v1499_v45 = vrot.slane %v1491_v11, %v7277_v46  ;;  %v1506_v31 = vrot.slane %v1492_v12, %v7277_v46  ;;  %v2102_v47 = vrot.slane %v2095_v25, %v7277_v46 }
 0x360   : > { %v1515_v48 = vrot.slane %v1507_v5, %v7277_v46  ;;  %v1522_v49 = vrot.slane %v1508_v7, %v7277_v46  ;;  %v2128_v50 = vrot.slane %v5379_v55, %v7267_v27  ;;  %v2136_v29 = vrot.slane %v2129_v58, %v7267_v27 }
 0x361   : > { %v2229_v1 = vcombine.low %v2051_v56, %v2058_v24  ;;  %v5384_v4 = vcombine.high %v2051_v56, %v2058_v24  ;;  %v2111_v16 = vcombine.low %v2102_v47, %v2110_v38  ;;  %v2144_v17 = vrot.slane %v5380_v59, %v7267_v27 }
 0x362   : > { %v7456_v51 = vrot.slane %v1627_v18, %v7267_v27  ;;  %v5373_v26 = vcombine.high %v7417_v8, %v7420_v9  ;;  %v1643_v28 = vcombine.low %v1449_v21, %v1456_v41  ;;  %v2145_v55 = vcombine.low %v2120_v19, %v2128_v50 }
 0x363   : > { %v5374_v52 = vcombine.high %v1449_v21, %v1456_v41  ;;  %v1677_v54 = vcombine.low %v1499_v45, %v1506_v31  ;;  %v5375_v58 = vcombine.high %v1499_v45, %v1506_v31  ;;  %v2153_v40 = vcombine.low %v2136_v29, %v2144_v17 }
 0x364   : > { %v1693_v34 = vcombine.low %v1515_v48, %v1522_v49  ;;  %v5376_v56 = vcombine.high %v1515_v48, %v1522_v49  ;;  %v2186_v35 = vrot.slane %v2179_v30, %v7267_v27  ;;  %v2194_v60 = vrot.slane %v5382_v0, %v7267_v27 }
 0x365   : > { %v2152_v43 = vrot.slane %v2145_v55, %v7277_v46  ;;  %v2160_v44 = vrot.slane %v2153_v40, %v7277_v46  ;;  %v2195_v59 = vcombine.low %v2170_v32, %v2178_v33  ;;  %v2220_v61 = vrot.slane %v2213_v57, %v7267_v27 }
 0x366   : > { %v2203_v63 = vcombine.low %v2186_v35, %v2194_v60  ;;  %v2228_v3 = vrot.slane %v5383_v42, %v7267_v27  ;;  %v2236_v8 = vrot.slane %v2229_v1, %v7267_v27  ;;  %v2244_v9 = vrot.slane %v5384_v4, %v7267_v27 }
 0x367   : > { %v1650_v13 = vrot.slane %v1643_v28, %v7267_v27  ;;  %v2161_v22 = vcombine.low %v2152_v43, %v2160_v44  ;;  %v2112_v24 = vcombine.high %v2102_v47, %v2110_v38  ;;  %v2162_v11 = vcombine.high %v2152_v43, %v2160_v44 }
 0x368   : > { %v1658_v12 = vrot.slane %v5374_v52, %v7267_v27  ;;  %v2210_v25 = vrot.slane %v2203_v63, %v7277_v46  ;;  %v2245_v5 = vcombine.low %v2220_v61, %v2228_v3  ;;  %v2253_v32 = vcombine.low %v2236_v8, %v2244_v9 }
 0x369   : > { %v1700_v33 = vrot.slane %v1693_v34, %v7267_v27  ;;  %v1708_v7 = vrot.slane %v5376_v56, %v7267_v27  ;;  %v2265_v30 = vpack.i.b16 %v2161_v22, %v2111_v16  ;;  %v2271_v0 = vpack.i.b16 %v2162_v11, %v2112_v24 }
 0x36a   : > { %v1684_v57 = vrot.slane %v1677_v54, %v7267_v27  ;;  %v2202_v21 = vrot.slane %v2195_v59, %v7277_v46  ;;  %v2252_v41 = vrot.slane %v2245_v5, %v7277_v46  ;;  %v2260_v38 = vrot.slane %v2253_v32, %v7277_v46 }
 0x36b   : > { %v1692_v18 = vrot.slane %v5375_v58, %v7267_v27  ;;  %v2836_v19 = vsel %vm2831_vm1, %v2265_v30, 0  ;;  %v2930_v42 = vsel %vm2831_vm1, %v2271_v0, 0  ;;  %v2267_v45 = vshrl.u32 %v2161_v22, 16 }
 0x36c   : > { %v1642_v31 = vrot.slane %v5373_v26, %v7267_v27  ;;  %5575 = vmatpush3.bf16.xpose.msra.mxu0 %v2836_v19  ;;  %5587 = vmatpush3.bf16.xpose.msra.mxu1 %v2930_v42  ;;  %v2211_v47 = vcombine.low %v2202_v21, %v2210_v25  ;;  %v2261_v48 = vcombine.low %v2252_v41, %v2260_v38  ;;  %v2266_v1 = vshrl.u32 %v2111_v16, 16 }
 0x36d   : > { %v1717_v49 = vcombine.low %v1700_v33, %v1708_v7  ;;  %v1625_v50 = vcombine.low %v7385_v10, %v7391_v20  ;;  %5580 = vmatprep.subr.bf16.mxu0 %v6578_v2  ;;  %v1626_v29 = vcombine.high %v7385_v10, %v7391_v20  ;;  %5598 = vmatprep.subr.bf16.mxu1 %v6578_v2  ;;  %v2273_v20 = vshrl.u32 %v2162_v11, 16 }
 0x36e   : > { %v1575_v4 = vcombine.low %v7377_v62, %v7380_v53  ;;  %v2277_v17 = vpack.i.b16 %v2261_v48, %v2211_v47  ;;  %v1667_v26 = vcombine.low %v1650_v13, %v1658_v12  ;;  %v1709_v28 = vcombine.low %v1684_v57, %v1692_v18 }
 0x36f   : > { %v1576_v55 = vcombine.high %v7377_v62, %v7380_v53  ;;  %v2268_v52 = vpack.i.b16 %v2267_v45, %v2266_v1  ;;  %v1659_v54 = vcombine.low %v7456_v51, %v1642_v31  ;;  %v1724_v10 = vrot.slane %v1717_v49, %v7277_v46 }
 0x370   : > { %v1729_v58 = vpack.i.b16 %v1625_v50, %v1575_v4  ;;  %v3024_v34 = vsel %vm2831_vm1, %v2277_v17, 0  ;;  %v1674_v56 = vrot.slane %v1667_v26, %v7277_v46  ;;  %v1716_v62 = vrot.slane %v1709_v28, %v7277_v46 }
 0x371   : > { %v1735_v40 = vpack.i.b16 %v1626_v29, %v1576_v55  ;;  %v2883_v16 = vsel %vm2831_vm1, %v2268_v52, 0  ;;  %v2262_v53 = vcombine.high %v2252_v41, %v2260_v38  ;;  %v1666_v51 = vrot.slane %v1659_v54, %v7277_v46 }
 0x372   : > { %v1731_v35 = vshrl.u32 %v1625_v50, 16  ;;  %v2272_v60 = vshrl.u32 %v2112_v24, 16  ;;  %v1725_v43 = vcombine.low %v1716_v62, %v1724_v10  ;;  %v2212_v44 = vcombine.high %v2202_v21, %v2210_v25  ;;  %v2296_v50 = vpop.permute.xlu0 %2295 }
 0x373   : > { %5577 = vmatmul.mubr.msk.bf16.vlgmr.msra.gmra.mrb[8].mxu0 %vm2831_vm1, %v1729_v58  ;;  %5589 = vmatmul.mubr.msk.bf16.vlgmr.msra.gmra.mrb[4].mxu1 %vm2831_vm1, %v1735_v40  ;;  %v1730_v59 = vshrl.u32 %v1575_v4, 16  ;;  %v1675_v63 = vcombine.low %v1666_v51, %v1674_v56  ;;  %v2279_v24 = vshrl.u32 %v2261_v48, 16  ;;  %v1737_v11 = vshrl.u32 %v1626_v29, 16 }
 0x374   : > { %5581 = vmatpush3.bf16.xpose.msra.mxu0 %v2883_v16  ;;  %5599 = vmatpush3.bf16.xpose.msra.mxu1 %v3024_v34  ;;  %v2274_v61 = vpack.i.b16 %v2273_v20, %v2272_v60  ;;  %v2283_v3 = vpack.i.b16 %v2262_v53, %v2212_v44  ;;  %v2278_v12 = vshrl.u32 %v2211_v47, 16  ;;  %v1726_v25 = vcombine.high %v1716_v62, %v1724_v10  ;;  %v2292_v47 = vpop.permute.xlu1 %2291 }
 0x375   : > { %5582 = vmatprep.mubr.msk.bf16.mxu0 %vm6579_vm0, %v6578_v2  ;;  %5592 = vmatprep.subr.bf16.mxu0 %v6578_v2  ;;  %v1732_v8 = vpack.i.b16 %v1731_v35, %v1730_v59  ;;  %v1741_v9 = vpack.i.b16 %v1725_v43, %v1675_v63  ;;  %v1736_v5 = vshrl.u32 %v1576_v55, 16  ;;  %v1676_v33 = vcombine.high %v1666_v51, %v1674_v56 }
 0x376   : > { %5600 = vmatprep.mubr.msk.bf16.mxu1 %vm6579_vm0, %v6578_v2  ;;  %5610 = vmatprep.subr.bf16.mxu1 %v6578_v2  ;;  %v2977_v13 = vsel %vm2831_vm1, %v2274_v61, 0  ;;  %v3118_v22 = vsel %vm2831_vm1, %v2283_v3, 0  ;;  %v2280_v32 = vpack.i.b16 %v2279_v24, %v2278_v12  ;;  %v2285_v57 = vshrl.u32 %v2262_v53, 16 }
 0x377   : > { %v1738_v7 = vpack.i.b16 %v1737_v11, %v1736_v5  ;;  %v1747_v30 = vpack.i.b16 %v1726_v25, %v1676_v33  ;;  %v1743_v21 = vshrl.u32 %v1725_v43, 16  ;;  %v2284_v41 = vshrl.u32 %v2212_v44, 16 }
 0x378   : > { %v3071_v0 = vsel %vm2831_vm1, %v2280_v32, 0  ;;  %v1742_v38 = vshrl.u32 %v1675_v63, 16  ;;  %v2307_v45 = vshrl.u32 %v7253_v15, 16  ;;  %v1749_v31 = vshrl.u32 %v1726_v25, 16  ;;  %v2300_v28 = vpop.permute.xlu1 %2299 }
 0x379   : > { %v2286_v18 = vpack.i.b16 %v2285_v57, %v2284_v41  ;;  %v2305_v48 = vpack.i.b16 %v2292_v47, %v7253_v15  ;;  %v2308_v49 = vshrl.u32 %v2292_v47, 16  ;;  %v1748_v29 = vshrl.u32 %v1676_v33, 16 }
 0x37a   : > { %v1744_v19 = vpack.i.b16 %v1743_v21, %v1742_v38  ;;  %v2315_v26 = vshrl.u32 %v2296_v50, 16  ;;  %v2313_v52 = vpack.i.b16 %v2300_v28, %v2296_v50  ;;  %v2316_v58 = vshrl.u32 %v2300_v28, 16 }
 0x37b   : > { %5583 = vmatmul.mubr.msk.bf16.vlgmr.msra.gmra.mrb[12].mxu0 %vm2831_vm1, %v1732_v8  ;;  %5601 = vmatmul.mubr.msk.bf16.vlgmr.msra.gmra.mrb[8].mxu1 %vm2831_vm1, %v1741_v9  ;;  %v3165_v42 = vsel %vm2831_vm1, %v2286_v18, 0  ;;  %v2309_v1 = vpack.i.b16 %v2308_v49, %v2307_v45  ;;  %v2335_v4 = vcombine.high %v2305_v48, %v7263_v23  ;;  %v1750_v17 = vpack.i.b16 %v1749_v31, %v1748_v29 }
 0x37c   : > { %5593 = vmatpush3.bf16.xpose.msra.mxu0 %v2977_v13  ;;  %5611 = vmatpush3.bf16.xpose.msra.mxu1 %v3118_v22  ;;  %v2342_v55 = vrot.slane %v2305_v48, %v7267_v27  ;;  %v2350_v15 = vcombine.high %v2313_v52, %v7263_v23  ;;  %v2357_v34 = vrot.slane %v2313_v52, %v7267_v27 }
 0x37d   : > { %5594 = vmatprep.mubr.msk.bf16.mxu0 %vm6579_vm0, %v6578_v2  ;;  %5604 = vmatprep.subr.bf16.mxu0 %v6578_v2  ;;  %v2401_v54 = vcombine.high %v2309_v1, %v7263_v23  ;;  %v2349_v40 = vrot.slane %v2335_v4, %v7267_v27  ;;  %v2408_v10 = vrot.slane %v2309_v1, %v7267_v27 }
 0x37e   : > { %5612 = vmatprep.mubr.msk.bf16.mxu1 %vm6579_vm0, %v6578_v2  ;;  %5622 = vmatprep.subr.bf16.mxu1 %v6578_v2  ;;  %v2317_v20 = vpack.i.b16 %v2316_v58, %v2315_v26  ;;  %v2364_v16 = vrot.slane %v2350_v15, %v7267_v27  ;;  %v2365_v56 = vcombine.low %v2342_v55, %v2357_v34 }
 0x37f   : > { %v2366_v62 = vcombine.high %v2342_v55, %v2357_v34  ;;  %v2415_v53 = vrot.slane %v2401_v54, %v7267_v27 }
 0x380   : > { %v2416_v51 = vcombine.high %v2317_v20, %v7263_v23  ;;  %v2423_v35 = vrot.slane %v2317_v20, %v7267_v27  ;;  %v2373_v60 = vrot.slane %v2365_v56, %v7277_v46  ;;  %v2381_v44 = vcombine.low %v2349_v40, %v2364_v16 }
 0x381   : > { %v2380_v43 = vrot.slane %v2366_v62, %v7277_v46  ;;  %v2382_v59 = vcombine.high %v2349_v40, %v2364_v16  ;;  %v7578_v62 = vld [vmem:[#allocation6] ss:$0 sm:$0xff] }
 0x382   : > { %v2430_v61 = vrot.slane %v2416_v51, %v7267_v27  ;;  %v2431_v63 = vcombine.low %v2408_v10, %v2423_v35  ;;  %v2432_v3 = vcombine.high %v2408_v10, %v2423_v35  ;;  %v2389_v8 = vrot.slane %v2381_v44, %v7277_v46 }
 0x383   : > { %5595 = vmatmul.mubr.msk.bf16.vlgmr.msra.gmra.mrb[16].mxu0 %vm2831_vm1, %v1738_v7  ;;  %5613 = vmatmul.mubr.msk.bf16.vlgmr.msra.gmra.mrb[12].mxu1 %vm2831_vm1, %v1747_v30  ;;  %v2396_v9 = vrot.slane %v2382_v59, %v7277_v46  ;;  %v2599_v13 = vcombine.low %v2373_v60, %v2380_v43  ;;  %v5385_v22 = vcombine.high %v2373_v60, %v2380_v43 }
 0x384   : > { %5605 = vmatpush3.bf16.xpose.msra.mxu0 %v3071_v0  ;;  %5606 = vmatprep.mubr.msk.bf16.mxu0 %vm6579_vm0, %v6578_v2  ;;  %v2439_v24 = vrot.slane %v2431_v63, %v7277_v46  ;;  %v2446_v11 = vrot.slane %v2432_v3, %v7277_v46  ;;  %v2447_v12 = vcombine.low %v2415_v53, %v2430_v61 }
 0x385   : > { %5616 = vmatprep.subr.bf16.mxu0 %v6578_v2  ;;  %5624 = vmatprep.mubr.msk.bf16.mxu1 %vm6579_vm0, %v6578_v2  ;;  %v2448_v25 = vcombine.high %v2415_v53, %v2430_v61  ;;  %v2606_v5 = vrot.slane %v2599_v13, %v7267_v27  ;;  %v2614_v32 = vrot.slane %v5385_v22, %v7267_v27 }
 0x386   : > { %v2615_v33 = vcombine.low %v2389_v8, %v2396_v9  ;;  %v5386_v7 = vcombine.high %v2389_v8, %v2396_v9  ;;  %v2455_v30 = vrot.slane %v2447_v12, %v7277_v46  ;;  %v2649_v57 = vcombine.low %v2439_v24, %v2446_v11 }
 0x387   : > { %v2462_v0 = vrot.slane %v2448_v25, %v7277_v46  ;;  %v5387_v21 = vcombine.high %v2439_v24, %v2446_v11  ;;  %v2631_v18 = vcombine.low %v2606_v5, %v2614_v32  ;;  %v5402_v24 = vld [vmem:[#allocation6 + $0x1] ss:$0 sm:$0xff] }
 0x388   : > { %v2622_v41 = vrot.slane %v2615_v33, %v7267_v27  ;;  %v2630_v38 = vrot.slane %v5386_v7, %v7267_v27 }
 0x389   : > { %v2665_v45 = vcombine.low %v2455_v30, %v2462_v0  ;;  %v5388_v31 = vcombine.high %v2455_v30, %v2462_v0  ;;  %v2638_v47 = vrot.slane %v2631_v18, %v7277_v46 }
 0x38a   : > { %v2639_v48 = vcombine.low %v2622_v41, %v2630_v38 }
 0x38b   : > { %5607 = vmatmul.mubr.msk.bf16.vlgmr.msra.gmra.mrb[20].mxu0 %vm2831_vm1, %v1744_v19  ;;  %v2656_v19 = vrot.slane %v2649_v57, %v7267_v27  ;;  %v2672_v49 = vrot.slane %v2665_v45, %v7267_v27  ;;  %v2680_v50 = vrot.slane %v5388_v31, %v7267_v27 }
 0x38c   : > { %5617 = vmatpush3.bf16.xpose.msra.mxu0 %v3165_v42  ;;  %5618 = vmatprep.mubr.msk.bf16.mxu0 %vm6579_vm0, %v6578_v2  ;;  %v2664_v42 = vrot.slane %v5387_v21, %v7267_v27  ;;  %v2646_v1 = vrot.slane %v2639_v48, %v7277_v46 }
 0x38d   : > { %5628 = vmatprep.subr.bf16.mxu0 %v6578_v2 }
 0x38e   : > { %v2681_v29 = vcombine.low %v2656_v19, %v2664_v42  ;;  %v2647_v26 = vcombine.low %v2638_v47, %v2646_v1  ;;  %v7568_v15 = vcombine.high %v2638_v47, %v2646_v1 }
 0x390   : > { %v2688_v4 = vrot.slane %v2681_v29, %v7277_v46  ;;  %v2803_v52 = vshrl.u32 %v2647_v26, 16  ;;  %v2811_v20 = vshrl.u32 %v7568_v15, 16 }
 0x393   : > { %5619 = vmatmul.mubr.msk.bf16.vlgmr.msra.gmra.mrb[24].mxu0 %vm2831_vm1, %v1750_v17  ;;  %v2689_v17 = vcombine.low %v2672_v49, %v2680_v50 }
 0x394   : > { %5630 = vmatprep.mubr.msk.bf16.mxu0 %vm6579_vm0, %v6578_v2 }
 0x395   : > { %v2696_v28 = vrot.slane %v2689_v17, %v7277_v46 }
 0x397   : > { %v2697_v55 = vcombine.low %v2688_v4, %v2696_v28  ;;  %v7570_v34 = vcombine.high %v2688_v4, %v2696_v28 }
 0x399   : > { %v2801_v54 = vpack.i.b16 %v2697_v55, %v2647_v26  ;;  %v2804_v58 = vshrl.u32 %v2697_v55, 16  ;;  %v2809_v10 = vpack.i.b16 %v7570_v34, %v7568_v15  ;;  %v2812_v16 = vshrl.u32 %v7570_v34, 16 }
 0x39b   : > { %5623 = vmatpush3.bf16.msra.mxu1 %v2801_v54  ;;  %v2805_v40 = vpack.i.b16 %v2804_v58, %v2803_v52  ;;  %v7576_v56 = vpack.i.b16 %v2812_v16, %v2811_v20 }
 0x39c   : > { %5634 = vmatprep.subr.bf16.mxu1 %v6578_v2 }
 0x39d   : > { %5629 = vmatpush3.bf16.msra.mxu0 %v2805_v40 }
 0x39e   : > { %5640 = vmatprep.subr.bf16.mxu0 %v6578_v2 }
 0x446   : > { %v2872_v53 = vpop.f32.mrb[8].mxu0  ;;  %v2966_v51 = vpop.f32.mrb[4].mxu1 }
 0x447   : > { %v7581_v35 = vadd.f32 %v7578_v62, %v2872_v53  ;;  %v7584_v60 = vadd.f32 %v7578_v62, %v2966_v51  ;;  %v5578_v43 = vpop.f32.mrb[9].mxu0  ;;  %v5590_v44 = vpop.f32.mrb[5].mxu1 }
 0x448   : > { %v2875_v59 = vpop.f32.mrb[10].mxu0  ;;  %v2969_v61 = vpop.f32.mrb[6].mxu1 }
 0x449   : > { %v7587_v63 = vadd.f32 %v7578_v62, %v2875_v59  ;;  %v7590_v3 = vadd.f32 %v7578_v62, %v2969_v61  ;;  %v5579_v8 = vpop.f32.mrb[11].mxu0  ;;  %v5591_v9 = vpop.f32.mrb[7].mxu1  ;;  %v3249_v13 = vsel %vm3236_vm2, %v7584_v60, -inf  ;;  %v3237_v22 = vsel %vm3236_vm2, %v7581_v35, -inf }
 0x44a   : > { %3250 = vmax.xlane.f32.xlu1 %v3249_v13  ;;  %3238 = vmax.xlane.f32.xlu0 %v3237_v22 }
 0x44b   : > { %v3252_v11 = vsel %vm3236_vm2, %v7590_v3, -inf  ;;  %v3240_v12 = vsel %vm3236_vm2, %v7587_v63, -inf }
 0x44e   : > { %3253 = vmax.xlane.f32.xlu0 %v3252_v11  ;;  %3241 = vmax.xlane.f32.xlu1 %v3240_v12  ;;  %v2919_v25 = vpop.f32.mrb[12].mxu0  ;;  %v3060_v5 = vpop.f32.mrb[8].mxu1 }
 0x44f   : > { %v7601_v32 = vadd.f32 %v7578_v62, %v2919_v25  ;;  %v5584_v33 = vpop.f32.mrb[13].mxu0  ;;  %v7603_v7 = vadd.f32 %v5402_v24, %v3060_v5  ;;  %v5602_v30 = vpop.f32.mrb[9].mxu1 }
 0x450   : > { %v2922_v0 = vpop.f32.mrb[14].mxu0  ;;  %v3063_v57 = vpop.f32.mrb[10].mxu1 }
 0x451   : > { %v5585_v21 = vpop.f32.mrb[15].mxu0  ;;  %v3243_v41 = vsel %vm3236_vm2, %v7601_v32, -inf  ;;  %v5603_v38 = vpop.f32.mrb[11].mxu1  ;;  %v3261_v18 = vsel %vm3236_vm2, %v7603_v7, -inf  ;;  %v7610_v19 = vadd.f32 %v7578_v62, %v2922_v0  ;;  %v7629_v43 = vadd.f32 %v5402_v24, %v3063_v57 }
 0x452   : > { %3244 = vmax.xlane.f32.xlu0 %v3243_v41 }
 0x453   : > { %v3246_v4 = vsel %vm3236_vm2, %v7610_v19, -inf  ;;  %v3264_v59 = vsel %vm3236_vm2, %v7629_v43, -inf }
 0x456   : > { %3262 = vmax.xlane.f32.xlu0 %v3261_v18  ;;  %v3013_v42 = vpop.f32.mrb[16].mxu0  ;;  %v3154_v45 = vpop.f32.mrb[12].mxu1 }
 0x457   : > { %v7613_v31 = vadd.f32 %v7578_v62, %v3013_v42  ;;  %v5596_v47 = vpop.f32.mrb[17].mxu0  ;;  %v7615_v48 = vadd.f32 %v5402_v24, %v3154_v45  ;;  %v5614_v49 = vpop.f32.mrb[13].mxu1 }
 0x458   : > { %v3016_v50 = vpop.f32.mrb[18].mxu0  ;;  %v3157_v29 = vpop.f32.mrb[14].mxu1 }
 0x459   : > { %v5597_v1 = vpop.f32.mrb[19].mxu0  ;;  %v7619_v17 = vadd.f32 %v5402_v24, %v3157_v29  ;;  %v5615_v26 = vpop.f32.mrb[15].mxu1  ;;  %v7632_v44 = vadd.f32 %v7578_v62, %v3016_v50  ;;  %v3255_v62 = vsel %vm3236_vm2, %v7613_v31, -inf  ;;  %v3273_v11 = vsel %vm3236_vm2, %v7615_v48, -inf }
 0x45a   : > { %3247 = vmax.xlane.f32.xlu0 %v3246_v4 }
 0x45b   : > { %v3258_v8 = vsel %vm3236_vm2, %v7632_v44, -inf  ;;  %v3276_v25 = vsel %vm3236_vm2, %v7619_v17, -inf }
 0x45e   : > { %v3107_v28 = vpop.f32.mrb[20].mxu0 }
 0x45f   : > { %2297 = vrot.lane.b32.xlu1 %v7251_v14, %s6577_s27  ;;  %v5608_v55 = vpop.f32.mrb[21].mxu0  ;;  %v7642_v13 = vadd.f32 %v5402_v24, %v3107_v28 }
 0x460   : > { %v3110_v52 = vpop.f32.mrb[22].mxu0 }
 0x461   : > { %v5609_v54 = vpop.f32.mrb[23].mxu0  ;;  %v7636_v61 = vadd.f32 %v5402_v24, %v3110_v52  ;;  %v3267_v22 = vsel %vm3236_vm2, %v7642_v13, -inf }
 0x463   : > { %v3270_v9 = vsel %vm3236_vm2, %v7636_v61, -inf }
 0x466   : > { %v3201_v58 = vpop.f32.mrb[24].mxu0 }
 0x467   : > { %v7623_v40 = vadd.f32 %v5402_v24, %v3201_v58  ;;  %v5620_v20 = vpop.f32.mrb[25].mxu0 }
 0x468   : > { %v3204_v16 = vpop.f32.mrb[26].mxu0 }
 0x469   : > { %v7625_v53 = vadd.f32 %v5402_v24, %v3204_v16  ;;  %v5621_v51 = vpop.f32.mrb[27].mxu0  ;;  %v3279_v12 = vsel %vm3236_vm2, %v7623_v40, -inf }
 0x46b   : > { %v3282_v24 = vsel %vm3236_vm2, %v7625_v53, -inf }
 0x470   : > { %2293 = vrot.lane.b32.xlu0 %v7251_v14, %s6576_s26 }
 0x483   : > { %3265 = vmax.xlane.f32.xlu1 %v3264_v59 }
 0x487   : > { %3259 = vmax.xlane.f32.xlu1 %v3258_v8 }
 0x48b   : > { %3271 = vmax.xlane.f32.xlu1 %v3270_v9 }
 0x48f   : > { %3256 = vmax.xlane.f32.xlu0 %v3255_v62 }
 0x493   : > { %3268 = vmax.xlane.f32.xlu0 %v3267_v22 }
 0x497   : > { %3274 = vmax.xlane.f32.xlu0 %v3273_v11 }
 0x49b   : > { %3280 = vmax.xlane.f32.xlu0 %v3279_v12 }
 0x49c   : > { %2301 = vrot.lane.b32.xlu1 %v7251_v14, %s6575_s24 }
 0x49f   : > { %3283 = vmax.xlane.f32.xlu0 %v3282_v24 }
 0x4c0   : > { %3277 = vmax.xlane.f32.xlu1 %v3276_v25 }
 0x4d7   : > { %v3251_v5 = vpop.xlane.xlu1 %3250  ;;  %v3239_v33 = vpop.xlane.xlu0 %3238 }
 0x4d8   : > { %v3289_v30 = vsub.f32 %v7584_v60, %v3251_v5  ;;  %v3285_v0 = vsub.f32 %v7581_v35, %v3239_v33  ;;  %v2323_v5 = vshrl.u32 %v7251_v14, 16 }
 0x4da   : > { %v3301_v57 = vmul.f32 1.442695, %v3285_v0  ;;  %v3309_v21 = vmul.f32 1.442695, %v3289_v30 }
 0x4db   : > { %v3254_v41 = vpop.xlane.xlu0 %3253  ;;  %v3242_v38 = vpop.xlane.xlu1 %3241 }
 0x4dc   : > { %v3290_v18 = vsub.f32 %v7590_v3, %v3254_v41  ;;  %v3286_v42 = vsub.f32 %v7587_v63, %v3242_v38  ;;  %5962 = vpow2.f32 %v3301_v57 }
 0x4dd   : > { %5964 = vpow2.f32 %v3309_v21 }
 0x4de   : > { %v3303_v45 = vmul.f32 1.442695, %v3286_v42  ;;  %v3311_v47 = vmul.f32 1.442695, %v3290_v18 }
 0x4df   : > { %v3245_v49 = vpop.xlane.xlu0 %3244 }
 0x4e0   : > { %v3287_v50 = vsub.f32 %v7601_v32, %v3245_v49  ;;  %5966 = vpow2.f32 %v3303_v45 }
 0x4e1   : > { %5968 = vpow2.f32 %v3311_v47 }
 0x4e2   : > { %v3305_v29 = vmul.f32 1.442695, %v3287_v50 }
 0x4e3   : > { %v3263_v60 = vpop.xlane.xlu0 %3262 }
 0x4e4   : > { %5970 = vpow2.f32 %v3305_v29  ;;  %v3293_v35 = vsub.f32 %v7603_v7, %v3263_v60 }
 0x4e6   : > { %v3317_v1 = vmul.f32 1.442695, %v3293_v35  ;;  %v5963_v4 = vpop.eup %5962 }
 0x4e7   : > { %v3248_v26 = vpop.xlane.xlu0 %3247  ;;  %v3333_v3 = vsel %vm3236_vm2, %v5963_v4, 0.0  ;;  %v5965_v28 = vpop.eup %5964 }
 0x4e8   : > { %5972 = vpow2.f32 %v3317_v1  ;;  %v3288_v63 = vsub.f32 %v7610_v19, %v3248_v26  ;;  %3334 = vadd.xlane.f32.xlu1 %v3333_v3  ;;  %v3345_v32 = vsel %vm3236_vm2, %v5965_v28, 0.0 }
 0x4ea   : > { %v3307_v55 = vmul.f32 1.442695, %v3288_v63  ;;  %v5967_v52 = vpop.eup %5966 }
 0x4eb   : > { %v3336_v54 = vsel %vm3236_vm2, %v5967_v52, 0.0  ;;  %v5969_v58 = vpop.eup %5968  ;;  %v3381_v7 = vpack.c.bf16 %v5967_v52, %v5963_v4  ;;  %v2294_v22 = vpop.permute.xlu0 %2293 }
 0x4ec   : > { %5974 = vpow2.f32 %v3307_v55  ;;  %3346 = vadd.xlane.f32.xlu1 %v3345_v32  ;;  %3337 = vadd.xlane.f32.xlu0 %v3336_v54  ;;  %v3348_v16 = vsel %vm3236_vm2, %v5969_v58, 0.0  ;;  %v3383_v8 = vpack.c.bf16 %v5969_v58, %v5965_v28  ;;  %v2324_v24 = vshrl.u32 %v2294_v22, 16 }
 0x4ed   : > { %5625 = vmatmul.mubr.msk.bf16.vlgmr.msra.gmra.mrb[16].mxu1 %vm3236_vm2, %v3381_v7 }
 0x4ee   : > { %v5971_v20 = vpop.eup %5970  ;;  %5635 = vmatpush3.bf16.msra.mxu1 %v2809_v10  ;;  %5636 = vmatprep.mubr.msk.bf16.mxu1 %vm6579_vm0, %v6578_v2  ;;  %v2298_v10 = vpop.permute.xlu1 %2297  ;;  %v2325_v30 = vpack.i.b16 %v2324_v24, %v2323_v5 }
 0x4ef   : > { %v3339_v19 = vsel %vm3236_vm2, %v5971_v20, 0.0  ;;  %5646 = vmatprep.subr.bf16.mxu1 %v6578_v2 }
 0x4f0   : > { %3340 = vadd.xlane.f32.xlu1 %v3339_v19  ;;  %3349 = vadd.xlane.f32.xlu0 %v3348_v16  ;;  %v2533_v41 = vcombine.high %v2325_v30, %v7263_v23  ;;  %v2540_v4 = vrot.slane %v2325_v30, %v7267_v27 }
 0x4f2   : > { %v7676_v51 = vpop.eup %5972 }
 0x4f3   : > { %v3357_v59 = vsel %vm3236_vm2, %v7676_v51, 0.0 }
 0x4f4   : > { %3358 = vadd.xlane.f32.xlu1 %v3357_v59 }
 0x4f5   : > { %5637 = vmatmul.mubr.msk.bf16.vlgmr.msra.gmra.mrb[20].mxu1 %vm3236_vm2, %v3383_v8 }
 0x4f6   : > { %v5975_v9 = vpop.eup %5974  ;;  %5648 = vmatprep.mubr.msk.bf16.mxu1 %vm6579_vm0, %v6578_v2 }
 0x4f7   : > { %v3342_v15 = vsel %vm3236_vm2, %v5975_v9, 0.0  ;;  %v3382_v34 = vpack.c.bf16 %v5975_v9, %v5971_v20 }
 0x4f8   : > { %3343 = vadd.xlane.f32.xlu0 %v3342_v15 }
 0x4f9   : > { %5631 = vmatmul.mubr.msk.bf16.vlgmr.msra.gmra.mrb[28].mxu0 %vm3236_vm2, %v3382_v34 }
 0x4fa   : > { %5641 = vmatpush3.bf16.msra.mxu0 %v7576_v56  ;;  %5642 = vmatprep.mubr.msk.bf16.mxu0 %vm6579_vm0, %v6578_v2  ;;  %v2321_v56 = vpack.i.b16 %v2294_v22, %v7251_v14 }
 0x4fb   : > { %5652 = vmatprep.subr.bf16.mxu0 %v6578_v2 }
 0x4fc   : > { %v2467_v21 = vcombine.high %v2321_v56, %v7263_v23  ;;  %v2474_v49 = vrot.slane %v2321_v56, %v7267_v27 }
 0x4fe   : > { %v2481_v1 = vrot.slane %v2467_v21, %v7267_v27 }
 0x510   : > { %v3266_v62 = vpop.xlane.xlu1 %3265 }
 0x511   : > { %v3294_v11 = vsub.f32 %v7629_v43, %v3266_v62  ;;  %v2331_v43 = vshrl.u32 %v2298_v10, 16 }
 0x513   : > { %v3319_v12 = vmul.f32 1.442695, %v3294_v11 }
 0x514   : > { %v3260_v25 = vpop.xlane.xlu1 %3259 }
 0x515   : > { %5976 = vpow2.f32 %v3319_v12  ;;  %v3292_v33 = vsub.f32 %v7632_v44, %v3260_v25 }
 0x517   : > { %v3315_v57 = vmul.f32 1.442695, %v3292_v33 }
 0x518   : > { %v3272_v0 = vpop.xlane.xlu1 %3271 }
 0x519   : > { %5978 = vpow2.f32 %v3315_v57  ;;  %v3296_v44 = vsub.f32 %v7636_v61, %v3272_v0 }
 0x51b   : > { %v3323_v55 = vmul.f32 1.442695, %v3296_v44 }
 0x51c   : > { %v3257_v38 = vpop.xlane.xlu0 %3256  ;;  %v2302_v18 = vpop.permute.xlu1 %2301 }
 0x51d   : > { %v3291_v42 = vsub.f32 %v7613_v31, %v3257_v38  ;;  %v2329_v45 = vpack.i.b16 %v2302_v18, %v2298_v10  ;;  %v2332_v47 = vshrl.u32 %v2302_v18, 16  ;;  %v2547_v31 = vrot.slane %v2533_v41, %v7267_v27 }
 0x51f   : > { %v7699_v14 = vpop.eup %5976  ;;  %v3313_v50 = vmul.f32 1.442695, %v3291_v42  ;;  %v2333_v29 = vpack.i.b16 %v2332_v47, %v2331_v43  ;;  %v2482_v60 = vcombine.high %v2329_v45, %v7263_v23  ;;  %v2489_v35 = vrot.slane %v2329_v45, %v7267_v27 }
 0x520   : > { %v3269_v26 = vpop.xlane.xlu0 %3268  ;;  %v3360_v63 = vsel %vm3236_vm2, %v7699_v14, 0.0 }
 0x521   : > { %5980 = vpow2.f32 %v3313_v50  ;;  %v2496_v61 = vrot.slane %v2482_v60, %v7267_v27  ;;  %v2497_v3 = vcombine.low %v2474_v49, %v2489_v35  ;;  %v2498_v28 = vcombine.high %v2474_v49, %v2489_v35  ;;  %3361 = vadd.xlane.f32.xlu0 %v3360_v63 }
 0x522   : > { %v2548_v52 = vcombine.high %v2333_v29, %v7263_v23  ;;  %v2555_v32 = vrot.slane %v2333_v29, %v7267_v27  ;;  %v3295_v54 = vsub.f32 %v7642_v13, %v3269_v26 }
 0x523   : > { %v2505_v58 = vrot.slane %v2497_v3, %v7277_v46  ;;  %v2512_v7 = vrot.slane %v2498_v28, %v7277_v46  ;;  %v2513_v20 = vcombine.low %v2481_v1, %v2496_v61  ;;  %v2514_v19 = vcombine.high %v2481_v1, %v2496_v61  ;;  %v5979_v56 = vpop.eup %5978 }
 0x524   : > { %v2562_v16 = vrot.slane %v2548_v52, %v7267_v27  ;;  %v2563_v59 = vcombine.low %v2540_v4, %v2555_v32  ;;  %v2564_v8 = vcombine.high %v2540_v4, %v2555_v32  ;;  %v3321_v9 = vmul.f32 1.442695, %v3295_v54  ;;  %v3275_v15 = vpop.xlane.xlu0 %3274 }
 0x525   : > { %v2521_v34 = vrot.slane %v2513_v20, %v7277_v46  ;;  %v2528_v23 = vrot.slane %v2514_v19, %v7277_v46  ;;  %v2699_v10 = vcombine.low %v2505_v58, %v2512_v7  ;;  %v5389_v62 = vcombine.high %v2505_v58, %v2512_v7 }
 0x526   : > { %v2571_v13 = vrot.slane %v2563_v59, %v7277_v46  ;;  %v2578_v22 = vrot.slane %v2564_v8, %v7277_v46  ;;  %v2579_v11 = vcombine.low %v2547_v31, %v2562_v16  ;;  %v2580_v12 = vcombine.high %v2547_v31, %v2562_v16 }
 0x527   : > { %v2706_v24 = vrot.slane %v2699_v10, %v7267_v27  ;;  %v2714_v25 = vrot.slane %v5389_v62, %v7267_v27  ;;  %v2715_v5 = vcombine.low %v2521_v34, %v2528_v23  ;;  %v5390_v33 = vcombine.high %v2521_v34, %v2528_v23 }
 0x528   : > { %v2587_v30 = vrot.slane %v2579_v11, %v7277_v46  ;;  %v2594_v0 = vrot.slane %v2580_v12, %v7277_v46  ;;  %v2749_v57 = vcombine.low %v2571_v13, %v2578_v22  ;;  %v5391_v21 = vcombine.high %v2571_v13, %v2578_v22  ;;  %v3281_v41 = vpop.xlane.xlu0 %3280 }
 0x529   : > { %v2722_v38 = vrot.slane %v2715_v5, %v7267_v27  ;;  %v2730_v18 = vrot.slane %v5390_v33, %v7267_v27  ;;  %5982 = vpow2.f32 %v3321_v9  ;;  %v3297_v43 = vsub.f32 %v7615_v48, %v3275_v15 }
 0x52a   : > { %v2756_v42 = vrot.slane %v2749_v57, %v7267_v27  ;;  %v2764_v45 = vrot.slane %v5391_v21, %v7267_v27  ;;  %v2765_v47 = vcombine.low %v2587_v30, %v2594_v0  ;;  %v5392_v49 = vcombine.high %v2587_v30, %v2594_v0 }
 0x52b   : > { %v5981_v44 = vpop.eup %5980  ;;  %v3325_v50 = vmul.f32 1.442695, %v3297_v43  ;;  %v3354_v29 = vsel %vm3236_vm2, %v5979_v56, 0.0  ;;  %v3299_v60 = vsub.f32 %v7623_v40, %v3281_v41  ;;  %v2731_v35 = vcombine.low %v2706_v24, %v2714_v25 }
 0x52c   : > { %3355 = vadd.xlane.f32.xlu0 %v3354_v29  ;;  %v3284_v1 = vpop.xlane.xlu0 %3283  ;;  %v3351_v4 = vsel %vm3236_vm2, %v5981_v44, 0.0  ;;  %v3384_v31 = vpack.c.bf16 %v5979_v56, %v5981_v44  ;;  %v2739_v26 = vcombine.low %v2722_v38, %v2730_v18  ;;  %v2772_v48 = vrot.slane %v2765_v47, %v7267_v27 }
 0x52d   : > { %5984 = vpow2.f32 %v3325_v50  ;;  %3352 = vadd.xlane.f32.xlu1 %v3351_v4  ;;  %v3300_v63 = vsub.f32 %v7625_v53, %v3284_v1  ;;  %v2780_v3 = vrot.slane %v5392_v49, %v7267_v27  ;;  %v2781_v40 = vcombine.low %v2756_v42, %v2764_v45 }
 0x52e   : > { %5643 = vmatmul.mubr.msk.bf16.vlgmr.msra.gmra.mrb[32].mxu0 %vm3236_vm2, %v3384_v31  ;;  %v2746_v61 = vrot.slane %v2739_v26, %v7277_v46  ;;  %v3329_v28 = vmul.f32 1.442695, %v3299_v60  ;;  %5986 = vpow2.f32 %v3323_v55  ;;  %v2738_v52 = vrot.slane %v2731_v35, %v7277_v46 }
 0x52f   : > { %5654 = vmatprep.mubr.msk.bf16.mxu0 %vm6579_vm0, %v6578_v2  ;;  %v2789_v32 = vcombine.low %v2772_v48, %v2780_v3  ;;  %v3331_v54 = vmul.f32 1.442695, %v3300_v63  ;;  %v2788_v7 = vrot.slane %v2781_v40, %v7277_v46  ;;  %v3385_v62 = vpack.c.bf16 %v7699_v14, %v7676_v51 }
 0x530   : > { %v2747_v58 = vcombine.low %v2738_v52, %v2746_v61  ;;  %5988 = vpow2.f32 %v3329_v28  ;;  %v2748_v59 = vcombine.high %v2738_v52, %v2746_v61 }
 0x531   : > { %v2796_v53 = vrot.slane %v2789_v32, %v7277_v46  ;;  %5990 = vpow2.f32 %v3331_v54 }
 0x532   : > { %v2819_v9 = vshrl.u32 %v2747_v58, 16  ;;  %v2827_v11 = vshrl.u32 %v2748_v59, 16 }
 0x533   : > { %v5983_v20 = vpop.eup %5982  ;;  %v2797_v19 = vcombine.low %v2788_v7, %v2796_v53  ;;  %v2798_v16 = vcombine.high %v2788_v7, %v2796_v53 }
 0x534   : > { %v3363_v24 = vsel %vm3236_vm2, %v5983_v20, 0.0 }
 0x535   : > { %v2817_v8 = vpack.i.b16 %v2797_v19, %v2747_v58  ;;  %v2820_v15 = vshrl.u32 %v2797_v19, 16  ;;  %v2828_v10 = vshrl.u32 %v2798_v16, 16  ;;  %v2825_v22 = vpack.i.b16 %v2798_v16, %v2748_v59 }
 0x537   : > { %v5985_v34 = vpop.eup %5984  ;;  %5647 = vmatpush3.bf16.msra.mxu1 %v2817_v8  ;;  %v2821_v23 = vpack.i.b16 %v2820_v15, %v2819_v9  ;;  %v2829_v25 = vpack.i.b16 %v2828_v10, %v2827_v11 }
 0x538   : > { %v3369_v55 = vsel %vm3236_vm2, %v5985_v34, 0.0  ;;  %5658 = vmatprep.subr.bf16.mxu1 %v6578_v2  ;;  %v5987_v13 = vpop.eup %5986 }
 0x539   : > { %3370 = vadd.xlane.f32.xlu1 %v3369_v55  ;;  %5653 = vmatpush3.bf16.msra.mxu0 %v2821_v23  ;;  %v3386_v12 = vpack.c.bf16 %v5987_v13, %v5983_v20 }
 0x53a   : > { %5649 = vmatmul.mubr.msk.bf16.vlgmr.msra.gmra.mrb[24].mxu1 %vm3236_vm2, %v3385_v62  ;;  %5664 = vmatprep.subr.bf16.mxu0 %v6578_v2  ;;  %v5989_v5 = vpop.eup %5988 }
 0x53b   : > { %5659 = vmatpush3.bf16.msra.mxu1 %v2825_v22  ;;  %5660 = vmatprep.mubr.msk.bf16.mxu1 %vm6579_vm0, %v6578_v2  ;;  %v5991_v51 = vpop.eup %5990  ;;  %v3375_v14 = vsel %vm3236_vm2, %v5989_v5, 0.0 }
 0x53c   : > { %5655 = vmatmul.mubr.msk.bf16.vlgmr.msra.gmra.mrb[36].mxu0 %vm3236_vm2, %v3386_v12  ;;  %v3388_v33 = vpack.c.bf16 %v5991_v51, %v5989_v5  ;;  %v3378_v38 = vsel %vm3236_vm2, %v5991_v51, 0.0 }
 0x53d   : > { %3364 = vadd.xlane.f32.xlu1 %v3363_v24  ;;  %5665 = vmatpush3.bf16.msra.mxu0 %v2829_v25 }
 0x53e   : > { %5666 = vmatprep.mubr.msk.bf16.mxu0 %vm6579_vm0, %v6578_v2  ;;  %v3366_v2 = vsel %vm3236_vm2, %v5987_v13, 0.0 }
 0x541   : > { %3376 = vadd.xlane.f32.xlu1 %v3375_v14 }
 0x544   : > { %5667 = vmatmul.mubr.msk.bf16.vlgmr.msra.gmra.mrb[40].mxu0 %vm3236_vm2, %v3388_v33 }
 0x545   : > { %4714 = vmatprep.mubr.bf16.mxu0 %v6574_v6 }
 0x54d   : > { %v3278_v56 = vpop.xlane.xlu1 %3277 }
 0x54e   : > { %v3298_v30 = vsub.f32 %v7619_v17, %v3278_v56 }
 0x550   : > { %v3327_v0 = vmul.f32 1.442695, %v3298_v30 }
 0x552   : > { %5992 = vpow2.f32 %v3327_v0 }
 0x55c   : > { %v5993_v57 = vpop.eup %5992 }
 0x55d   : > { %v3372_v21 = vsel %vm3236_vm2, %v5993_v57, 0.0  ;;  %v3387_v41 = vpack.c.bf16 %v5993_v57, %v5985_v34 }
 0x55e   : > { %3373 = vadd.xlane.f32.xlu0 %v3372_v21 }
 0x55f   : > { %5661 = vmatmul.mubr.msk.bf16.vlgmr.msra.gmra.mrb[28].mxu1 %vm3236_vm2, %v3387_v41 }
 0x562   : > { %3367 = vadd.xlane.f32.xlu0 %v3366_v2 }
 0x566   : > { %3379 = vadd.xlane.f32.xlu0 %v3378_v38 }
 0x575   : > { %v3335_v18 = vpop.xlane.xlu1 %3334 }
 0x576   : > { %5994 = vrcp.f32 %v3335_v18 }
 0x579   : > { %v3338_v43 = vpop.xlane.xlu0 %3337  ;;  %v3347_v42 = vpop.xlane.xlu1 %3346 }
 0x57a   : > { %5996 = vrcp.f32 %v3347_v42 }
 0x57b   : > { %5998 = vrcp.f32 %v3338_v43 }
 0x57d   : > { %v3350_v17 = vpop.xlane.xlu0 %3349  ;;  %v3341_v20 = vpop.xlane.xlu1 %3340 }
 0x57e   : > { %6000 = vrcp.f32 %v3350_v17 }
 0x57f   : > { %6002 = vrcp.f32 %v3341_v20 }
 0x580   : > { %v5995_v50 = vpop.eup %5994 }
 0x581   : > { %v7761_v16 = vpop.xlane.xlu1 %3358 }
 0x584   : > { %v5997_v29 = vpop.eup %5996 }
 0x585   : > { %v5999_v35 = vpop.eup %5998  ;;  %v3344_v19 = vpop.xlane.xlu0 %3343 }
 0x588   : > { %v6001_v26 = vpop.eup %6000 }
 0x589   : > { %v6003_v55 = vpop.eup %6002 }
 0x5ae   : > { %v7763_v59 = vpop.xlane.xlu0 %3361 }
 0x5b9   : > { %v3356_v9 = vpop.xlane.xlu0 %3355 }
 0x5ba   : > { %v3353_v8 = vpop.xlane.xlu1 %3352 }
 0x5bb   : > { %6004 = vrcp.f32 %v3353_v8 }
 0x5bc   : > { %6006 = vrcp.f32 %v3344_v19 }
 0x5bd   : > { %6008 = vrcp.f32 %v3356_v9 }
 0x5c0   : > { %v3426_v45 = vpop.f32.mrb[16].mxu1 }
 0x5c1   : > { %v5626_v47 = vpop.f32.mrb[17].mxu1  ;;  %v3757_v1 = vmul.f32 %v5995_v50, %v3426_v45 }
 0x5c2   : > { %v3429_v49 = vpop.f32.mrb[18].mxu1 }
 0x5c3   : > { %v5627_v44 = vpop.f32.mrb[19].mxu1  ;;  %v3758_v61 = vmul.f32 %v5999_v35, %v3429_v49 }
 0x5c5   : > { %v6005_v10 = vpop.eup %6004 }
 0x5c6   : > { %v7765_v15 = vpop.xlane.xlu1 %3370  ;;  %v6007_v13 = vpop.eup %6006 }
 0x5c7   : > { %v6009_v24 = vpop.eup %6008 }
 0x5c8   : > { %v3514_v60 = vpop.f32.mrb[20].mxu1 }
 0x5c9   : > { %v3761_v4 = vmul.f32 %v5997_v29, %v3514_v60  ;;  %v5638_v31 = vpop.f32.mrb[21].mxu1 }
 0x5ca   : > { %v3517_v48 = vpop.f32.mrb[22].mxu1  ;;  %v3365_v34 = vpop.xlane.xlu1 %3364 }
 0x5cb   : > { %v3773_v3 = vcombine.low %v3757_v1, %v3761_v4  ;;  %v3774_v40 = vcombine.high %v3757_v1, %v3761_v4  ;;  %v3762_v28 = vmul.f32 %v6001_v26, %v3517_v48  ;;  %v5639_v52 = vpop.f32.mrb[23].mxu1  ;;  %6010 = vrcp.f32 %v3365_v34 }
 0x5cc   : > { %v3470_v63 = vpop.f32.mrb[28].mxu0 }
 0x5cd   : > { %v5632_v32 = vpop.f32.mrb[29].mxu0  ;;  %v3841_v58 = vcombine.low %v3758_v61, %v3762_v28  ;;  %v3842_v7 = vcombine.high %v3758_v61, %v3762_v28  ;;  %v3759_v22 = vmul.f32 %v6003_v55, %v3470_v63  ;;  %v3781_v0 = vrot.slane %v3773_v3, %v7267_v27 }
 0x5ce   : > { %v3473_v54 = vpop.f32.mrb[30].mxu0  ;;  %v3377_v5 = vpop.xlane.xlu1 %3376  ;;  %v3788_v57 = vrot.slane %v3774_v40, %v7267_v27 }
 0x5cf   : > { %v5633_v53 = vpop.f32.mrb[31].mxu0  ;;  %v3760_v51 = vmul.f32 %v6007_v13, %v3473_v54  ;;  %v3849_v43 = vrot.slane %v3841_v58, %v7267_v27  ;;  %6012 = vrcp.f32 %v3377_v5  ;;  %v3856_v49 = vrot.slane %v3842_v7, %v7267_v27 }
 0x5d5   : > { %v6011_v9 = vpop.eup %6010 }
 0x5d9   : > { %v6013_v5 = vpop.eup %6012 }
 0x5eb   : > { %v7767_v23 = vpop.xlane.xlu0 %3373 }
 0x5ef   : > { %v3368_v21 = vpop.xlane.xlu0 %3367 }
 0x5f0   : > { %6014 = vrcp.f32 %v3368_v21 }
 0x5f3   : > { %v3380_v28 = vpop.xlane.xlu0 %3379 }
 0x5f4   : > { %6016 = vrcp.f32 %v3380_v28 }
 0x5f5   : > { %6018 = vrcp.f32 %v7761_v16 }
 0x5f6   : > { %6020 = vrcp.f32 %v7765_v15 }
 0x5f7   : > { %6022 = vrcp.f32 %v7763_v59 }
 0x5f8   : > { %6024 = vrcp.f32 %v7767_v23 }
 0x601   : > { %v3558_v62 = vpop.f32.mrb[32].mxu0 }
 0x602   : > { %v3763_v11 = vmul.f32 %v6005_v10, %v3558_v62  ;;  %v5644_v12 = vpop.f32.mrb[33].mxu0 }
 0x603   : > { %v3561_v25 = vpop.f32.mrb[34].mxu0 }
 0x604   : > { %v3789_v14 = vcombine.low %v3759_v22, %v3763_v11  ;;  %v3790_v33 = vcombine.high %v3759_v22, %v3763_v11  ;;  %v3764_v56 = vmul.f32 %v6009_v24, %v3561_v25  ;;  %v5645_v30 = vpop.f32.mrb[35].mxu0 }
 0x606   : > { %v3797_v41 = vrot.slane %v3789_v14, %v7267_v27  ;;  %v3804_v2 = vrot.slane %v3790_v33, %v7267_v27  ;;  %v3857_v38 = vcombine.low %v3760_v51, %v3764_v56  ;;  %v3858_v18 = vcombine.high %v3760_v51, %v3764_v56 }
 0x608   : > { %v3805_v42 = vcombine.low %v3781_v0, %v3797_v41  ;;  %v3806_v17 = vcombine.high %v3781_v0, %v3797_v41  ;;  %v3821_v45 = vcombine.low %v3788_v57, %v3804_v2  ;;  %v3822_v47 = vcombine.high %v3788_v57, %v3804_v2  ;;  %v6015_v2 = vpop.eup %6014 }
 0x609   : > { %v3865_v44 = vrot.slane %v3857_v38, %v7267_v27  ;;  %v3872_v50 = vrot.slane %v3858_v18, %v7267_v27 }
 0x60a   : > { %v3813_v29 = vrot.slane %v3805_v42, %v7277_v46  ;;  %v3820_v60 = vrot.slane %v3806_v17, %v7277_v46  ;;  %v3829_v35 = vrot.slane %v3821_v45, %v7277_v46  ;;  %v3836_v1 = vrot.slane %v3822_v47, %v7277_v46 }
 0x60b   : > { %v3873_v4 = vcombine.low %v3849_v43, %v3865_v44  ;;  %v3874_v31 = vcombine.high %v3849_v43, %v3865_v44  ;;  %v3889_v26 = vcombine.low %v3856_v49, %v3872_v50  ;;  %v3890_v48 = vcombine.high %v3856_v49, %v3872_v50 }
 0x60c   : > { %v4045_v63 = vcombine.low %v3813_v29, %v3820_v60  ;;  %v5411_v61 = vcombine.high %v3813_v29, %v3820_v60  ;;  %v4061_v3 = vcombine.low %v3829_v35, %v3836_v1  ;;  %v5412_v40 = vcombine.high %v3829_v35, %v3836_v1  ;;  %v5914_v60 = vld [vmem:[%s7162_s1] sm:$0xff]   ;;  %v5915_v35 = vld [vmem:[%s7162_s1 + $0x8] sm:$0xff]  }
 0x60d   : > { %v3881_v52 = vrot.slane %v3873_v4, %v7277_v46  ;;  %v3888_v32 = vrot.slane %v3874_v31, %v7277_v46  ;;  %v3897_v54 = vrot.slane %v3889_v26, %v7277_v46  ;;  %v3904_v58 = vrot.slane %v3890_v48, %v7277_v46  ;;  %v7785_v7 = vpop.f32.mrb[24].mxu1  ;;  %5670 = vmatprep.subr.bf16.mxu1 %v5914_v60 }
 0x60e   : > { %v4052_v53 = vrot.slane %v4045_v63, %v7267_v27  ;;  %v4060_v20 = vrot.slane %v5411_v61, %v7267_v27  ;;  %v4068_v19 = vrot.slane %v4061_v3, %v7267_v27  ;;  %v4076_v8 = vrot.slane %v5412_v40, %v7267_v27  ;;  %v5650_v13 = vpop.f32.mrb[25].mxu1  ;;  %5671 = vmatpush3.bf16.msra.mxu1 %v5914_v60 }
 0x60f   : > { %v4113_v34 = vcombine.low %v3881_v52, %v3888_v32  ;;  %v5413_v55 = vcombine.high %v3881_v52, %v3888_v32  ;;  %v4129_v10 = vcombine.low %v3897_v54, %v3904_v58  ;;  %v5414_v62 = vcombine.high %v3897_v54, %v3904_v58  ;;  %v7791_v22 = vpop.f32.mrb[26].mxu1  ;;  %v3646_v11 = vpop.f32.mrb[36].mxu0  ;;  %5672 = vmatprep.subr.bf16.mxu1 %v5915_v35  ;;  %v5916_v58 = vld [vmem:[%s7162_s1 + $0x10] sm:$0xff]  }
 0x610   : > { %v4077_v12 = vcombine.low %v4052_v53, %v4060_v20  ;;  %v4093_v24 = vcombine.low %v4068_v19, %v4076_v8  ;;  %v4078_v25 = vcombine.high %v4052_v53, %v4060_v20  ;;  %v5651_v51 = vpop.f32.mrb[27].mxu1  ;;  %v5656_v14 = vpop.f32.mrb[37].mxu0  ;;  %v4094_v42 = vcombine.high %v4068_v19, %v4076_v8 }
 0x611   : > { %v4120_v33 = vrot.slane %v4113_v34, %v7267_v27  ;;  %v4128_v56 = vrot.slane %v5413_v55, %v7267_v27  ;;  %v3649_v30 = vpop.f32.mrb[38].mxu0  ;;  %v4136_v21 = vrot.slane %v4129_v10, %v7267_v27  ;;  %v4144_v41 = vrot.slane %v5414_v62, %v7267_v27  ;;  %v6017_v53 = vpop.eup %6016 }
 0x612   : > { %v7796_v0 = vrot.slane %v4077_v12, %v7277_v46  ;;  %v7799_v57 = vrot.slane %v4093_v24, %v7277_v46  ;;  %v5657_v38 = vpop.f32.mrb[39].mxu0  ;;  %v4092_v43 = vrot.slane %v4078_v25, %v7277_v46  ;;  %v4108_v50 = vrot.slane %v4094_v42, %v7277_v46  ;;  %5673 = vmatpush3.bf16.msra.mxu1 %v5915_v35  ;;  %v5917_v24 = vld [vmem:[%s7162_s1 + $0x18] sm:$0xff]   ;;  %v5918_v25 = vld [vmem:[%s7162_s1 + $0x20] sm:$0xff]   ;;  %v6019_v51 = vpop.eup %6018 }
 0x613   : > { %v4145_v18 = vcombine.low %v4120_v33, %v4128_v56  ;;  %v4161_v47 = vcombine.low %v4136_v21, %v4144_v41  ;;  %v4146_v49 = vcombine.high %v4120_v33, %v4128_v56  ;;  %v4162_v29 = vcombine.high %v4136_v21, %v4144_v41  ;;  %5674 = vmatprep.subr.bf16.mxu1 %v5916_v58  ;;  %v6021_v14 = vpop.eup %6020 }
 0x614   : > { %v4109_v17 = vcombine.low %v7796_v0, %v7799_v57  ;;  %v4110_v45 = vcombine.high %v7796_v0, %v7799_v57  ;;  %v4111_v31 = vcombine.low %v4092_v43, %v4108_v50  ;;  %v4112_v48 = vcombine.high %v4092_v43, %v4108_v50  ;;  %v6023_v56 = vpop.eup %6022 }
 0x615   : > { %v7809_v44 = vrot.slane %v4145_v18, %v7277_v46  ;;  %v7815_v1 = vrot.slane %v4161_v47, %v7277_v46  ;;  %v4160_v4 = vrot.slane %v4146_v49, %v7277_v46  ;;  %v4176_v26 = vrot.slane %v4162_v29, %v7277_v46 }
 0x616   : > { %v3767_v40 = vmul.f32 %v6011_v9, %v3646_v11  ;;  %v3768_v20 = vmul.f32 %v6015_v2, %v3649_v30  ;;  %5675 = vmatpush3.bf16.msra.mxu1 %v5916_v58  ;;  %v3765_v30 = vmul.f32 %v6019_v51, %v7785_v7  ;;  %v6025_v2 = vpop.eup %6024  ;;  %v3766_v16 = vmul.f32 %v6023_v56, %v7791_v22 }
 0x617   : > { %v3734_v63 = vpop.f32.mrb[40].mxu0  ;;  %v4178_v61 = vcombine.high %v7809_v44, %v7815_v1  ;;  %v4177_v3 = vcombine.low %v7809_v44, %v7815_v1  ;;  %v4179_v32 = vcombine.low %v4160_v4, %v4176_v26  ;;  %v4180_v54 = vcombine.high %v4160_v4, %v4176_v26  ;;  %5676 = vmatprep.subr.bf16.mxu1 %v5917_v24  ;;  %v5419_v1 = vld [vmem:[%s746_s25] ss:$0 sm:$0xff] }
 0x618   : > { %v3771_v28 = vmul.f32 %v6013_v5, %v3734_v63  ;;  %v5668_v52 = vpop.f32.mrb[41].mxu0  ;;  %v5919_v5 = vld [vmem:[%s7162_s1 + $0x28] sm:$0xff]  }
 0x619   : > { %v3737_v19 = vpop.f32.mrb[42].mxu0  ;;  %v5852_v8 = vpack.i.bf16 %v4178_v61, %v4110_v45  ;;  %v5857_v13 = vpack.i.bf16 %v4179_v32, %v4111_v31  ;;  %v7825_v9 = vpack.i.bf16 %v4180_v54, %v4112_v48 }
 0x61a   : > { %v3925_v34 = vcombine.low %v3767_v40, %v3771_v28  ;;  %v3926_v55 = vcombine.high %v3767_v40, %v3771_v28  ;;  %v3772_v10 = vmul.f32 %v6017_v53, %v3737_v19  ;;  %v5669_v62 = vpop.f32.mrb[43].mxu0  ;;  %5677 = vmatpush3.bf16.msra.mxu1 %v5917_v24 }
 0x61b   : > { %5853 = vrot.lane.b32.xlu1 %v5852_v8, %s6575_s24  ;;  %5678 = vmatprep.subr.bf16.mxu1 %v5918_v25 }
 0x61c   : > { %v3993_v11 = vcombine.low %v3768_v20, %v3772_v10  ;;  %v3994_v12 = vcombine.high %v3768_v20, %v3772_v10  ;;  %v3933_v42 = vrot.slane %v3925_v34, %v7267_v27  ;;  %v3940_v23 = vrot.slane %v3926_v55, %v7267_v27 }
 0x61e   : > { %5679 = vmatpush3.bf16.msra.mxu1 %v5918_v25  ;;  %v4001_v22 = vrot.slane %v3993_v11, %v7267_v27  ;;  %v4008_v4 = vrot.slane %v3994_v12, %v7267_v27 }
 0x61f   : > { %5858 = vrot.lane.b32.xlu1 %v5857_v13, %s6577_s27  ;;  %5680 = vmatprep.subr.bf16.mxu1 %v5919_v5 }
 0x622   : > { %5681 = vmatpush3.bf16.msra.mxu1 %v5919_v5 }
 0x632   : > { %v3690_v33 = vpop.f32.mrb[28].mxu1 }
 0x633   : > { %v3769_v21 = vmul.f32 %v6021_v14, %v3690_v33  ;;  %v5662_v41 = vpop.f32.mrb[29].mxu1 }
 0x634   : > { %v3693_v38 = vpop.f32.mrb[30].mxu1 }
 0x635   : > { %v3909_v15 = vcombine.low %v3765_v30, %v3769_v21  ;;  %v3910_v18 = vcombine.high %v3765_v30, %v3769_v21  ;;  %v3770_v43 = vmul.f32 %v6025_v2, %v3693_v38  ;;  %v5663_v59 = vpop.f32.mrb[31].mxu1  ;;  %v5920_v21 = vld [vmem:[%s7162_s1 + $0x30] sm:$0xff]  }
 0x636   : > { %5682 = vmatprep.subr.bf16.mxu1 %v5920_v21 }
 0x637   : > { %v3917_v45 = vrot.slane %v3909_v15, %v7267_v27  ;;  %v3924_v47 = vrot.slane %v3910_v18, %v7267_v27  ;;  %v3977_v49 = vcombine.low %v3766_v16, %v3770_v43  ;;  %v3978_v7 = vcombine.high %v3766_v16, %v3770_v43  ;;  %5683 = vmatpush3.bf16.msra.mxu1 %v5920_v21 }
 0x639   : > { %v3941_v50 = vcombine.low %v3917_v45, %v3933_v42  ;;  %v3942_v29 = vcombine.high %v3917_v45, %v3933_v42  ;;  %v3957_v60 = vcombine.low %v3924_v47, %v3940_v23  ;;  %v3958_v35 = vcombine.high %v3924_v47, %v3940_v23 }
 0x63a   : > { %v3985_v31 = vrot.slane %v3977_v49, %v7267_v27  ;;  %v3992_v26 = vrot.slane %v3978_v7, %v7267_v27 }
 0x63b   : > { %v3949_v48 = vrot.slane %v3941_v50, %v7277_v46  ;;  %v3956_v63 = vrot.slane %v3942_v29, %v7277_v46  ;;  %v3965_v61 = vrot.slane %v3957_v60, %v7277_v46  ;;  %v3972_v40 = vrot.slane %v3958_v35, %v7277_v46 }
 0x63c   : > { %v4009_v28 = vcombine.low %v3985_v31, %v4001_v22  ;;  %v4010_v52 = vcombine.high %v3985_v31, %v4001_v22  ;;  %v4025_v32 = vcombine.low %v3992_v26, %v4008_v4  ;;  %v4026_v54 = vcombine.high %v3992_v26, %v4008_v4  ;;  %v5921_v4 = vld [vmem:[%s7162_s1 + $0x38] sm:$0xff]  }
 0x63d   : > { %v4181_v58 = vcombine.low %v3949_v48, %v3956_v63  ;;  %v5415_v53 = vcombine.high %v3949_v48, %v3956_v63  ;;  %v4197_v20 = vcombine.low %v3965_v61, %v3972_v40  ;;  %v5416_v19 = vcombine.high %v3965_v61, %v3972_v40  ;;  %5684 = vmatprep.subr.bf16.mxu1 %v5921_v4 }
 0x63e   : > { %v4017_v8 = vrot.slane %v4009_v28, %v7277_v46  ;;  %v4024_v34 = vrot.slane %v4010_v52, %v7277_v46  ;;  %v4033_v55 = vrot.slane %v4025_v32, %v7277_v46  ;;  %v4040_v10 = vrot.slane %v4026_v54, %v7277_v46  ;;  %5685 = vmatpush3.bf16.msra.mxu1 %v5921_v4  ;;  %v5925_v4 = vld [vmem:[%s7167_s23 + $0x10] ss:$8 sps:$4 sm:$0xff]  }
 0x63f   : > { %v4188_v62 = vrot.slane %v4181_v58, %v7267_v27  ;;  %v4196_v13 = vrot.slane %v5415_v53, %v7267_v27  ;;  %v4204_v11 = vrot.slane %v4197_v20, %v7267_v27  ;;  %v4212_v12 = vrot.slane %v5416_v19, %v7267_v27 }
 0x640   : > { %v4249_v24 = vcombine.low %v4017_v8, %v4024_v34  ;;  %v5417_v25 = vcombine.high %v4017_v8, %v4024_v34  ;;  %v4265_v5 = vcombine.low %v4033_v55, %v4040_v10  ;;  %v5418_v51 = vcombine.high %v4033_v55, %v4040_v10 }
 0x641   : > { %v4214_v14 = vcombine.high %v4188_v62, %v4196_v13  ;;  %v4230_v33 = vcombine.high %v4204_v11, %v4212_v12  ;;  %v4213_v56 = vcombine.low %v4188_v62, %v4196_v13  ;;  %v4229_v30 = vcombine.low %v4204_v11, %v4212_v12 }
 0x642   : > { %v4256_v41 = vrot.slane %v4249_v24, %v7267_v27  ;;  %v4264_v2 = vrot.slane %v5417_v25, %v7267_v27  ;;  %v4272_v38 = vrot.slane %v4265_v5, %v7267_v27  ;;  %v4280_v16 = vrot.slane %v5418_v51, %v7267_v27 }
 0x643   : > { %v4228_v15 = vrot.slane %v4214_v14, %v7277_v46  ;;  %v4244_v18 = vrot.slane %v4230_v33, %v7277_v46  ;;  %v4221_v43 = vrot.slane %v4213_v56, %v7277_v46  ;;  %v4237_v59 = vrot.slane %v4229_v30, %v7277_v46 }
 0x644   : > { %v4282_v42 = vcombine.high %v4256_v41, %v4264_v2  ;;  %v4298_v23 = vcombine.high %v4272_v38, %v4280_v16  ;;  %v4281_v45 = vcombine.low %v4256_v41, %v4264_v2  ;;  %v4297_v47 = vcombine.low %v4272_v38, %v4280_v16 }
 0x645   : > { %v4247_v49 = vcombine.low %v4228_v15, %v4244_v18  ;;  %v4245_v7 = vcombine.low %v4221_v43, %v4237_v59  ;;  %v4246_v50 = vcombine.high %v4221_v43, %v4237_v59  ;;  %v4248_v29 = vcombine.high %v4228_v15, %v4244_v18 }
 0x646   : > { %v4296_v27 = vrot.slane %v4282_v42, %v7277_v46  ;;  %v4312_v60 = vrot.slane %v4298_v23, %v7277_v46  ;;  %v4289_v35 = vrot.slane %v4281_v45, %v7277_v46  ;;  %v4305_v22 = vrot.slane %v4297_v47, %v7277_v46  ;;  %v6042_v42 = vld [vmem:[#allocation2] sm:$0xff]  ;;  %v6043_v45 = vld [vmem:[#allocation2 + $0x8] sm:$0xff] }
 0x648   : > { %v4315_v31 = vcombine.low %v4296_v27, %v4312_v60  ;;  %v4314_v26 = vcombine.high %v4289_v35, %v4305_v22  ;;  %v4313_v48 = vcombine.low %v4289_v35, %v4305_v22  ;;  %v4316_v63 = vcombine.high %v4296_v27, %v4312_v60  ;;  %v5922_v60 = vld [vmem:[%s7167_s23] ss:$8 sps:$4 sm:$0xff]   ;;  %v5924_v35 = vld [vmem:[%s7167_s23 + $0x4] ss:$8 sps:$4 sm:$0xff]   ;;  %v5927_v22 = vld [vmem:[%s7167_s23 + $0x14] ss:$8 sps:$4 sm:$0xff]  }
 0x649   : > { %4682 = vmatprep.subr.bf16.mxu0 %v5924_v35 }
 0x64a   : > { %v5872_v61 = vpack.i.bf16 %v4315_v31, %v4247_v49  ;;  %v5862_v40 = vpack.i.bf16 %v4314_v26, %v4246_v50  ;;  %v5877_v28 = vpack.i.bf16 %v4316_v63, %v4248_v29  ;;  %v6045_v29 = vld [vmem:[#allocation2 + $0x18] sm:$0xff]  ;;  %4683 = vmatpush1.bf16.msra.mxu0 %v5922_v60 }
 0x64b   : > { %4684 = vmatprep.subr.bf16.mxu0 %v5927_v22  ;;  %v5429_v22 = vld [vmem:[%s762_s19] ss:$0 sm:$0xff] }
 0x64c   : > { %5873 = vrot.lane.b32.xlu1 %v5872_v61, %s6577_s27  ;;  %5863 = vrot.lane.b32.xlu0 %v5862_v40, %s6575_s24 }
 0x64e   : > { %4685 = vmatpush1.bf16.msra.mxu0 %v5925_v4 }
 0x650   : > { %5878 = vrot.lane.b32.xlu1 %v5877_v28, %s6576_s26  ;;  %5868 = vrot.lane.b32.xlu0 %v7825_v9, %s6576_s26 }
 0x68d   : > { %v5854_v46 = vpop.permute.xlu1 %5853 }
 0x68e   : > { %v5856_v32 = vunpack.i.h.bf16 %v5854_v46  ;;  %v5855_v54 = vunpack.i.l.bf16 %v5854_v46 }
 0x690   : > { %v4365_v9 = vsel %vm2831_vm1, %v4109_v17, %v5855_v54  ;;  %v4366_v11 = vsel %vm2831_vm1, %v4177_v3, %v5856_v32 }
 0x691   : > { %v5859_v52 = vpop.permute.xlu1 %5858 }
 0x692   : > { %v5861_v8 = vunpack.i.h.bf16 %v5859_v52  ;;  %v5860_v34 = vunpack.i.l.bf16 %v5859_v52 }
 0x694   : > { %v4370_v33 = vsel %vm4369_vm3, %v4365_v9, %v5860_v34  ;;  %v4371_v56 = vsel %vm4369_vm3, %v4366_v11, %v5861_v8  ;;  %v5930_v34 = vld [vmem:[%s7167_s23 + $0x24] ss:$8 sps:$4 sm:$0xff]   ;;  %v5934_v9 = vld [vmem:[%s7167_s23 + $0x40] ss:$8 sps:$4 sm:$0xff]   ;;  %v5937_v11 = vld [vmem:[%s7167_s23 + $0x50] ss:$8 sps:$4 sm:$0xff]  }
 0x695   : > { %4686 = vmatprep.subr.bf16.mxu0 %v5930_v34  ;;  %v4590_v34 = vld [vmem:[%s7169_s3] sm:$0x3] }
 0x6be   : > { %v5874_v58 = vpop.permute.xlu1 %5873  ;;  %v5864_v53 = vpop.permute.xlu0 %5863 }
 0x6bf   : > { %v5866_v20 = vunpack.i.h.bf16 %v5864_v53  ;;  %v5865_v19 = vunpack.i.l.bf16 %v5864_v53  ;;  %v5876_v55 = vunpack.i.h.bf16 %v5874_v58  ;;  %v5875_v10 = vunpack.i.l.bf16 %v5874_v58 }
 0x6c1   : > { %v4367_v62 = vsel %vm2831_vm1, %v4245_v7, %v5865_v19  ;;  %v4368_v13 = vsel %vm2831_vm1, %v4313_v48, %v5866_v20  ;;  %v6044_v7 = vld [vmem:[#allocation2 + $0x10] sm:$0xff] }
 0x6c2   : > { %v5879_v12 = vpop.permute.xlu1 %5878  ;;  %v5869_v24 = vpop.permute.xlu0 %5868  ;;  %v4372_v30 = vsel %vm4369_vm3, %v4367_v62, %v5875_v10  ;;  %v4373_v21 = vsel %vm4369_vm3, %v4368_v13, %v5876_v55  ;;  %v5928_v55 = vld [vmem:[%s7167_s23 + $0x20] ss:$8 sps:$4 sm:$0xff]   ;;  %v5933_v10 = vld [vmem:[%s7167_s23 + $0x34] ss:$8 sps:$4 sm:$0xff]   ;;  %v5931_v62 = vld [vmem:[%s7167_s23 + $0x30] ss:$8 sps:$4 sm:$0xff]  }
 0x6c3   : > { %v5881_v25 = vunpack.i.h.bf16 %v5879_v12  ;;  %v5880_v5 = vunpack.i.l.bf16 %v5879_v12  ;;  %v5871_v51 = vunpack.i.h.bf16 %v5869_v24  ;;  %v5870_v14 = vunpack.i.l.bf16 %v5869_v24  ;;  %4687 = vmatpush1.bf16.msra.mxu0 %v5928_v55  ;;  %v5936_v13 = vld [vmem:[%s7167_s23 + $0x44] ss:$8 sps:$4 sm:$0xff]   ;;  %v5939_v12 = vld [vmem:[%s7167_s23 + $0x54] ss:$8 sps:$4 sm:$0xff]  }
 0x6c4   : > { %4688 = vmatprep.subr.bf16.mxu0 %v5933_v10  ;;  %v5942_v24 = vld [vmem:[%s7167_s23 + $0x64] ss:$8 sps:$4 sm:$0xff]   ;;  %v4599_v55 = vrot.slane %v4590_v34, %v966_v39 }
 0x6c5   : > { %v4377_v0 = vsel %vm4374_vm4, %v4372_v30, %v5880_v5  ;;  %v4378_v57 = vsel %vm4374_vm4, %v4373_v21, %v5881_v25  ;;  %v4375_v17 = vsel %vm4374_vm4, %v4370_v33, %v5870_v14  ;;  %v4376_v41 = vsel %vm4374_vm4, %v4371_v56, %v5871_v51  ;;  %v5940_v25 = vld [vmem:[%s7167_s23 + $0x60] ss:$8 sps:$4 sm:$0xff]   ;;  %v5945_v5 = vld [vmem:[%s7167_s23 + $0x74] ss:$8 sps:$4 sm:$0xff]   ;;  %v5943_v51 = vld [vmem:[%s7167_s23 + $0x70] ss:$8 sps:$4 sm:$0xff]  }
 0x6c6   : > { %v4380_v2 = vpack.c.bf16 %v4378_v57, %v4377_v0  ;;  %v4379_v44 = vpack.c.bf16 %v4376_v41, %v4375_v17  ;;  %v5946_v14 = vld [vmem:[%s7171_s0 + $0x40] sm:$0xff]   ;;  %v5948_v56 = vld [vmem:[%s7171_s0 + $0x48] sm:$0xff]   ;;  %v5950_v21 = vld [vmem:[%s7171_s0 + $0x50] sm:$0xff]  }
 0x6c7   : > { %4689 = vmatpush1.bf16.msra.mxu0 %v5931_v62  ;;  %v5947_v33 = vld [vmem:[%s7171_s0] sm:$0xff]   ;;  %5526 = vmatprep.subr.bf16.mxu1 %v5946_v14  ;;  %v5949_v30 = vld [vmem:[%s7171_s0 + $0x8] sm:$0xff]   ;;  %v5951_v0 = vld [vmem:[%s7171_s0 + $0x10] sm:$0xff]  }
 0x6c8   : > { %5686 = vmatprep.mubr.bf16.mxu1 %v4379_v44  ;;  %4690 = vmatprep.subr.bf16.mxu0 %v5936_v13  ;;  %v5952_v57 = vld [vmem:[%s7171_s0 + $0x58] sm:$0xff]   ;;  %v5954_v41 = vld [vmem:[%s7171_s0 + $0x60] sm:$0xff]   ;;  %v5956_v44 = vld [vmem:[%s7171_s0 + $0x68] sm:$0xff]  }
 0x6c9   : > { %5687 = vmatmul.mubr.bf16.vlgmr.msra.gmra.mrb[32].mxu1 %v4380_v2  ;;  %v5953_v17 = vld [vmem:[%s7171_s0 + $0x18] sm:$0xff]   ;;  %v5955_v2 = vld [vmem:[%s7171_s0 + $0x20] sm:$0xff]  }
 0x6ca   : > { %5527 = vmatpush3.bf16.msra.mxu1 %v5947_v33 }
 0x6cb   : > { %4691 = vmatpush1.bf16.msra.mxu0 %v5934_v9  ;;  %5528 = vmatprep.subr.bf16.mxu1 %v5948_v56 }
 0x6cc   : > { %4692 = vmatprep.subr.bf16.mxu0 %v5939_v12 }
 0x6ce   : > { %5529 = vmatpush3.bf16.msra.mxu1 %v5949_v30 }
 0x6cf   : > { %4693 = vmatpush1.bf16.msra.mxu0 %v5937_v11  ;;  %5530 = vmatprep.subr.bf16.mxu1 %v5950_v21 }
 0x6d0   : > { %4694 = vmatprep.subr.bf16.mxu0 %v5942_v24 }
 0x6d2   : > { %5531 = vmatpush3.bf16.msra.mxu1 %v5951_v0 }
 0x6d3   : > { %4695 = vmatpush1.bf16.msra.mxu0 %v5940_v25  ;;  %5532 = vmatprep.subr.bf16.mxu1 %v5952_v57 }
 0x6d4   : > { %4696 = vmatprep.subr.bf16.mxu0 %v5945_v5 }
 0x6d6   : > { %5533 = vmatpush3.bf16.msra.mxu1 %v5953_v17 }
 0x6d7   : > { %4697 = vmatpush1.bf16.msra.mxu0 %v5943_v51  ;;  %5534 = vmatprep.subr.bf16.mxu1 %v5954_v41 }
 0x6da   : > { %5535 = vmatpush3.bf16.msra.mxu1 %v5955_v2 }
 0x6db   : > { %5536 = vmatprep.subr.bf16.mxu1 %v5956_v44 }
 0x79c   : > { %v5688_v3 = vpop.f32.mrb[32].mxu1 }
 0x79d   : > { %v4486_v38 = vpop.f32.mrb[33].mxu1  ;;  %v4495_v43 = vadd.f32 %v5688_v3, %v5419_v1 }
 0x79e   : > { %v4487_v16 = vadd.f32 %v5419_v1, %v4486_v38  ;;  %v5689_v15 = vpop.f32.mrb[34].mxu1 }
 0x79f   : > { %v4489_v18 = vpop.f32.mrb[35].mxu1  ;;  %v4498_v49 = vadd.f32 %v5689_v15, %v5419_v1  ;;  %v4503_v50 = vadd.f32 %v6044_v7, %v4495_v43  ;;  %v5428_v7 = vld [vmem:[%s754_s29] ss:$0 sm:$0xff] }
 0x7a0   : > { %v4490_v59 = vadd.f32 %v5419_v1, %v4489_v18  ;;  %v4501_v23 = vadd.f32 %v6042_v42, %v4487_v16 }
 0x7a1   : > { %v4504_v27 = vadd.f32 %v6045_v29, %v4498_v49 }
 0x7a2   : > { %4505 = vadd.xlane.f32.xlu0 %v4501_v23  ;;  %v4502_v47 = vadd.f32 %v6043_v45, %v4490_v59 }
 0x7a4   : > { %4507 = vadd.xlane.f32.xlu1 %v4502_v47 }
 0x7a6   : > { %4509 = vadd.xlane.f32.xlu0 %v4503_v50 }
 0x7aa   : > { %4511 = vadd.xlane.f32.xlu0 %v4504_v27 }
 0x82f   : > { %v4506_v31 = vpop.xlane.xlu0 %4505 }
 0x830   : > { %v4514_v26 = vmul.f32 0.0078125, %v4506_v31 }
 0x831   : > { %v4508_v48 = vpop.xlane.xlu1 %4507 }
 0x832   : > { %v7892_v63 = vsub.f32 %v4501_v23, %v4514_v26  ;;  %v4515_v61 = vmul.f32 0.0078125, %v4508_v48 }
 0x833   : > { %v4510_v40 = vpop.xlane.xlu0 %4509 }
 0x834   : > { %v7894_v28 = vsub.f32 %v4502_v47, %v4515_v61  ;;  %v4516_v46 = vmul.f32 0.0078125, %v4510_v40  ;;  %v4522_v52 = vmul.f32 %v7892_v63, %v7892_v63 }
 0x836   : > { %v7898_v32 = vsub.f32 %v4503_v50, %v4516_v46  ;;  %4526 = vadd.xlane.f32.xlu1 %v4522_v52  ;;  %v4523_v54 = vmul.f32 %v7894_v28, %v7894_v28 }
 0x837   : > { %v4512_v58 = vpop.xlane.xlu0 %4511 }
 0x838   : > { %v4517_v53 = vmul.f32 0.0078125, %v4512_v58  ;;  %4528 = vadd.xlane.f32.xlu0 %v4523_v54  ;;  %v4524_v20 = vmul.f32 %v7898_v32, %v7898_v32  ;;  %v5957_v58 = vld [vmem:[%s7171_s0 + $0x28] sm:$0xff]  }
 0x839   : > { %5537 = vmatpush3.bf16.msra.mxu1 %v5957_v58 }
 0x83a   : > { %v7904_v19 = vsub.f32 %v4504_v27, %v4517_v53  ;;  %4530 = vadd.xlane.f32.xlu1 %v4524_v20  ;;  %v5958_v53 = vld [vmem:[%s7171_s0 + $0x70] sm:$0xff]  }
 0x83b   : > { %v5959_v20 = vld [vmem:[%s7171_s0 + $0x30] sm:$0xff]   ;;  %5538 = vmatprep.subr.bf16.mxu1 %v5958_v53 }
 0x83c   : > { %v4525_v8 = vmul.f32 %v7904_v19, %v7904_v19 }
 0x83d   : > { %5539 = vmatpush3.bf16.msra.mxu1 %v5959_v20 }
 0x83e   : > { %4532 = vadd.xlane.f32.xlu0 %v4525_v8  ;;  %v5961_v8 = vld [vmem:[%s7171_s0 + $0x38] sm:$0xff]  }
 0x8c3   : > { %v4527_v1 = vpop.xlane.xlu1 %4526 }
 0x8c4   : > { %v4534_v3 = vmul.f32 0.0078125, %v4527_v1 }
 0x8c5   : > { %v4529_v38 = vpop.xlane.xlu0 %4528 }
 0x8c6   : > { %v4538_v16 = vadd.f32 1e-12, %v4534_v3  ;;  %v4535_v15 = vmul.f32 0.0078125, %v4529_v38 }
 0x8c7   : > { %v4531_v18 = vpop.xlane.xlu1 %4530 }
 0x8c8   : > { %6026 = vrsqrt.f32 %v4538_v16  ;;  %v4539_v43 = vadd.f32 1e-12, %v4535_v15  ;;  %v4536_v59 = vmul.f32 0.0078125, %v4531_v18  ;;  %v5446_v18 = vld [vmem:[%s797_s21] ss:$0 sm:$0xff] }
 0x8ca   : > { %6028 = vrsqrt.f32 %v4539_v43  ;;  %v4540_v42 = vadd.f32 1e-12, %v4536_v59 }
 0x8cb   : > { %v4533_v23 = vpop.xlane.xlu0 %4532 }
 0x8cc   : > { %6030 = vrsqrt.f32 %v4540_v42  ;;  %v4537_v45 = vmul.f32 0.0078125, %v4533_v23 }
 0x8ce   : > { %v4541_v47 = vadd.f32 1e-12, %v4537_v45 }
 0x8d0   : > { %6032 = vrsqrt.f32 %v4541_v47 }
 0x8d2   : > { %v6027_v49 = vpop.eup %6026 }
 0x8d3   : > { %v4546_v50 = vmul.f32 %v6027_v49, %v7892_v63 }
 0x8d4   : > { %v6029_v29 = vpop.eup %6028 }
 0x8d5   : > { %v4547_v27 = vmul.f32 %v6029_v29, %v7894_v28  ;;  %v4557_v60 = vmul.f32 %v5428_v7, %v4546_v50 }
 0x8d6   : > { %v6031_v35 = vpop.eup %6030 }
 0x8d7   : > { %v4558_v4 = vmul.f32 %v5428_v7, %v4547_v27  ;;  %v7937_v31 = vadd.f32 %v5429_v22, %v4557_v60  ;;  %v4548_v48 = vmul.f32 %v6031_v35, %v7898_v32 }
 0x8d9   : > { %v7939_v26 = vadd.f32 %v5429_v22, %v4558_v4  ;;  %v4559_v28 = vmul.f32 %v5428_v7, %v4548_v48 }
 0x8da   : > { %v6033_v61 = vpop.eup %6032 }
 0x8db   : > { %v4572_v63 = vpack.c.bf16 %v7939_v26, %v7937_v31  ;;  %v4549_v40 = vmul.f32 %v6033_v61, %v7904_v19  ;;  %v7948_v54 = vadd.f32 %v5429_v22, %v4559_v28  ;;  %v5960_v19 = vld [vmem:[%s7171_s0 + $0x78] sm:$0xff]  }
 0x8dc   : > { %5540 = vmatprep.subr.bf16.mxu1 %v5960_v19 }
 0x8dd   : > { %4715 = vmatmul.mubr.bf16.vlgmr.msra.gmra.mrb[44].mxu0 %v4572_v63  ;;  %v4560_v46 = vmul.f32 %v5428_v7, %v4549_v40  ;;  %5541 = vmatpush3.bf16.msra.mxu1 %v5961_v8 }
 0x8de   : > { %4724 = vmatprep.mubr.bf16.mxu0 %v6574_v6  ;;  %v4595_v6 = vrot.slane %v4590_v34, %v962_v37 }
 0x8df   : > { %v7946_v52 = vadd.f32 %v5429_v22, %v4560_v46 }
 0x8e1   : > { %v4573_v32 = vpack.c.bf16 %v7946_v52, %v7948_v54 }
 0x8e5   : > { %4725 = vmatmul.mubr.bf16.gmra.mrb[48].mxu0 %v4573_v32 }
 0x9b0   : > { %v4716_v10 = vpop.f32.mrb[44].mxu0 }
 0x9b1   : > { %v4717_v62 = vadd.f32 %v4716_v10, %v4595_v6  ;;  %v4718_v13 = vpop.f32.mrb[45].mxu0 }
 0x9b2   : > { %v4719_v9 = vadd.f32 %v4718_v13, %v4599_v55  ;;  %v4720_v11 = vpop.f32.mrb[46].mxu0 }
 0x9b3   : > { %v4721_v12 = vadd.f32 %v4720_v11, %v4595_v6  ;;  %v4722_v24 = vpop.f32.mrb[47].mxu0  ;;  %v4735_v5 = vmax.f32 %v4717_v62, 0.0 }
 0x9b4   : > { %v4723_v25 = vadd.f32 %v4722_v24, %v4599_v55  ;;  %v4736_v14 = vmax.f32 %v4719_v9, 0.0 }
 0x9b5   : > { %v4737_v51 = vmax.f32 %v4721_v12, 0.0 }
 0x9b6   : > { %v4738_v33 = vmax.f32 %v4723_v25, 0.0 }
 0x9b7   : > { %v4743_v56 = vpack.c.bf16 %v4737_v51, %v4735_v5 }
 0x9b8   : > { %v4744_v30 = vpack.c.bf16 %v4738_v33, %v4736_v14  ;;  %v4726_v21 = vpop.f32.mrb[48].mxu0 }
 0x9b9   : > { %v4727_v0 = vadd.f32 %v4726_v21, %v4595_v6  ;;  %v4728_v37 = vpop.f32.mrb[49].mxu0  ;;  %v5463_v21 = vld [vmem:[%s805_s13] ss:$0 sm:$0xff] }
 0x9ba   : > { %v4729_v57 = vadd.f32 %v4728_v37, %v4599_v55  ;;  %v4730_v36 = vpop.f32.mrb[50].mxu0  ;;  %4914 = vmatprep.mubr.bf16.mxu1 %v4744_v30 }
 0x9bb   : > { %v4731_v39 = vadd.f32 %v4730_v36, %v4595_v6  ;;  %v4732_v17 = vpop.f32.mrb[51].mxu0  ;;  %4915 = vmatmul.mubr.bf16.vlgmr.msra.gmra.mrb[36].mxu1 %v4743_v56  ;;  %v4739_v2 = vmax.f32 %v4727_v0, 0.0 }
 0x9bc   : > { %v4733_v41 = vadd.f32 %v4732_v17, %v4599_v55  ;;  %v4740_v1 = vmax.f32 %v4729_v57, 0.0  ;;  %v5464_v57 = vld [vmem:[%s813_s16] ss:$0 sm:$0xff] }
 0x9bd   : > { %v4741_v44 = vmax.f32 %v4731_v39, 0.0 }
 0x9be   : > { %v4742_v3 = vmax.f32 %v4733_v41, 0.0 }
 0x9bf   : > { %v4745_v38 = vpack.c.bf16 %v4741_v44, %v4739_v2 }
 0x9c0   : > { %v4746_v16 = vpack.c.bf16 %v4742_v3, %v4740_v1 }
 0x9c2   : > { %4922 = vmatprep.mubr.bf16.mxu1 %v4746_v16 }
 0x9c3   : > { %4923 = vmatmul.mubr.bf16.gmra.mrb[40].mxu1 %v4745_v38 }
 0xa8e   : > { %v5542_v15 = vpop.f32.mrb[36].mxu1 }
 0xa8f   : > { %v5543_v43 = vpop.f32.mrb[37].mxu1 }
 0xa90   : > { %v5544_v59 = vadd.f32 %v5543_v43, %v5542_v15  ;;  %v5545_v42 = vpop.f32.mrb[38].mxu1 }
 0xa91   : > { %v5546_v23 = vpop.f32.mrb[39].mxu1 }
 0xa92   : > { %v4917_v45 = vadd.f32 %v5544_v59, %v5446_v18  ;;  %v5547_v47 = vadd.f32 %v5546_v23, %v5545_v42 }
 0xa94   : > { %v4920_v49 = vadd.f32 %v5547_v47, %v5446_v18  ;;  %v4931_v7 = vadd.f32 %v4917_v45, %v7937_v31 }
 0xa96   : > { %v5548_v50 = vpop.f32.mrb[40].mxu1  ;;  %4935 = vadd.xlane.f32.xlu1 %v4931_v7  ;;  %v4932_v29 = vadd.f32 %v4920_v49, %v7939_v26 }
 0xa97   : > { %v5549_v27 = vpop.f32.mrb[41].mxu1 }
 0xa98   : > { %v5550_v60 = vadd.f32 %v5549_v27, %v5548_v50  ;;  %v5551_v35 = vpop.f32.mrb[42].mxu1  ;;  %4937 = vadd.xlane.f32.xlu0 %v4932_v29 }
 0xa99   : > { %v5552_v22 = vpop.f32.mrb[43].mxu1 }
 0xa9a   : > { %v4925_v4 = vadd.f32 %v5550_v60, %v5446_v18  ;;  %v5553_v48 = vadd.f32 %v5552_v22, %v5551_v35 }
 0xa9c   : > { %v4928_v61 = vadd.f32 %v5553_v48, %v5446_v18  ;;  %v4933_v63 = vadd.f32 %v4925_v4, %v7948_v54 }
 0xa9e   : > { %4939 = vadd.xlane.f32.xlu1 %v4933_v63  ;;  %v4934_v40 = vadd.f32 %v4928_v61, %v7946_v52 }
 0xaa0   : > { %4941 = vadd.xlane.f32.xlu0 %v4934_v40 }
 0xb23   : > { %v4936_v28 = vpop.xlane.xlu1 %4935 }
 0xb24   : > { %v4943_v31 = vmul.f32 0.0078125, %v4936_v28 }
 0xb25   : > { %v4938_v46 = vpop.xlane.xlu0 %4937 }
 0xb26   : > { %v4947_v32 = vsub.f32 %v4931_v7, %v4943_v31  ;;  %v4944_v58 = vmul.f32 0.0078125, %v4938_v46 }
 0xb28   : > { %v4948_v26 = vsub.f32 %v4932_v29, %v4944_v58  ;;  %v4951_v53 = vmul.f32 %v4947_v32, %v4947_v32 }
 0xb2a   : > { %4955 = vadd.xlane.f32.xlu1 %v4951_v53  ;;  %v4952_v20 = vmul.f32 %v4948_v26, %v4948_v26 }
 0xb2b   : > { %v4940_v19 = vpop.xlane.xlu1 %4939 }
 0xb2c   : > { %v4945_v8 = vmul.f32 0.0078125, %v4940_v19  ;;  %4957 = vadd.xlane.f32.xlu0 %v4952_v20 }
 0xb2d   : > { %v4942_v34 = vpop.xlane.xlu0 %4941 }
 0xb2e   : > { %v4949_v6 = vsub.f32 %v4933_v63, %v4945_v8  ;;  %v4946_v55 = vmul.f32 0.0078125, %v4942_v34 }
 0xb30   : > { %v4950_v54 = vsub.f32 %v4934_v40, %v4946_v55  ;;  %v4953_v10 = vmul.f32 %v4949_v6, %v4949_v6 }
 0xb32   : > { %4959 = vadd.xlane.f32.xlu1 %v4953_v10  ;;  %v4954_v52 = vmul.f32 %v4950_v54, %v4950_v54 }
 0xb34   : > { %4961 = vadd.xlane.f32.xlu0 %v4954_v52 }
 0xbb7   : > { %v4956_v62 = vpop.xlane.xlu1 %4955 }
 0xbb8   : > { %v4963_v13 = vmul.f32 0.0078125, %v4956_v62 }
 0xbb9   : > { %v4958_v9 = vpop.xlane.xlu0 %4957 }
 0xbba   : > { %v4967_v11 = vadd.f32 1e-12, %v4963_v13  ;;  %v4964_v12 = vmul.f32 0.0078125, %v4958_v9 }
 0xbbc   : > { %6034 = vrsqrt.f32 %v4967_v11  ;;  %v4968_v24 = vadd.f32 1e-12, %v4964_v12 }
 0xbbe   : > { %6036 = vrsqrt.f32 %v4968_v24 }
 0xbbf   : > { %v4960_v25 = vpop.xlane.xlu1 %4959 }
 0xbc0   : > { %v4965_v5 = vmul.f32 0.0078125, %v4960_v25 }
 0xbc1   : > { %v4962_v51 = vpop.xlane.xlu0 %4961 }
 0xbc2   : > { %v4969_v14 = vadd.f32 1e-12, %v4965_v5  ;;  %v4966_v33 = vmul.f32 0.0078125, %v4962_v51 }
 0xbc4   : > { %6038 = vrsqrt.f32 %v4969_v14  ;;  %v4970_v56 = vadd.f32 1e-12, %v4966_v33 }
 0xbc6   : > { %v6035_v30 = vpop.eup %6034  ;;  %6040 = vrsqrt.f32 %v4970_v56 }
 0xbc7   : > { %v4975_v0 = vmul.f32 %v6035_v30, %v4947_v32 }
 0xbc8   : > { %v6037_v37 = vpop.eup %6036 }
 0xbc9   : > { %v4986_v36 = vmul.f32 %v5463_v21, %v4975_v0  ;;  %v4976_v39 = vmul.f32 %v6037_v37, %v4948_v26 }
 0xbcb   : > { %v4997_v17 = vadd.f32 %v5464_v57, %v4986_v36  ;;  %v4987_v41 = vmul.f32 %v5463_v21, %v4976_v39 }
 0xbcd   : > { %5001 = vst [vmem:[#allocation2] sm:$0xff] %v4997_v17  ;;  %v4998_v2 = vadd.f32 %v5464_v57, %v4987_v41  ;;  %5009 = vst [vmem:[#allocation20] sm:$0xff] (!%p5465_p4), %v4997_v17 }
 0xbce   : > { %v6039_v44 = vpop.eup %6038 }
 0xbcf   : > { %5002 = vst [vmem:[#allocation2 + $0x8] sm:$0xff] %v4998_v2  ;;  %v4977_v1 = vmul.f32 %v6039_v44, %v4949_v6  ;;  %5010 = vst [vmem:[#allocation20 + $0x8] sm:$0xff] (!%p5465_p4), %v4998_v2 }
 0xbd0   : > { %v6041_v3 = vpop.eup %6040 }
 0xbd1   : > { %v4988_v38 = vmul.f32 %v5463_v21, %v4977_v1  ;;  %v4978_v16 = vmul.f32 %v6041_v3, %v4950_v54  ;;  %5008 = sbr.rel (%p5465_p4) target bundleno = 3032 (0xbd8), region = 140 }
 0xbd3   : > { %v4999_v15 = vadd.f32 %v5464_v57, %v4988_v38  ;;  %v4989_v18 = vmul.f32 %v5463_v21, %v4978_v16 }
 0xbd5   : > { %5003 = vst [vmem:[#allocation2 + $0x10] sm:$0xff] %v4999_v15  ;;  %v5000_v43 = vadd.f32 %v5464_v57, %v4989_v18  ;;  %5011 = vst [vmem:[#allocation20 + $0x10] sm:$0xff] (!%p5465_p4), %v4999_v15 }
 0xbd7   : > { %5004 = vst [vmem:[#allocation2 + $0x18] sm:$0xff] %v5000_v43  ;;  %5012 = vst [vmem:[#allocation20 + $0x18] sm:$0xff] (!%p5465_p4), %v5000_v43 }
 0xbd8 PF: > { %s8124_s14 = sld [smem:[#allocation29_spill]]  ;;  %s6582_s28 = smov [#allocation20]  }
 0xbd9   : > { %s5023_s18 = sshll.u32 %s6582_s28, 4  ;;  %s5024_s18 = int_to_ptr.vmem [resolvable:$true] %s5023_s18 }
 0xbda   : > { %s6462_s30 = scalar_lea.vmem %s5024_s18, 512  ;;  %p6469_p2 = scmp.lt.s32.totalorder %s5024_s18, %s5024_s18 }
 0xbdb   : > { %p6463_p3 = scmp.ne.s32.totalorder %s5024_s18, %s6462_s30  ;;  %p6470_p5 = scmp.lt.s32.totalorder %s6462_s30, %s6462_s30 }
 0xbdd   : > { %p6471_p6 = por %p6470_p5, %p6469_p2 }
 0xbde   : > { %p5781_p0 = scmp.eq.s32.totalorder %s8124_s14, 1 }
 0xbe0   : > { %p6464_p13 = pnand %p6463_p3, %p5781_p0 }
 0xbe2   : > { %p6465_p9 = pneg %p6464_p13 }
 0xbe4   : > { %p6472_p11 = pnand %p6471_p6, %p6465_p9 }
 0xbe6   : > { %6475 = shalt.err (!%p6472_p11)
}
 0xbe7   : > { %s8125_s29 = sld [smem:[#allocation40_spill]] }
 0xbed   : > { %s8126_s19 = smov %s8125_s29  ;;  %s6476_s23 = scalar_lea.hbm %s8125_s29, 512 }
 0xbee   : > { %p6477_p12 = scmp.ne.s32.totalorder %s8126_s19, %s6476_s23  ;;  %p6482_p1 = scmp.lt.u32.totalorder %s6476_s23, %s8126_s19 }
 0xbf0   : > { %p6478_p7 = pnand %p6477_p12, %p5781_p0 }
 0xbf2   : > { %p6479_p10 = pneg %p6478_p7 }
 0xbf4   : > { %p6484_p8 = pnand %p6482_p1, %p6479_p10 }
 0xbf6   : > { %6487 = shalt.err (!%p6484_p8)
}
 0xbf7   : > { %s6583_s16 = smov 128   ;;  %s6584_s15 = smov 8  }
 0xbf8   : > { %5729 = dma.vmem_to_hbm [thread:$0]  (%p5781_p0), %s5024_s18, 512, %s8126_s19, [#allocation5], %s6583_s16, %s6583_s16, %s6584_s15  }
 0xbf9   : > { %6525 = dma.done.wait (%p5781_p0), [#allocation5], 512  }
 0xbfa   : > { %6527 = vsyncadd (%p5781_p0), [#allocation5], 4294966784 }
 0xbfb PF: > { %s8127_s27 = sld [smem:[#allocation28_spill]]  ;;  %s8128_s29 = sld [smem:[#allocation25_spill]] }
 0xbfc   : > { %s8129_s30 = sld [smem:[#allocation26_spill]]  ;;  %s8130_s15 = sld [smem:[#allocation32_spill]] }
 0xbfd   : > { %s8131_s2 = sld [smem:[#allocation30_spill]]  ;;  %s8132_s16 = smov %s6546_s17 }
 0xc01   : > { %s27_s18 = sadd.s32 1, %s8127_s27  }
 0xc02   : > { %p24_p4 = scmp.ge.s32.totalorder %s27_s18, 4  }
 0xc03   : > { %s8133_s17 = smov %s8131_s2 }
 0xc04   :  { %26 = sbr.rel (!%p24_p4) target bundleno = 12 (0xc), region = 252 }
 0xc0b   :  { %5039 = vsyncpa [#allocation4], 1 }
 0xc0c   :  { %5041 = vsyncpa [#allocation4 + $0x1], 1 }
 0xc0d   :  { %5042 = vsyncpa [#allocation7], 1 }
 0xc0e   :  { %5043 = vsyncpa [#allocation5], 1 }
 0xc0f   :  { %5045 = vsyncpa [#allocation5 + $0x1], 1 }

</bundles_post_ra>
